<compile_context>
chip_gen: v5e
topology: v5e:2x2
jax: 0.10.0
libtpu: 0.0.40
codegen_flags: <defaults>
</compile_context>

<pallas_src>
import functools

import jax
import jax.numpy as jnp
from jax.experimental import pallas as pl
from jax.experimental.pallas import tpu as pltpu


def _recursion_kernel(x_ref, ff_ref, fb_ref, o_ref, *, n_in, n_out):
    # x_ref : (B, N_in, TM)       input,     frequency bins on lanes
    # ff_ref: (N_out, N_in, TM)   feedforward responses
    # fb_ref: (N_in, N_out, TM)   feedback responses
    # o_ref : (B, N_out, TM)      closed-loop output
    f32 = jnp.float32
    x = x_ref[...].astype(f32)     # (B, N_in, TM)
    ff = ff_ref[...].astype(f32)   # (N_out, N_in, TM)
    fb = fb_ref[...].astype(f32)   # (N_in, N_out, TM)

    # rhs[o] = feedforward(X):  rhs[o][b, m] = sum_i FF[o,i,m] * X[b,i,m]
    rhs = []
    for o in range(n_out):
        acc = ff[o, 0][None, :] * x[:, 0, :]
        for i in range(1, n_in):
            acc = acc + ff[o, i][None, :] * x[:, i, :]
        rhs.append(acc)                                   # (B, TM)

    # A = I - FF @ FB per bin (feedback(I) == FB, feedforward(FB) == FF @ FB).
    A = []
    for o in range(n_out):
        row = []
        for p in range(n_out):
            g = ff[o, 0] * fb[0, p]
            for i in range(1, n_in):
                g = g + ff[o, i] * fb[i, p]
            row.append(1.0 - g if o == p else -g)          # (TM,)
        A.append(row)

    # Lane-vectorized Gauss-Jordan solve of A y = rhs, unrolled over the small
    # channel count (one independent N_out x N_out system per frequency bin).
    # TODO(synk): no partial pivoting; assumes I - FF@FB is well conditioned
    # per bin (stable closed loop), as in the torch.linalg.solve use case.
    for k in range(n_out):
        inv_p = pl.reciprocal(A[k][k])                     # exact 1/x, (TM,)
        for p in range(k + 1, n_out):
            A[k][p] = A[k][p] * inv_p
        rhs[k] = rhs[k] * inv_p[None, :]
        for o in range(n_out):
            if o == k:
                continue
            f = A[o][k]                                    # (TM,)
            for p in range(k + 1, n_out):
                A[o][p] = A[o][p] - f * A[k][p]
            rhs[o] = rhs[o] - f[None, :] * rhs[k]

    # Single lane-dense store of the whole output tile.
    o_ref[...] = jnp.stack(rhs, axis=1).astype(o_ref.dtype)


def recursion_forward_ml(x_ml, ff_ml, fb_ml, *, block_m=None):
    """Fast path, M-last layout (no transposes).

    x_ml : (B, N_in, M)
    ff_ml: (N_out, N_in, M)
    fb_ml: (N_in, N_out, M)
    returns (B, N_out, M)
    """
    b, n_in, m = x_ml.shape
    n_out = ff_ml.shape[0]
    assert ff_ml.shape == (n_out, n_in, m)
    assert fb_ml.shape == (n_in, n_out, m)

    if block_m is None:
        itemsize = jnp.dtype(x_ml.dtype).itemsize
        per_bin_bytes = (b * n_in + 2 * n_in * n_out + b * n_out) * itemsize
        # Keep the double-buffered working set well under the v7x scoped-VMEM
        # default; fall back to a single full-extent block if nothing divides M.
        budget = 8 * 1024 * 1024
        block_m = m
        for cand in (1024, 512, 256, 128):
            if m % cand == 0 and 2 * cand * per_bin_bytes <= budget:
                block_m = cand
                break
    assert m % block_m == 0

    kernel = functools.partial(_recursion_kernel, n_in=n_in, n_out=n_out)

    return pl.pallas_call(
        kernel,
        out_shape=jax.ShapeDtypeStruct((b, n_out, m), x_ml.dtype),
        grid=(m // block_m,),
        in_specs=[
            pl.BlockSpec((b, n_in, block_m), lambda i: (0, 0, i)),
            pl.BlockSpec((n_out, n_in, block_m), lambda i: (0, 0, i)),
            pl.BlockSpec((n_in, n_out, block_m), lambda i: (0, 0, i)),
        ],
        out_specs=pl.BlockSpec((b, n_out, block_m), lambda i: (0, 0, i)),
        compiler_params=pltpu.CompilerParams(
            dimension_semantics=("parallel",),
        ),
    )(x_ml, ff_ml, fb_ml)


def recursion_forward(x, ff, fb, *, block_m=None):
    """Convenience wrapper for the PyTorch layout.

    x : (B, M, N_in), ff : (M, N_out, N_in), fb : (M, N_in, N_out)
    returns (B, M, N_out).
    The transposes here are layout glue for torch-layout callers; prefer
    recursion_forward_ml to avoid them entirely.
    """
    x_ml = jnp.transpose(x, (0, 2, 1))       # (B, N_in, M)
    ff_ml = jnp.transpose(ff, (1, 2, 0))     # (N_out, N_in, M)
    fb_ml = jnp.transpose(fb, (1, 2, 0))     # (N_in, N_out, M)
    y_ml = recursion_forward_ml(x_ml, ff_ml, fb_ml, block_m=block_m)
    return jnp.transpose(y_ml, (0, 2, 1))    # (B, M, N_out)


def recursion_reference(x, ff, fb):
    """Pure-JAX reference mirroring the PyTorch Recursion.forward."""
    bsz, m, _ = x.shape
    n_out = ff.shape[1]
    Bv = jnp.einsum("moi,bmi->bmo", ff, x)
    I = jnp.broadcast_to(jnp.eye(n_out, dtype=x.dtype), (bsz, m, n_out, n_out))
    HH = jnp.einsum("mio,bmok->bmik", fb, I)          # feedback(I)
    A = I - jnp.einsum("moi,bmik->bmok", ff, HH)      # I - feedforward(HH)
    return jnp.linalg.solve(A, Bv[..., None])[..., 0]


if __name__ == "__main__":
    key = jax.random.PRNGKey(0)
    k_x, k_f, k_b = jax.random.split(key, 3)

    # Small shapes consistent with Recursion: (B, M, N_in) input,
    # per-bin (M, N_out, N_in) / (M, N_in, N_out) path matrices.
    B, M, N = 2, 512, 4

    x = jax.random.normal(k_x, (B, M, N), dtype=jnp.float32)
    # Scale the loop filters so I - FF@FB is well conditioned (stable loop).
    ff = 0.25 * jax.random.normal(k_f, (M, N, N), dtype=jnp.float32)
    fb = 0.25 * jax.random.normal(k_b, (M, N, N), dtype=jnp.float32)

    y_ref = recursion_reference(x, ff, fb)

    # Torch-layout wrapper (auto block size).
    y = jax.block_until_ready(recursion_forward(x, ff, fb))
    assert y.shape == (B, M, N)
    assert jnp.allclose(y, y_ref, atol=1e-4, rtol=1e-4), float(
        jnp.max(jnp.abs(y - y_ref))
    )

    # M-last fast path with an explicitly blocked (multi-step, pipelined) grid.
    x_ml = jnp.transpose(x, (0, 2, 1))
    ff_ml = jnp.transpose(ff, (1, 2, 0))
    fb_ml = jnp.transpose(fb, (1, 2, 0))
    y_ml = jax.block_until_ready(
        recursion_forward_ml(x_ml, ff_ml, fb_ml, block_m=128)
    )
    assert jnp.allclose(
        jnp.transpose(y_ml, (0, 2, 1)), y_ref, atol=1e-4, rtol=1e-4
    ), float(jnp.max(jnp.abs(jnp.transpose(y_ml, (0, 2, 1)) - y_ref)))

    print("KERNEL_OK")
</pallas_src>

<mosaic_0001>
module attributes {stable_mosaic.version = 11 : i64} {
  func.func @_recursion_kernel(%arg0: i32, %arg1: memref<2x4x512xf32, #tpu.memory_space<vmem>>, %arg2: memref<4x4x512xf32, #tpu.memory_space<vmem>>, %arg3: memref<4x4x512xf32, #tpu.memory_space<vmem>>, %arg4: memref<2x4x512xf32, #tpu.memory_space<vmem>>) attributes {dimension_semantics = [#tpu.dimension_semantics<parallel>], iteration_bounds = array<i64: 1>, scalar_prefetch = 0 : i64, scratch_operands = 0 : i64, tpu.core_type = #tpu.core_type<tc>, window_params = [{transform_indices = @transform_0, window_bounds = array<i64: 2, 4, 512>}, {transform_indices = @transform_1, window_bounds = array<i64: 4, 4, 512>}, {transform_indices = @transform_2, window_bounds = array<i64: 4, 4, 512>}, {transform_indices = @transform_3, window_bounds = array<i64: 2, 4, 512>}]} {
    %c0 = arith.constant 0 : index
    %c0_0 = arith.constant 0 : index
    %c0_1 = arith.constant 0 : index
    %0 = vector.load %arg1[%c0, %c0_0, %c0_1] : memref<2x4x512xf32, #tpu.memory_space<vmem>>, vector<2x4x512xf32>
    %c0_2 = arith.constant 0 : index
    %c0_3 = arith.constant 0 : index
    %c0_4 = arith.constant 0 : index
    %1 = vector.load %arg2[%c0_2, %c0_3, %c0_4] : memref<4x4x512xf32, #tpu.memory_space<vmem>>, vector<4x4x512xf32>
    %c0_5 = arith.constant 0 : index
    %c0_6 = arith.constant 0 : index
    %c0_7 = arith.constant 0 : index
    %2 = vector.load %arg3[%c0_5, %c0_6, %c0_7] : memref<4x4x512xf32, #tpu.memory_space<vmem>>, vector<4x4x512xf32>
    %3 = vector.extract_strided_slice %1 {offsets = [0, 0, 0], sizes = [1, 1, 512], strides = [1, 1, 1]} : vector<4x4x512xf32> to vector<1x1x512xf32>
    %4 = vector.shape_cast %3 : vector<1x1x512xf32> to vector<512xf32>
    %5 = vector.shape_cast %4 : vector<512xf32> to vector<1x512xf32>
    %6 = vector.extract_strided_slice %0 {offsets = [0, 0, 0], sizes = [2, 1, 512], strides = [1, 1, 1]} : vector<2x4x512xf32> to vector<2x1x512xf32>
    %7 = vector.shape_cast %6 : vector<2x1x512xf32> to vector<2x512xf32>
    %8 = vector.broadcast %5 : vector<1x512xf32> to vector<2x512xf32>
    %9 = arith.mulf %8, %7 : vector<2x512xf32>
    %10 = vector.extract_strided_slice %1 {offsets = [0, 1, 0], sizes = [1, 1, 512], strides = [1, 1, 1]} : vector<4x4x512xf32> to vector<1x1x512xf32>
    %11 = vector.shape_cast %10 : vector<1x1x512xf32> to vector<512xf32>
    %12 = vector.shape_cast %11 : vector<512xf32> to vector<1x512xf32>
    %13 = vector.extract_strided_slice %0 {offsets = [0, 1, 0], sizes = [2, 1, 512], strides = [1, 1, 1]} : vector<2x4x512xf32> to vector<2x1x512xf32>
    %14 = vector.shape_cast %13 : vector<2x1x512xf32> to vector<2x512xf32>
    %15 = vector.broadcast %12 : vector<1x512xf32> to vector<2x512xf32>
    %16 = arith.mulf %15, %14 : vector<2x512xf32>
    %17 = arith.addf %9, %16 : vector<2x512xf32>
    %18 = vector.extract_strided_slice %1 {offsets = [0, 2, 0], sizes = [1, 1, 512], strides = [1, 1, 1]} : vector<4x4x512xf32> to vector<1x1x512xf32>
    %19 = vector.shape_cast %18 : vector<1x1x512xf32> to vector<512xf32>
    %20 = vector.shape_cast %19 : vector<512xf32> to vector<1x512xf32>
    %21 = vector.extract_strided_slice %0 {offsets = [0, 2, 0], sizes = [2, 1, 512], strides = [1, 1, 1]} : vector<2x4x512xf32> to vector<2x1x512xf32>
    %22 = vector.shape_cast %21 : vector<2x1x512xf32> to vector<2x512xf32>
    %23 = vector.broadcast %20 : vector<1x512xf32> to vector<2x512xf32>
    %24 = arith.mulf %23, %22 : vector<2x512xf32>
    %25 = arith.addf %17, %24 : vector<2x512xf32>
    %26 = vector.extract_strided_slice %1 {offsets = [0, 3, 0], sizes = [1, 1, 512], strides = [1, 1, 1]} : vector<4x4x512xf32> to vector<1x1x512xf32>
    %27 = vector.shape_cast %26 : vector<1x1x512xf32> to vector<512xf32>
    %28 = vector.shape_cast %27 : vector<512xf32> to vector<1x512xf32>
    %29 = vector.extract_strided_slice %0 {offsets = [0, 3, 0], sizes = [2, 1, 512], strides = [1, 1, 1]} : vector<2x4x512xf32> to vector<2x1x512xf32>
    %30 = vector.shape_cast %29 : vector<2x1x512xf32> to vector<2x512xf32>
    %31 = vector.broadcast %28 : vector<1x512xf32> to vector<2x512xf32>
    %32 = arith.mulf %31, %30 : vector<2x512xf32>
    %33 = arith.addf %25, %32 : vector<2x512xf32>
    %34 = vector.extract_strided_slice %1 {offsets = [1, 0, 0], sizes = [1, 1, 512], strides = [1, 1, 1]} : vector<4x4x512xf32> to vector<1x1x512xf32>
    %35 = vector.shape_cast %34 : vector<1x1x512xf32> to vector<512xf32>
    %36 = vector.shape_cast %35 : vector<512xf32> to vector<1x512xf32>
    %37 = vector.extract_strided_slice %0 {offsets = [0, 0, 0], sizes = [2, 1, 512], strides = [1, 1, 1]} : vector<2x4x512xf32> to vector<2x1x512xf32>
    %38 = vector.shape_cast %37 : vector<2x1x512xf32> to vector<2x512xf32>
    %39 = vector.broadcast %36 : vector<1x512xf32> to vector<2x512xf32>
    %40 = arith.mulf %39, %38 : vector<2x512xf32>
    %41 = vector.extract_strided_slice %1 {offsets = [1, 1, 0], sizes = [1, 1, 512], strides = [1, 1, 1]} : vector<4x4x512xf32> to vector<1x1x512xf32>
    %42 = vector.shape_cast %41 : vector<1x1x512xf32> to vector<512xf32>
    %43 = vector.shape_cast %42 : vector<512xf32> to vector<1x512xf32>
    %44 = vector.extract_strided_slice %0 {offsets = [0, 1, 0], sizes = [2, 1, 512], strides = [1, 1, 1]} : vector<2x4x512xf32> to vector<2x1x512xf32>
    %45 = vector.shape_cast %44 : vector<2x1x512xf32> to vector<2x512xf32>
    %46 = vector.broadcast %43 : vector<1x512xf32> to vector<2x512xf32>
    %47 = arith.mulf %46, %45 : vector<2x512xf32>
    %48 = arith.addf %40, %47 : vector<2x512xf32>
    %49 = vector.extract_strided_slice %1 {offsets = [1, 2, 0], sizes = [1, 1, 512], strides = [1, 1, 1]} : vector<4x4x512xf32> to vector<1x1x512xf32>
    %50 = vector.shape_cast %49 : vector<1x1x512xf32> to vector<512xf32>
    %51 = vector.shape_cast %50 : vector<512xf32> to vector<1x512xf32>
    %52 = vector.extract_strided_slice %0 {offsets = [0, 2, 0], sizes = [2, 1, 512], strides = [1, 1, 1]} : vector<2x4x512xf32> to vector<2x1x512xf32>
    %53 = vector.shape_cast %52 : vector<2x1x512xf32> to vector<2x512xf32>
    %54 = vector.broadcast %51 : vector<1x512xf32> to vector<2x512xf32>
    %55 = arith.mulf %54, %53 : vector<2x512xf32>
    %56 = arith.addf %48, %55 : vector<2x512xf32>
    %57 = vector.extract_strided_slice %1 {offsets = [1, 3, 0], sizes = [1, 1, 512], strides = [1, 1, 1]} : vector<4x4x512xf32> to vector<1x1x512xf32>
    %58 = vector.shape_cast %57 : vector<1x1x512xf32> to vector<512xf32>
    %59 = vector.shape_cast %58 : vector<512xf32> to vector<1x512xf32>
    %60 = vector.extract_strided_slice %0 {offsets = [0, 3, 0], sizes = [2, 1, 512], strides = [1, 1, 1]} : vector<2x4x512xf32> to vector<2x1x512xf32>
    %61 = vector.shape_cast %60 : vector<2x1x512xf32> to vector<2x512xf32>
    %62 = vector.broadcast %59 : vector<1x512xf32> to vector<2x512xf32>
    %63 = arith.mulf %62, %61 : vector<2x512xf32>
    %64 = arith.addf %56, %63 : vector<2x512xf32>
    %65 = vector.extract_strided_slice %1 {offsets = [2, 0, 0], sizes = [1, 1, 512], strides = [1, 1, 1]} : vector<4x4x512xf32> to vector<1x1x512xf32>
    %66 = vector.shape_cast %65 : vector<1x1x512xf32> to vector<512xf32>
    %67 = vector.shape_cast %66 : vector<512xf32> to vector<1x512xf32>
    %68 = vector.extract_strided_slice %0 {offsets = [0, 0, 0], sizes = [2, 1, 512], strides = [1, 1, 1]} : vector<2x4x512xf32> to vector<2x1x512xf32>
    %69 = vector.shape_cast %68 : vector<2x1x512xf32> to vector<2x512xf32>
    %70 = vector.broadcast %67 : vector<1x512xf32> to vector<2x512xf32>
    %71 = arith.mulf %70, %69 : vector<2x512xf32>
    %72 = vector.extract_strided_slice %1 {offsets = [2, 1, 0], sizes = [1, 1, 512], strides = [1, 1, 1]} : vector<4x4x512xf32> to vector<1x1x512xf32>
    %73 = vector.shape_cast %72 : vector<1x1x512xf32> to vector<512xf32>
    %74 = vector.shape_cast %73 : vector<512xf32> to vector<1x512xf32>
    %75 = vector.extract_strided_slice %0 {offsets = [0, 1, 0], sizes = [2, 1, 512], strides = [1, 1, 1]} : vector<2x4x512xf32> to vector<2x1x512xf32>
    %76 = vector.shape_cast %75 : vector<2x1x512xf32> to vector<2x512xf32>
    %77 = vector.broadcast %74 : vector<1x512xf32> to vector<2x512xf32>
    %78 = arith.mulf %77, %76 : vector<2x512xf32>
    %79 = arith.addf %71, %78 : vector<2x512xf32>
    %80 = vector.extract_strided_slice %1 {offsets = [2, 2, 0], sizes = [1, 1, 512], strides = [1, 1, 1]} : vector<4x4x512xf32> to vector<1x1x512xf32>
    %81 = vector.shape_cast %80 : vector<1x1x512xf32> to vector<512xf32>
    %82 = vector.shape_cast %81 : vector<512xf32> to vector<1x512xf32>
    %83 = vector.extract_strided_slice %0 {offsets = [0, 2, 0], sizes = [2, 1, 512], strides = [1, 1, 1]} : vector<2x4x512xf32> to vector<2x1x512xf32>
    %84 = vector.shape_cast %83 : vector<2x1x512xf32> to vector<2x512xf32>
    %85 = vector.broadcast %82 : vector<1x512xf32> to vector<2x512xf32>
    %86 = arith.mulf %85, %84 : vector<2x512xf32>
    %87 = arith.addf %79, %86 : vector<2x512xf32>
    %88 = vector.extract_strided_slice %1 {offsets = [2, 3, 0], sizes = [1, 1, 512], strides = [1, 1, 1]} : vector<4x4x512xf32> to vector<1x1x512xf32>
    %89 = vector.shape_cast %88 : vector<1x1x512xf32> to vector<512xf32>
    %90 = vector.shape_cast %89 : vector<512xf32> to vector<1x512xf32>
    %91 = vector.extract_strided_slice %0 {offsets = [0, 3, 0], sizes = [2, 1, 512], strides = [1, 1, 1]} : vector<2x4x512xf32> to vector<2x1x512xf32>
    %92 = vector.shape_cast %91 : vector<2x1x512xf32> to vector<2x512xf32>
    %93 = vector.broadcast %90 : vector<1x512xf32> to vector<2x512xf32>
    %94 = arith.mulf %93, %92 : vector<2x512xf32>
    %95 = arith.addf %87, %94 : vector<2x512xf32>
    %96 = vector.extract_strided_slice %1 {offsets = [3, 0, 0], sizes = [1, 1, 512], strides = [1, 1, 1]} : vector<4x4x512xf32> to vector<1x1x512xf32>
    %97 = vector.shape_cast %96 : vector<1x1x512xf32> to vector<512xf32>
    %98 = vector.shape_cast %97 : vector<512xf32> to vector<1x512xf32>
    %99 = vector.extract_strided_slice %0 {offsets = [0, 0, 0], sizes = [2, 1, 512], strides = [1, 1, 1]} : vector<2x4x512xf32> to vector<2x1x512xf32>
    %100 = vector.shape_cast %99 : vector<2x1x512xf32> to vector<2x512xf32>
    %101 = vector.broadcast %98 : vector<1x512xf32> to vector<2x512xf32>
    %102 = arith.mulf %101, %100 : vector<2x512xf32>
    %103 = vector.extract_strided_slice %1 {offsets = [3, 1, 0], sizes = [1, 1, 512], strides = [1, 1, 1]} : vector<4x4x512xf32> to vector<1x1x512xf32>
    %104 = vector.shape_cast %103 : vector<1x1x512xf32> to vector<512xf32>
    %105 = vector.shape_cast %104 : vector<512xf32> to vector<1x512xf32>
    %106 = vector.extract_strided_slice %0 {offsets = [0, 1, 0], sizes = [2, 1, 512], strides = [1, 1, 1]} : vector<2x4x512xf32> to vector<2x1x512xf32>
    %107 = vector.shape_cast %106 : vector<2x1x512xf32> to vector<2x512xf32>
    %108 = vector.broadcast %105 : vector<1x512xf32> to vector<2x512xf32>
    %109 = arith.mulf %108, %107 : vector<2x512xf32>
    %110 = arith.addf %102, %109 : vector<2x512xf32>
    %111 = vector.extract_strided_slice %1 {offsets = [3, 2, 0], sizes = [1, 1, 512], strides = [1, 1, 1]} : vector<4x4x512xf32> to vector<1x1x512xf32>
    %112 = vector.shape_cast %111 : vector<1x1x512xf32> to vector<512xf32>
    %113 = vector.shape_cast %112 : vector<512xf32> to vector<1x512xf32>
    %114 = vector.extract_strided_slice %0 {offsets = [0, 2, 0], sizes = [2, 1, 512], strides = [1, 1, 1]} : vector<2x4x512xf32> to vector<2x1x512xf32>
    %115 = vector.shape_cast %114 : vector<2x1x512xf32> to vector<2x512xf32>
    %116 = vector.broadcast %113 : vector<1x512xf32> to vector<2x512xf32>
    %117 = arith.mulf %116, %115 : vector<2x512xf32>
    %118 = arith.addf %110, %117 : vector<2x512xf32>
    %119 = vector.extract_strided_slice %1 {offsets = [3, 3, 0], sizes = [1, 1, 512], strides = [1, 1, 1]} : vector<4x4x512xf32> to vector<1x1x512xf32>
    %120 = vector.shape_cast %119 : vector<1x1x512xf32> to vector<512xf32>
    %121 = vector.shape_cast %120 : vector<512xf32> to vector<1x512xf32>
    %122 = vector.extract_strided_slice %0 {offsets = [0, 3, 0], sizes = [2, 1, 512], strides = [1, 1, 1]} : vector<2x4x512xf32> to vector<2x1x512xf32>
    %123 = vector.shape_cast %122 : vector<2x1x512xf32> to vector<2x512xf32>
    %124 = vector.broadcast %121 : vector<1x512xf32> to vector<2x512xf32>
    %125 = arith.mulf %124, %123 : vector<2x512xf32>
    %126 = arith.addf %118, %125 : vector<2x512xf32>
    %127 = vector.extract_strided_slice %1 {offsets = [0, 0, 0], sizes = [1, 1, 512], strides = [1, 1, 1]} : vector<4x4x512xf32> to vector<1x1x512xf32>
    %128 = vector.shape_cast %127 : vector<1x1x512xf32> to vector<512xf32>
    %129 = vector.extract_strided_slice %2 {offsets = [0, 0, 0], sizes = [1, 1, 512], strides = [1, 1, 1]} : vector<4x4x512xf32> to vector<1x1x512xf32>
    %130 = vector.shape_cast %129 : vector<1x1x512xf32> to vector<512xf32>
    %131 = arith.mulf %128, %130 : vector<512xf32>
    %132 = vector.extract_strided_slice %1 {offsets = [0, 1, 0], sizes = [1, 1, 512], strides = [1, 1, 1]} : vector<4x4x512xf32> to vector<1x1x512xf32>
    %133 = vector.shape_cast %132 : vector<1x1x512xf32> to vector<512xf32>
    %134 = vector.extract_strided_slice %2 {offsets = [1, 0, 0], sizes = [1, 1, 512], strides = [1, 1, 1]} : vector<4x4x512xf32> to vector<1x1x512xf32>
    %135 = vector.shape_cast %134 : vector<1x1x512xf32> to vector<512xf32>
    %136 = arith.mulf %133, %135 : vector<512xf32>
    %137 = arith.addf %131, %136 : vector<512xf32>
    %138 = vector.extract_strided_slice %1 {offsets = [0, 2, 0], sizes = [1, 1, 512], strides = [1, 1, 1]} : vector<4x4x512xf32> to vector<1x1x512xf32>
    %139 = vector.shape_cast %138 : vector<1x1x512xf32> to vector<512xf32>
    %140 = vector.extract_strided_slice %2 {offsets = [2, 0, 0], sizes = [1, 1, 512], strides = [1, 1, 1]} : vector<4x4x512xf32> to vector<1x1x512xf32>
    %141 = vector.shape_cast %140 : vector<1x1x512xf32> to vector<512xf32>
    %142 = arith.mulf %139, %141 : vector<512xf32>
    %143 = arith.addf %137, %142 : vector<512xf32>
    %144 = vector.extract_strided_slice %1 {offsets = [0, 3, 0], sizes = [1, 1, 512], strides = [1, 1, 1]} : vector<4x4x512xf32> to vector<1x1x512xf32>
    %145 = vector.shape_cast %144 : vector<1x1x512xf32> to vector<512xf32>
    %146 = vector.extract_strided_slice %2 {offsets = [3, 0, 0], sizes = [1, 1, 512], strides = [1, 1, 1]} : vector<4x4x512xf32> to vector<1x1x512xf32>
    %147 = vector.shape_cast %146 : vector<1x1x512xf32> to vector<512xf32>
    %148 = arith.mulf %145, %147 : vector<512xf32>
    %149 = arith.addf %143, %148 : vector<512xf32>
    %cst = arith.constant 1.000000e+00 : f32
    %150 = vector.broadcast %cst : f32 to vector<512xf32>
    %151 = arith.subf %150, %149 : vector<512xf32>
    %152 = vector.extract_strided_slice %1 {offsets = [0, 0, 0], sizes = [1, 1, 512], strides = [1, 1, 1]} : vector<4x4x512xf32> to vector<1x1x512xf32>
    %153 = vector.shape_cast %152 : vector<1x1x512xf32> to vector<512xf32>
    %154 = vector.extract_strided_slice %2 {offsets = [0, 1, 0], sizes = [1, 1, 512], strides = [1, 1, 1]} : vector<4x4x512xf32> to vector<1x1x512xf32>
    %155 = vector.shape_cast %154 : vector<1x1x512xf32> to vector<512xf32>
    %156 = arith.mulf %153, %155 : vector<512xf32>
    %157 = vector.extract_strided_slice %1 {offsets = [0, 1, 0], sizes = [1, 1, 512], strides = [1, 1, 1]} : vector<4x4x512xf32> to vector<1x1x512xf32>
    %158 = vector.shape_cast %157 : vector<1x1x512xf32> to vector<512xf32>
    %159 = vector.extract_strided_slice %2 {offsets = [1, 1, 0], sizes = [1, 1, 512], strides = [1, 1, 1]} : vector<4x4x512xf32> to vector<1x1x512xf32>
    %160 = vector.shape_cast %159 : vector<1x1x512xf32> to vector<512xf32>
    %161 = arith.mulf %158, %160 : vector<512xf32>
    %162 = arith.addf %156, %161 : vector<512xf32>
    %163 = vector.extract_strided_slice %1 {offsets = [0, 2, 0], sizes = [1, 1, 512], strides = [1, 1, 1]} : vector<4x4x512xf32> to vector<1x1x512xf32>
    %164 = vector.shape_cast %163 : vector<1x1x512xf32> to vector<512xf32>
    %165 = vector.extract_strided_slice %2 {offsets = [2, 1, 0], sizes = [1, 1, 512], strides = [1, 1, 1]} : vector<4x4x512xf32> to vector<1x1x512xf32>
    %166 = vector.shape_cast %165 : vector<1x1x512xf32> to vector<512xf32>
    %167 = arith.mulf %164, %166 : vector<512xf32>
    %168 = arith.addf %162, %167 : vector<512xf32>
    %169 = vector.extract_strided_slice %1 {offsets = [0, 3, 0], sizes = [1, 1, 512], strides = [1, 1, 1]} : vector<4x4x512xf32> to vector<1x1x512xf32>
    %170 = vector.shape_cast %169 : vector<1x1x512xf32> to vector<512xf32>
    %171 = vector.extract_strided_slice %2 {offsets = [3, 1, 0], sizes = [1, 1, 512], strides = [1, 1, 1]} : vector<4x4x512xf32> to vector<1x1x512xf32>
    %172 = vector.shape_cast %171 : vector<1x1x512xf32> to vector<512xf32>
    %173 = arith.mulf %170, %172 : vector<512xf32>
    %174 = arith.addf %168, %173 : vector<512xf32>
    %cst_8 = arith.constant 0.000000e+00 : f32
    %175 = vector.broadcast %cst_8 : f32 to vector<512xf32>
    %176 = arith.subf %175, %174 : vector<512xf32>
    %177 = vector.extract_strided_slice %1 {offsets = [0, 0, 0], sizes = [1, 1, 512], strides = [1, 1, 1]} : vector<4x4x512xf32> to vector<1x1x512xf32>
    %178 = vector.shape_cast %177 : vector<1x1x512xf32> to vector<512xf32>
    %179 = vector.extract_strided_slice %2 {offsets = [0, 2, 0], sizes = [1, 1, 512], strides = [1, 1, 1]} : vector<4x4x512xf32> to vector<1x1x512xf32>
    %180 = vector.shape_cast %179 : vector<1x1x512xf32> to vector<512xf32>
    %181 = arith.mulf %178, %180 : vector<512xf32>
    %182 = vector.extract_strided_slice %1 {offsets = [0, 1, 0], sizes = [1, 1, 512], strides = [1, 1, 1]} : vector<4x4x512xf32> to vector<1x1x512xf32>
    %183 = vector.shape_cast %182 : vector<1x1x512xf32> to vector<512xf32>
    %184 = vector.extract_strided_slice %2 {offsets = [1, 2, 0], sizes = [1, 1, 512], strides = [1, 1, 1]} : vector<4x4x512xf32> to vector<1x1x512xf32>
    %185 = vector.shape_cast %184 : vector<1x1x512xf32> to vector<512xf32>
    %186 = arith.mulf %183, %185 : vector<512xf32>
    %187 = arith.addf %181, %186 : vector<512xf32>
    %188 = vector.extract_strided_slice %1 {offsets = [0, 2, 0], sizes = [1, 1, 512], strides = [1, 1, 1]} : vector<4x4x512xf32> to vector<1x1x512xf32>
    %189 = vector.shape_cast %188 : vector<1x1x512xf32> to vector<512xf32>
    %190 = vector.extract_strided_slice %2 {offsets = [2, 2, 0], sizes = [1, 1, 512], strides = [1, 1, 1]} : vector<4x4x512xf32> to vector<1x1x512xf32>
    %191 = vector.shape_cast %190 : vector<1x1x512xf32> to vector<512xf32>
    %192 = arith.mulf %189, %191 : vector<512xf32>
    %193 = arith.addf %187, %192 : vector<512xf32>
    %194 = vector.extract_strided_slice %1 {offsets = [0, 3, 0], sizes = [1, 1, 512], strides = [1, 1, 1]} : vector<4x4x512xf32> to vector<1x1x512xf32>
    %195 = vector.shape_cast %194 : vector<1x1x512xf32> to vector<512xf32>
    %196 = vector.extract_strided_slice %2 {offsets = [3, 2, 0], sizes = [1, 1, 512], strides = [1, 1, 1]} : vector<4x4x512xf32> to vector<1x1x512xf32>
    %197 = vector.shape_cast %196 : vector<1x1x512xf32> to vector<512xf32>
    %198 = arith.mulf %195, %197 : vector<512xf32>
    %199 = arith.addf %193, %198 : vector<512xf32>
    %cst_9 = arith.constant 0.000000e+00 : f32
    %200 = vector.broadcast %cst_9 : f32 to vector<512xf32>
    %201 = arith.subf %200, %199 : vector<512xf32>
    %202 = vector.extract_strided_slice %1 {offsets = [0, 0, 0], sizes = [1, 1, 512], strides = [1, 1, 1]} : vector<4x4x512xf32> to vector<1x1x512xf32>
    %203 = vector.shape_cast %202 : vector<1x1x512xf32> to vector<512xf32>
    %204 = vector.extract_strided_slice %2 {offsets = [0, 3, 0], sizes = [1, 1, 512], strides = [1, 1, 1]} : vector<4x4x512xf32> to vector<1x1x512xf32>
    %205 = vector.shape_cast %204 : vector<1x1x512xf32> to vector<512xf32>
    %206 = arith.mulf %203, %205 : vector<512xf32>
    %207 = vector.extract_strided_slice %1 {offsets = [0, 1, 0], sizes = [1, 1, 512], strides = [1, 1, 1]} : vector<4x4x512xf32> to vector<1x1x512xf32>
    %208 = vector.shape_cast %207 : vector<1x1x512xf32> to vector<512xf32>
    %209 = vector.extract_strided_slice %2 {offsets = [1, 3, 0], sizes = [1, 1, 512], strides = [1, 1, 1]} : vector<4x4x512xf32> to vector<1x1x512xf32>
    %210 = vector.shape_cast %209 : vector<1x1x512xf32> to vector<512xf32>
    %211 = arith.mulf %208, %210 : vector<512xf32>
    %212 = arith.addf %206, %211 : vector<512xf32>
    %213 = vector.extract_strided_slice %1 {offsets = [0, 2, 0], sizes = [1, 1, 512], strides = [1, 1, 1]} : vector<4x4x512xf32> to vector<1x1x512xf32>
    %214 = vector.shape_cast %213 : vector<1x1x512xf32> to vector<512xf32>
    %215 = vector.extract_strided_slice %2 {offsets = [2, 3, 0], sizes = [1, 1, 512], strides = [1, 1, 1]} : vector<4x4x512xf32> to vector<1x1x512xf32>
    %216 = vector.shape_cast %215 : vector<1x1x512xf32> to vector<512xf32>
    %217 = arith.mulf %214, %216 : vector<512xf32>
    %218 = arith.addf %212, %217 : vector<512xf32>
    %219 = vector.extract_strided_slice %1 {offsets = [0, 3, 0], sizes = [1, 1, 512], strides = [1, 1, 1]} : vector<4x4x512xf32> to vector<1x1x512xf32>
    %220 = vector.shape_cast %219 : vector<1x1x512xf32> to vector<512xf32>
    %221 = vector.extract_strided_slice %2 {offsets = [3, 3, 0], sizes = [1, 1, 512], strides = [1, 1, 1]} : vector<4x4x512xf32> to vector<1x1x512xf32>
    %222 = vector.shape_cast %221 : vector<1x1x512xf32> to vector<512xf32>
    %223 = arith.mulf %220, %222 : vector<512xf32>
    %224 = arith.addf %218, %223 : vector<512xf32>
    %cst_10 = arith.constant 0.000000e+00 : f32
    %225 = vector.broadcast %cst_10 : f32 to vector<512xf32>
    %226 = arith.subf %225, %224 : vector<512xf32>
    %227 = vector.extract_strided_slice %1 {offsets = [1, 0, 0], sizes = [1, 1, 512], strides = [1, 1, 1]} : vector<4x4x512xf32> to vector<1x1x512xf32>
    %228 = vector.shape_cast %227 : vector<1x1x512xf32> to vector<512xf32>
    %229 = vector.extract_strided_slice %2 {offsets = [0, 0, 0], sizes = [1, 1, 512], strides = [1, 1, 1]} : vector<4x4x512xf32> to vector<1x1x512xf32>
    %230 = vector.shape_cast %229 : vector<1x1x512xf32> to vector<512xf32>
    %231 = arith.mulf %228, %230 : vector<512xf32>
    %232 = vector.extract_strided_slice %1 {offsets = [1, 1, 0], sizes = [1, 1, 512], strides = [1, 1, 1]} : vector<4x4x512xf32> to vector<1x1x512xf32>
    %233 = vector.shape_cast %232 : vector<1x1x512xf32> to vector<512xf32>
    %234 = vector.extract_strided_slice %2 {offsets = [1, 0, 0], sizes = [1, 1, 512], strides = [1, 1, 1]} : vector<4x4x512xf32> to vector<1x1x512xf32>
    %235 = vector.shape_cast %234 : vector<1x1x512xf32> to vector<512xf32>
    %236 = arith.mulf %233, %235 : vector<512xf32>
    %237 = arith.addf %231, %236 : vector<512xf32>
    %238 = vector.extract_strided_slice %1 {offsets = [1, 2, 0], sizes = [1, 1, 512], strides = [1, 1, 1]} : vector<4x4x512xf32> to vector<1x1x512xf32>
    %239 = vector.shape_cast %238 : vector<1x1x512xf32> to vector<512xf32>
    %240 = vector.extract_strided_slice %2 {offsets = [2, 0, 0], sizes = [1, 1, 512], strides = [1, 1, 1]} : vector<4x4x512xf32> to vector<1x1x512xf32>
    %241 = vector.shape_cast %240 : vector<1x1x512xf32> to vector<512xf32>
    %242 = arith.mulf %239, %241 : vector<512xf32>
    %243 = arith.addf %237, %242 : vector<512xf32>
    %244 = vector.extract_strided_slice %1 {offsets = [1, 3, 0], sizes = [1, 1, 512], strides = [1, 1, 1]} : vector<4x4x512xf32> to vector<1x1x512xf32>
    %245 = vector.shape_cast %244 : vector<1x1x512xf32> to vector<512xf32>
    %246 = vector.extract_strided_slice %2 {offsets = [3, 0, 0], sizes = [1, 1, 512], strides = [1, 1, 1]} : vector<4x4x512xf32> to vector<1x1x512xf32>
    %247 = vector.shape_cast %246 : vector<1x1x512xf32> to vector<512xf32>
    %248 = arith.mulf %245, %247 : vector<512xf32>
    %249 = arith.addf %243, %248 : vector<512xf32>
    %cst_11 = arith.constant 0.000000e+00 : f32
    %250 = vector.broadcast %cst_11 : f32 to vector<512xf32>
    %251 = arith.subf %250, %249 : vector<512xf32>
    %252 = vector.extract_strided_slice %1 {offsets = [1, 0, 0], sizes = [1, 1, 512], strides = [1, 1, 1]} : vector<4x4x512xf32> to vector<1x1x512xf32>
    %253 = vector.shape_cast %252 : vector<1x1x512xf32> to vector<512xf32>
    %254 = vector.extract_strided_slice %2 {offsets = [0, 1, 0], sizes = [1, 1, 512], strides = [1, 1, 1]} : vector<4x4x512xf32> to vector<1x1x512xf32>
    %255 = vector.shape_cast %254 : vector<1x1x512xf32> to vector<512xf32>
    %256 = arith.mulf %253, %255 : vector<512xf32>
    %257 = vector.extract_strided_slice %1 {offsets = [1, 1, 0], sizes = [1, 1, 512], strides = [1, 1, 1]} : vector<4x4x512xf32> to vector<1x1x512xf32>
    %258 = vector.shape_cast %257 : vector<1x1x512xf32> to vector<512xf32>
    %259 = vector.extract_strided_slice %2 {offsets = [1, 1, 0], sizes = [1, 1, 512], strides = [1, 1, 1]} : vector<4x4x512xf32> to vector<1x1x512xf32>
    %260 = vector.shape_cast %259 : vector<1x1x512xf32> to vector<512xf32>
    %261 = arith.mulf %258, %260 : vector<512xf32>
    %262 = arith.addf %256, %261 : vector<512xf32>
    %263 = vector.extract_strided_slice %1 {offsets = [1, 2, 0], sizes = [1, 1, 512], strides = [1, 1, 1]} : vector<4x4x512xf32> to vector<1x1x512xf32>
    %264 = vector.shape_cast %263 : vector<1x1x512xf32> to vector<512xf32>
    %265 = vector.extract_strided_slice %2 {offsets = [2, 1, 0], sizes = [1, 1, 512], strides = [1, 1, 1]} : vector<4x4x512xf32> to vector<1x1x512xf32>
    %266 = vector.shape_cast %265 : vector<1x1x512xf32> to vector<512xf32>
    %267 = arith.mulf %264, %266 : vector<512xf32>
    %268 = arith.addf %262, %267 : vector<512xf32>
    %269 = vector.extract_strided_slice %1 {offsets = [1, 3, 0], sizes = [1, 1, 512], strides = [1, 1, 1]} : vector<4x4x512xf32> to vector<1x1x512xf32>
    %270 = vector.shape_cast %269 : vector<1x1x512xf32> to vector<512xf32>
    %271 = vector.extract_strided_slice %2 {offsets = [3, 1, 0], sizes = [1, 1, 512], strides = [1, 1, 1]} : vector<4x4x512xf32> to vector<1x1x512xf32>
    %272 = vector.shape_cast %271 : vector<1x1x512xf32> to vector<512xf32>
    %273 = arith.mulf %270, %272 : vector<512xf32>
    %274 = arith.addf %268, %273 : vector<512xf32>
    %cst_12 = arith.constant 1.000000e+00 : f32
    %275 = vector.broadcast %cst_12 : f32 to vector<512xf32>
    %276 = arith.subf %275, %274 : vector<512xf32>
    %277 = vector.extract_strided_slice %1 {offsets = [1, 0, 0], sizes = [1, 1, 512], strides = [1, 1, 1]} : vector<4x4x512xf32> to vector<1x1x512xf32>
    %278 = vector.shape_cast %277 : vector<1x1x512xf32> to vector<512xf32>
    %279 = vector.extract_strided_slice %2 {offsets = [0, 2, 0], sizes = [1, 1, 512], strides = [1, 1, 1]} : vector<4x4x512xf32> to vector<1x1x512xf32>
    %280 = vector.shape_cast %279 : vector<1x1x512xf32> to vector<512xf32>
    %281 = arith.mulf %278, %280 : vector<512xf32>
    %282 = vector.extract_strided_slice %1 {offsets = [1, 1, 0], sizes = [1, 1, 512], strides = [1, 1, 1]} : vector<4x4x512xf32> to vector<1x1x512xf32>
    %283 = vector.shape_cast %282 : vector<1x1x512xf32> to vector<512xf32>
    %284 = vector.extract_strided_slice %2 {offsets = [1, 2, 0], sizes = [1, 1, 512], strides = [1, 1, 1]} : vector<4x4x512xf32> to vector<1x1x512xf32>
    %285 = vector.shape_cast %284 : vector<1x1x512xf32> to vector<512xf32>
    %286 = arith.mulf %283, %285 : vector<512xf32>
    %287 = arith.addf %281, %286 : vector<512xf32>
    %288 = vector.extract_strided_slice %1 {offsets = [1, 2, 0], sizes = [1, 1, 512], strides = [1, 1, 1]} : vector<4x4x512xf32> to vector<1x1x512xf32>
    %289 = vector.shape_cast %288 : vector<1x1x512xf32> to vector<512xf32>
    %290 = vector.extract_strided_slice %2 {offsets = [2, 2, 0], sizes = [1, 1, 512], strides = [1, 1, 1]} : vector<4x4x512xf32> to vector<1x1x512xf32>
    %291 = vector.shape_cast %290 : vector<1x1x512xf32> to vector<512xf32>
    %292 = arith.mulf %289, %291 : vector<512xf32>
    %293 = arith.addf %287, %292 : vector<512xf32>
    %294 = vector.extract_strided_slice %1 {offsets = [1, 3, 0], sizes = [1, 1, 512], strides = [1, 1, 1]} : vector<4x4x512xf32> to vector<1x1x512xf32>
    %295 = vector.shape_cast %294 : vector<1x1x512xf32> to vector<512xf32>
    %296 = vector.extract_strided_slice %2 {offsets = [3, 2, 0], sizes = [1, 1, 512], strides = [1, 1, 1]} : vector<4x4x512xf32> to vector<1x1x512xf32>
    %297 = vector.shape_cast %296 : vector<1x1x512xf32> to vector<512xf32>
    %298 = arith.mulf %295, %297 : vector<512xf32>
    %299 = arith.addf %293, %298 : vector<512xf32>
    %cst_13 = arith.constant 0.000000e+00 : f32
    %300 = vector.broadcast %cst_13 : f32 to vector<512xf32>
    %301 = arith.subf %300, %299 : vector<512xf32>
    %302 = vector.extract_strided_slice %1 {offsets = [1, 0, 0], sizes = [1, 1, 512], strides = [1, 1, 1]} : vector<4x4x512xf32> to vector<1x1x512xf32>
    %303 = vector.shape_cast %302 : vector<1x1x512xf32> to vector<512xf32>
    %304 = vector.extract_strided_slice %2 {offsets = [0, 3, 0], sizes = [1, 1, 512], strides = [1, 1, 1]} : vector<4x4x512xf32> to vector<1x1x512xf32>
    %305 = vector.shape_cast %304 : vector<1x1x512xf32> to vector<512xf32>
    %306 = arith.mulf %303, %305 : vector<512xf32>
    %307 = vector.extract_strided_slice %1 {offsets = [1, 1, 0], sizes = [1, 1, 512], strides = [1, 1, 1]} : vector<4x4x512xf32> to vector<1x1x512xf32>
    %308 = vector.shape_cast %307 : vector<1x1x512xf32> to vector<512xf32>
    %309 = vector.extract_strided_slice %2 {offsets = [1, 3, 0], sizes = [1, 1, 512], strides = [1, 1, 1]} : vector<4x4x512xf32> to vector<1x1x512xf32>
    %310 = vector.shape_cast %309 : vector<1x1x512xf32> to vector<512xf32>
    %311 = arith.mulf %308, %310 : vector<512xf32>
    %312 = arith.addf %306, %311 : vector<512xf32>
    %313 = vector.extract_strided_slice %1 {offsets = [1, 2, 0], sizes = [1, 1, 512], strides = [1, 1, 1]} : vector<4x4x512xf32> to vector<1x1x512xf32>
    %314 = vector.shape_cast %313 : vector<1x1x512xf32> to vector<512xf32>
    %315 = vector.extract_strided_slice %2 {offsets = [2, 3, 0], sizes = [1, 1, 512], strides = [1, 1, 1]} : vector<4x4x512xf32> to vector<1x1x512xf32>
    %316 = vector.shape_cast %315 : vector<1x1x512xf32> to vector<512xf32>
    %317 = arith.mulf %314, %316 : vector<512xf32>
    %318 = arith.addf %312, %317 : vector<512xf32>
    %319 = vector.extract_strided_slice %1 {offsets = [1, 3, 0], sizes = [1, 1, 512], strides = [1, 1, 1]} : vector<4x4x512xf32> to vector<1x1x512xf32>
    %320 = vector.shape_cast %319 : vector<1x1x512xf32> to vector<512xf32>
    %321 = vector.extract_strided_slice %2 {offsets = [3, 3, 0], sizes = [1, 1, 512], strides = [1, 1, 1]} : vector<4x4x512xf32> to vector<1x1x512xf32>
    %322 = vector.shape_cast %321 : vector<1x1x512xf32> to vector<512xf32>
    %323 = arith.mulf %320, %322 : vector<512xf32>
    %324 = arith.addf %318, %323 : vector<512xf32>
    %cst_14 = arith.constant 0.000000e+00 : f32
    %325 = vector.broadcast %cst_14 : f32 to vector<512xf32>
    %326 = arith.subf %325, %324 : vector<512xf32>
    %327 = vector.extract_strided_slice %1 {offsets = [2, 0, 0], sizes = [1, 1, 512], strides = [1, 1, 1]} : vector<4x4x512xf32> to vector<1x1x512xf32>
    %328 = vector.shape_cast %327 : vector<1x1x512xf32> to vector<512xf32>
    %329 = vector.extract_strided_slice %2 {offsets = [0, 0, 0], sizes = [1, 1, 512], strides = [1, 1, 1]} : vector<4x4x512xf32> to vector<1x1x512xf32>
    %330 = vector.shape_cast %329 : vector<1x1x512xf32> to vector<512xf32>
    %331 = arith.mulf %328, %330 : vector<512xf32>
    %332 = vector.extract_strided_slice %1 {offsets = [2, 1, 0], sizes = [1, 1, 512], strides = [1, 1, 1]} : vector<4x4x512xf32> to vector<1x1x512xf32>
    %333 = vector.shape_cast %332 : vector<1x1x512xf32> to vector<512xf32>
    %334 = vector.extract_strided_slice %2 {offsets = [1, 0, 0], sizes = [1, 1, 512], strides = [1, 1, 1]} : vector<4x4x512xf32> to vector<1x1x512xf32>
    %335 = vector.shape_cast %334 : vector<1x1x512xf32> to vector<512xf32>
    %336 = arith.mulf %333, %335 : vector<512xf32>
    %337 = arith.addf %331, %336 : vector<512xf32>
    %338 = vector.extract_strided_slice %1 {offsets = [2, 2, 0], sizes = [1, 1, 512], strides = [1, 1, 1]} : vector<4x4x512xf32> to vector<1x1x512xf32>
    %339 = vector.shape_cast %338 : vector<1x1x512xf32> to vector<512xf32>
    %340 = vector.extract_strided_slice %2 {offsets = [2, 0, 0], sizes = [1, 1, 512], strides = [1, 1, 1]} : vector<4x4x512xf32> to vector<1x1x512xf32>
    %341 = vector.shape_cast %340 : vector<1x1x512xf32> to vector<512xf32>
    %342 = arith.mulf %339, %341 : vector<512xf32>
    %343 = arith.addf %337, %342 : vector<512xf32>
    %344 = vector.extract_strided_slice %1 {offsets = [2, 3, 0], sizes = [1, 1, 512], strides = [1, 1, 1]} : vector<4x4x512xf32> to vector<1x1x512xf32>
    %345 = vector.shape_cast %344 : vector<1x1x512xf32> to vector<512xf32>
    %346 = vector.extract_strided_slice %2 {offsets = [3, 0, 0], sizes = [1, 1, 512], strides = [1, 1, 1]} : vector<4x4x512xf32> to vector<1x1x512xf32>
    %347 = vector.shape_cast %346 : vector<1x1x512xf32> to vector<512xf32>
    %348 = arith.mulf %345, %347 : vector<512xf32>
    %349 = arith.addf %343, %348 : vector<512xf32>
    %cst_15 = arith.constant 0.000000e+00 : f32
    %350 = vector.broadcast %cst_15 : f32 to vector<512xf32>
    %351 = arith.subf %350, %349 : vector<512xf32>
    %352 = vector.extract_strided_slice %1 {offsets = [2, 0, 0], sizes = [1, 1, 512], strides = [1, 1, 1]} : vector<4x4x512xf32> to vector<1x1x512xf32>
    %353 = vector.shape_cast %352 : vector<1x1x512xf32> to vector<512xf32>
    %354 = vector.extract_strided_slice %2 {offsets = [0, 1, 0], sizes = [1, 1, 512], strides = [1, 1, 1]} : vector<4x4x512xf32> to vector<1x1x512xf32>
    %355 = vector.shape_cast %354 : vector<1x1x512xf32> to vector<512xf32>
    %356 = arith.mulf %353, %355 : vector<512xf32>
    %357 = vector.extract_strided_slice %1 {offsets = [2, 1, 0], sizes = [1, 1, 512], strides = [1, 1, 1]} : vector<4x4x512xf32> to vector<1x1x512xf32>
    %358 = vector.shape_cast %357 : vector<1x1x512xf32> to vector<512xf32>
    %359 = vector.extract_strided_slice %2 {offsets = [1, 1, 0], sizes = [1, 1, 512], strides = [1, 1, 1]} : vector<4x4x512xf32> to vector<1x1x512xf32>
    %360 = vector.shape_cast %359 : vector<1x1x512xf32> to vector<512xf32>
    %361 = arith.mulf %358, %360 : vector<512xf32>
    %362 = arith.addf %356, %361 : vector<512xf32>
    %363 = vector.extract_strided_slice %1 {offsets = [2, 2, 0], sizes = [1, 1, 512], strides = [1, 1, 1]} : vector<4x4x512xf32> to vector<1x1x512xf32>
    %364 = vector.shape_cast %363 : vector<1x1x512xf32> to vector<512xf32>
    %365 = vector.extract_strided_slice %2 {offsets = [2, 1, 0], sizes = [1, 1, 512], strides = [1, 1, 1]} : vector<4x4x512xf32> to vector<1x1x512xf32>
    %366 = vector.shape_cast %365 : vector<1x1x512xf32> to vector<512xf32>
    %367 = arith.mulf %364, %366 : vector<512xf32>
    %368 = arith.addf %362, %367 : vector<512xf32>
    %369 = vector.extract_strided_slice %1 {offsets = [2, 3, 0], sizes = [1, 1, 512], strides = [1, 1, 1]} : vector<4x4x512xf32> to vector<1x1x512xf32>
    %370 = vector.shape_cast %369 : vector<1x1x512xf32> to vector<512xf32>
    %371 = vector.extract_strided_slice %2 {offsets = [3, 1, 0], sizes = [1, 1, 512], strides = [1, 1, 1]} : vector<4x4x512xf32> to vector<1x1x512xf32>
    %372 = vector.shape_cast %371 : vector<1x1x512xf32> to vector<512xf32>
    %373 = arith.mulf %370, %372 : vector<512xf32>
    %374 = arith.addf %368, %373 : vector<512xf32>
    %cst_16 = arith.constant 0.000000e+00 : f32
    %375 = vector.broadcast %cst_16 : f32 to vector<512xf32>
    %376 = arith.subf %375, %374 : vector<512xf32>
    %377 = vector.extract_strided_slice %1 {offsets = [2, 0, 0], sizes = [1, 1, 512], strides = [1, 1, 1]} : vector<4x4x512xf32> to vector<1x1x512xf32>
    %378 = vector.shape_cast %377 : vector<1x1x512xf32> to vector<512xf32>
    %379 = vector.extract_strided_slice %2 {offsets = [0, 2, 0], sizes = [1, 1, 512], strides = [1, 1, 1]} : vector<4x4x512xf32> to vector<1x1x512xf32>
    %380 = vector.shape_cast %379 : vector<1x1x512xf32> to vector<512xf32>
    %381 = arith.mulf %378, %380 : vector<512xf32>
    %382 = vector.extract_strided_slice %1 {offsets = [2, 1, 0], sizes = [1, 1, 512], strides = [1, 1, 1]} : vector<4x4x512xf32> to vector<1x1x512xf32>
    %383 = vector.shape_cast %382 : vector<1x1x512xf32> to vector<512xf32>
    %384 = vector.extract_strided_slice %2 {offsets = [1, 2, 0], sizes = [1, 1, 512], strides = [1, 1, 1]} : vector<4x4x512xf32> to vector<1x1x512xf32>
    %385 = vector.shape_cast %384 : vector<1x1x512xf32> to vector<512xf32>
    %386 = arith.mulf %383, %385 : vector<512xf32>
    %387 = arith.addf %381, %386 : vector<512xf32>
    %388 = vector.extract_strided_slice %1 {offsets = [2, 2, 0], sizes = [1, 1, 512], strides = [1, 1, 1]} : vector<4x4x512xf32> to vector<1x1x512xf32>
    %389 = vector.shape_cast %388 : vector<1x1x512xf32> to vector<512xf32>
    %390 = vector.extract_strided_slice %2 {offsets = [2, 2, 0], sizes = [1, 1, 512], strides = [1, 1, 1]} : vector<4x4x512xf32> to vector<1x1x512xf32>
    %391 = vector.shape_cast %390 : vector<1x1x512xf32> to vector<512xf32>
    %392 = arith.mulf %389, %391 : vector<512xf32>
    %393 = arith.addf %387, %392 : vector<512xf32>
    %394 = vector.extract_strided_slice %1 {offsets = [2, 3, 0], sizes = [1, 1, 512], strides = [1, 1, 1]} : vector<4x4x512xf32> to vector<1x1x512xf32>
    %395 = vector.shape_cast %394 : vector<1x1x512xf32> to vector<512xf32>
    %396 = vector.extract_strided_slice %2 {offsets = [3, 2, 0], sizes = [1, 1, 512], strides = [1, 1, 1]} : vector<4x4x512xf32> to vector<1x1x512xf32>
    %397 = vector.shape_cast %396 : vector<1x1x512xf32> to vector<512xf32>
    %398 = arith.mulf %395, %397 : vector<512xf32>
    %399 = arith.addf %393, %398 : vector<512xf32>
    %cst_17 = arith.constant 1.000000e+00 : f32
    %400 = vector.broadcast %cst_17 : f32 to vector<512xf32>
    %401 = arith.subf %400, %399 : vector<512xf32>
    %402 = vector.extract_strided_slice %1 {offsets = [2, 0, 0], sizes = [1, 1, 512], strides = [1, 1, 1]} : vector<4x4x512xf32> to vector<1x1x512xf32>
    %403 = vector.shape_cast %402 : vector<1x1x512xf32> to vector<512xf32>
    %404 = vector.extract_strided_slice %2 {offsets = [0, 3, 0], sizes = [1, 1, 512], strides = [1, 1, 1]} : vector<4x4x512xf32> to vector<1x1x512xf32>
    %405 = vector.shape_cast %404 : vector<1x1x512xf32> to vector<512xf32>
    %406 = arith.mulf %403, %405 : vector<512xf32>
    %407 = vector.extract_strided_slice %1 {offsets = [2, 1, 0], sizes = [1, 1, 512], strides = [1, 1, 1]} : vector<4x4x512xf32> to vector<1x1x512xf32>
    %408 = vector.shape_cast %407 : vector<1x1x512xf32> to vector<512xf32>
    %409 = vector.extract_strided_slice %2 {offsets = [1, 3, 0], sizes = [1, 1, 512], strides = [1, 1, 1]} : vector<4x4x512xf32> to vector<1x1x512xf32>
    %410 = vector.shape_cast %409 : vector<1x1x512xf32> to vector<512xf32>
    %411 = arith.mulf %408, %410 : vector<512xf32>
    %412 = arith.addf %406, %411 : vector<512xf32>
    %413 = vector.extract_strided_slice %1 {offsets = [2, 2, 0], sizes = [1, 1, 512], strides = [1, 1, 1]} : vector<4x4x512xf32> to vector<1x1x512xf32>
    %414 = vector.shape_cast %413 : vector<1x1x512xf32> to vector<512xf32>
    %415 = vector.extract_strided_slice %2 {offsets = [2, 3, 0], sizes = [1, 1, 512], strides = [1, 1, 1]} : vector<4x4x512xf32> to vector<1x1x512xf32>
    %416 = vector.shape_cast %415 : vector<1x1x512xf32> to vector<512xf32>
    %417 = arith.mulf %414, %416 : vector<512xf32>
    %418 = arith.addf %412, %417 : vector<512xf32>
    %419 = vector.extract_strided_slice %1 {offsets = [2, 3, 0], sizes = [1, 1, 512], strides = [1, 1, 1]} : vector<4x4x512xf32> to vector<1x1x512xf32>
    %420 = vector.shape_cast %419 : vector<1x1x512xf32> to vector<512xf32>
    %421 = vector.extract_strided_slice %2 {offsets = [3, 3, 0], sizes = [1, 1, 512], strides = [1, 1, 1]} : vector<4x4x512xf32> to vector<1x1x512xf32>
    %422 = vector.shape_cast %421 : vector<1x1x512xf32> to vector<512xf32>
    %423 = arith.mulf %420, %422 : vector<512xf32>
    %424 = arith.addf %418, %423 : vector<512xf32>
    %cst_18 = arith.constant 0.000000e+00 : f32
    %425 = vector.broadcast %cst_18 : f32 to vector<512xf32>
    %426 = arith.subf %425, %424 : vector<512xf32>
    %427 = vector.extract_strided_slice %1 {offsets = [3, 0, 0], sizes = [1, 1, 512], strides = [1, 1, 1]} : vector<4x4x512xf32> to vector<1x1x512xf32>
    %428 = vector.shape_cast %427 : vector<1x1x512xf32> to vector<512xf32>
    %429 = vector.extract_strided_slice %2 {offsets = [0, 0, 0], sizes = [1, 1, 512], strides = [1, 1, 1]} : vector<4x4x512xf32> to vector<1x1x512xf32>
    %430 = vector.shape_cast %429 : vector<1x1x512xf32> to vector<512xf32>
    %431 = arith.mulf %428, %430 : vector<512xf32>
    %432 = vector.extract_strided_slice %1 {offsets = [3, 1, 0], sizes = [1, 1, 512], strides = [1, 1, 1]} : vector<4x4x512xf32> to vector<1x1x512xf32>
    %433 = vector.shape_cast %432 : vector<1x1x512xf32> to vector<512xf32>
    %434 = vector.extract_strided_slice %2 {offsets = [1, 0, 0], sizes = [1, 1, 512], strides = [1, 1, 1]} : vector<4x4x512xf32> to vector<1x1x512xf32>
    %435 = vector.shape_cast %434 : vector<1x1x512xf32> to vector<512xf32>
    %436 = arith.mulf %433, %435 : vector<512xf32>
    %437 = arith.addf %431, %436 : vector<512xf32>
    %438 = vector.extract_strided_slice %1 {offsets = [3, 2, 0], sizes = [1, 1, 512], strides = [1, 1, 1]} : vector<4x4x512xf32> to vector<1x1x512xf32>
    %439 = vector.shape_cast %438 : vector<1x1x512xf32> to vector<512xf32>
    %440 = vector.extract_strided_slice %2 {offsets = [2, 0, 0], sizes = [1, 1, 512], strides = [1, 1, 1]} : vector<4x4x512xf32> to vector<1x1x512xf32>
    %441 = vector.shape_cast %440 : vector<1x1x512xf32> to vector<512xf32>
    %442 = arith.mulf %439, %441 : vector<512xf32>
    %443 = arith.addf %437, %442 : vector<512xf32>
    %444 = vector.extract_strided_slice %1 {offsets = [3, 3, 0], sizes = [1, 1, 512], strides = [1, 1, 1]} : vector<4x4x512xf32> to vector<1x1x512xf32>
    %445 = vector.shape_cast %444 : vector<1x1x512xf32> to vector<512xf32>
    %446 = vector.extract_strided_slice %2 {offsets = [3, 0, 0], sizes = [1, 1, 512], strides = [1, 1, 1]} : vector<4x4x512xf32> to vector<1x1x512xf32>
    %447 = vector.shape_cast %446 : vector<1x1x512xf32> to vector<512xf32>
    %448 = arith.mulf %445, %447 : vector<512xf32>
    %449 = arith.addf %443, %448 : vector<512xf32>
    %cst_19 = arith.constant 0.000000e+00 : f32
    %450 = vector.broadcast %cst_19 : f32 to vector<512xf32>
    %451 = arith.subf %450, %449 : vector<512xf32>
    %452 = vector.extract_strided_slice %1 {offsets = [3, 0, 0], sizes = [1, 1, 512], strides = [1, 1, 1]} : vector<4x4x512xf32> to vector<1x1x512xf32>
    %453 = vector.shape_cast %452 : vector<1x1x512xf32> to vector<512xf32>
    %454 = vector.extract_strided_slice %2 {offsets = [0, 1, 0], sizes = [1, 1, 512], strides = [1, 1, 1]} : vector<4x4x512xf32> to vector<1x1x512xf32>
    %455 = vector.shape_cast %454 : vector<1x1x512xf32> to vector<512xf32>
    %456 = arith.mulf %453, %455 : vector<512xf32>
    %457 = vector.extract_strided_slice %1 {offsets = [3, 1, 0], sizes = [1, 1, 512], strides = [1, 1, 1]} : vector<4x4x512xf32> to vector<1x1x512xf32>
    %458 = vector.shape_cast %457 : vector<1x1x512xf32> to vector<512xf32>
    %459 = vector.extract_strided_slice %2 {offsets = [1, 1, 0], sizes = [1, 1, 512], strides = [1, 1, 1]} : vector<4x4x512xf32> to vector<1x1x512xf32>
    %460 = vector.shape_cast %459 : vector<1x1x512xf32> to vector<512xf32>
    %461 = arith.mulf %458, %460 : vector<512xf32>
    %462 = arith.addf %456, %461 : vector<512xf32>
    %463 = vector.extract_strided_slice %1 {offsets = [3, 2, 0], sizes = [1, 1, 512], strides = [1, 1, 1]} : vector<4x4x512xf32> to vector<1x1x512xf32>
    %464 = vector.shape_cast %463 : vector<1x1x512xf32> to vector<512xf32>
    %465 = vector.extract_strided_slice %2 {offsets = [2, 1, 0], sizes = [1, 1, 512], strides = [1, 1, 1]} : vector<4x4x512xf32> to vector<1x1x512xf32>
    %466 = vector.shape_cast %465 : vector<1x1x512xf32> to vector<512xf32>
    %467 = arith.mulf %464, %466 : vector<512xf32>
    %468 = arith.addf %462, %467 : vector<512xf32>
    %469 = vector.extract_strided_slice %1 {offsets = [3, 3, 0], sizes = [1, 1, 512], strides = [1, 1, 1]} : vector<4x4x512xf32> to vector<1x1x512xf32>
    %470 = vector.shape_cast %469 : vector<1x1x512xf32> to vector<512xf32>
    %471 = vector.extract_strided_slice %2 {offsets = [3, 1, 0], sizes = [1, 1, 512], strides = [1, 1, 1]} : vector<4x4x512xf32> to vector<1x1x512xf32>
    %472 = vector.shape_cast %471 : vector<1x1x512xf32> to vector<512xf32>
    %473 = arith.mulf %470, %472 : vector<512xf32>
    %474 = arith.addf %468, %473 : vector<512xf32>
    %cst_20 = arith.constant 0.000000e+00 : f32
    %475 = vector.broadcast %cst_20 : f32 to vector<512xf32>
    %476 = arith.subf %475, %474 : vector<512xf32>
    %477 = vector.extract_strided_slice %1 {offsets = [3, 0, 0], sizes = [1, 1, 512], strides = [1, 1, 1]} : vector<4x4x512xf32> to vector<1x1x512xf32>
    %478 = vector.shape_cast %477 : vector<1x1x512xf32> to vector<512xf32>
    %479 = vector.extract_strided_slice %2 {offsets = [0, 2, 0], sizes = [1, 1, 512], strides = [1, 1, 1]} : vector<4x4x512xf32> to vector<1x1x512xf32>
    %480 = vector.shape_cast %479 : vector<1x1x512xf32> to vector<512xf32>
    %481 = arith.mulf %478, %480 : vector<512xf32>
    %482 = vector.extract_strided_slice %1 {offsets = [3, 1, 0], sizes = [1, 1, 512], strides = [1, 1, 1]} : vector<4x4x512xf32> to vector<1x1x512xf32>
    %483 = vector.shape_cast %482 : vector<1x1x512xf32> to vector<512xf32>
    %484 = vector.extract_strided_slice %2 {offsets = [1, 2, 0], sizes = [1, 1, 512], strides = [1, 1, 1]} : vector<4x4x512xf32> to vector<1x1x512xf32>
    %485 = vector.shape_cast %484 : vector<1x1x512xf32> to vector<512xf32>
    %486 = arith.mulf %483, %485 : vector<512xf32>
    %487 = arith.addf %481, %486 : vector<512xf32>
    %488 = vector.extract_strided_slice %1 {offsets = [3, 2, 0], sizes = [1, 1, 512], strides = [1, 1, 1]} : vector<4x4x512xf32> to vector<1x1x512xf32>
    %489 = vector.shape_cast %488 : vector<1x1x512xf32> to vector<512xf32>
    %490 = vector.extract_strided_slice %2 {offsets = [2, 2, 0], sizes = [1, 1, 512], strides = [1, 1, 1]} : vector<4x4x512xf32> to vector<1x1x512xf32>
    %491 = vector.shape_cast %490 : vector<1x1x512xf32> to vector<512xf32>
    %492 = arith.mulf %489, %491 : vector<512xf32>
    %493 = arith.addf %487, %492 : vector<512xf32>
    %494 = vector.extract_strided_slice %1 {offsets = [3, 3, 0], sizes = [1, 1, 512], strides = [1, 1, 1]} : vector<4x4x512xf32> to vector<1x1x512xf32>
    %495 = vector.shape_cast %494 : vector<1x1x512xf32> to vector<512xf32>
    %496 = vector.extract_strided_slice %2 {offsets = [3, 2, 0], sizes = [1, 1, 512], strides = [1, 1, 1]} : vector<4x4x512xf32> to vector<1x1x512xf32>
    %497 = vector.shape_cast %496 : vector<1x1x512xf32> to vector<512xf32>
    %498 = arith.mulf %495, %497 : vector<512xf32>
    %499 = arith.addf %493, %498 : vector<512xf32>
    %cst_21 = arith.constant 0.000000e+00 : f32
    %500 = vector.broadcast %cst_21 : f32 to vector<512xf32>
    %501 = arith.subf %500, %499 : vector<512xf32>
    %502 = vector.extract_strided_slice %1 {offsets = [3, 0, 0], sizes = [1, 1, 512], strides = [1, 1, 1]} : vector<4x4x512xf32> to vector<1x1x512xf32>
    %503 = vector.shape_cast %502 : vector<1x1x512xf32> to vector<512xf32>
    %504 = vector.extract_strided_slice %2 {offsets = [0, 3, 0], sizes = [1, 1, 512], strides = [1, 1, 1]} : vector<4x4x512xf32> to vector<1x1x512xf32>
    %505 = vector.shape_cast %504 : vector<1x1x512xf32> to vector<512xf32>
    %506 = arith.mulf %503, %505 : vector<512xf32>
    %507 = vector.extract_strided_slice %1 {offsets = [3, 1, 0], sizes = [1, 1, 512], strides = [1, 1, 1]} : vector<4x4x512xf32> to vector<1x1x512xf32>
    %508 = vector.shape_cast %507 : vector<1x1x512xf32> to vector<512xf32>
    %509 = vector.extract_strided_slice %2 {offsets = [1, 3, 0], sizes = [1, 1, 512], strides = [1, 1, 1]} : vector<4x4x512xf32> to vector<1x1x512xf32>
    %510 = vector.shape_cast %509 : vector<1x1x512xf32> to vector<512xf32>
    %511 = arith.mulf %508, %510 : vector<512xf32>
    %512 = arith.addf %506, %511 : vector<512xf32>
    %513 = vector.extract_strided_slice %1 {offsets = [3, 2, 0], sizes = [1, 1, 512], strides = [1, 1, 1]} : vector<4x4x512xf32> to vector<1x1x512xf32>
    %514 = vector.shape_cast %513 : vector<1x1x512xf32> to vector<512xf32>
    %515 = vector.extract_strided_slice %2 {offsets = [2, 3, 0], sizes = [1, 1, 512], strides = [1, 1, 1]} : vector<4x4x512xf32> to vector<1x1x512xf32>
    %516 = vector.shape_cast %515 : vector<1x1x512xf32> to vector<512xf32>
    %517 = arith.mulf %514, %516 : vector<512xf32>
    %518 = arith.addf %512, %517 : vector<512xf32>
    %519 = vector.extract_strided_slice %1 {offsets = [3, 3, 0], sizes = [1, 1, 512], strides = [1, 1, 1]} : vector<4x4x512xf32> to vector<1x1x512xf32>
    %520 = vector.shape_cast %519 : vector<1x1x512xf32> to vector<512xf32>
    %521 = vector.extract_strided_slice %2 {offsets = [3, 3, 0], sizes = [1, 1, 512], strides = [1, 1, 1]} : vector<4x4x512xf32> to vector<1x1x512xf32>
    %522 = vector.shape_cast %521 : vector<1x1x512xf32> to vector<512xf32>
    %523 = arith.mulf %520, %522 : vector<512xf32>
    %524 = arith.addf %518, %523 : vector<512xf32>
    %cst_22 = arith.constant 1.000000e+00 : f32
    %525 = vector.broadcast %cst_22 : f32 to vector<512xf32>
    %526 = arith.subf %525, %524 : vector<512xf32>
    %527 = tpu.reciprocal %151 : vector<512xf32> -> vector<512xf32>
    %528 = arith.mulf %176, %527 : vector<512xf32>
    %529 = arith.mulf %201, %527 : vector<512xf32>
    %530 = arith.mulf %226, %527 : vector<512xf32>
    %531 = vector.shape_cast %527 : vector<512xf32> to vector<1x512xf32>
    %532 = vector.broadcast %531 : vector<1x512xf32> to vector<2x512xf32>
    %533 = arith.mulf %33, %532 : vector<2x512xf32>
    %534 = arith.mulf %251, %528 : vector<512xf32>
    %535 = arith.subf %276, %534 : vector<512xf32>
    %536 = arith.mulf %251, %529 : vector<512xf32>
    %537 = arith.subf %301, %536 : vector<512xf32>
    %538 = arith.mulf %251, %530 : vector<512xf32>
    %539 = arith.subf %326, %538 : vector<512xf32>
    %540 = vector.shape_cast %251 : vector<512xf32> to vector<1x512xf32>
    %541 = vector.broadcast %540 : vector<1x512xf32> to vector<2x512xf32>
    %542 = arith.mulf %541, %533 : vector<2x512xf32>
    %543 = arith.subf %64, %542 : vector<2x512xf32>
    %544 = arith.mulf %351, %528 : vector<512xf32>
    %545 = arith.subf %376, %544 : vector<512xf32>
    %546 = arith.mulf %351, %529 : vector<512xf32>
    %547 = arith.subf %401, %546 : vector<512xf32>
    %548 = arith.mulf %351, %530 : vector<512xf32>
    %549 = arith.subf %426, %548 : vector<512xf32>
    %550 = vector.shape_cast %351 : vector<512xf32> to vector<1x512xf32>
    %551 = vector.broadcast %550 : vector<1x512xf32> to vector<2x512xf32>
    %552 = arith.mulf %551, %533 : vector<2x512xf32>
    %553 = arith.subf %95, %552 : vector<2x512xf32>
    %554 = arith.mulf %451, %528 : vector<512xf32>
    %555 = arith.subf %476, %554 : vector<512xf32>
    %556 = arith.mulf %451, %529 : vector<512xf32>
    %557 = arith.subf %501, %556 : vector<512xf32>
    %558 = arith.mulf %451, %530 : vector<512xf32>
    %559 = arith.subf %526, %558 : vector<512xf32>
    %560 = vector.shape_cast %451 : vector<512xf32> to vector<1x512xf32>
    %561 = vector.broadcast %560 : vector<1x512xf32> to vector<2x512xf32>
    %562 = arith.mulf %561, %533 : vector<2x512xf32>
    %563 = arith.subf %126, %562 : vector<2x512xf32>
    %564 = tpu.reciprocal %535 : vector<512xf32> -> vector<512xf32>
    %565 = arith.mulf %537, %564 : vector<512xf32>
    %566 = arith.mulf %539, %564 : vector<512xf32>
    %567 = vector.shape_cast %564 : vector<512xf32> to vector<1x512xf32>
    %568 = vector.broadcast %567 : vector<1x512xf32> to vector<2x512xf32>
    %569 = arith.mulf %543, %568 : vector<2x512xf32>
    %570 = arith.mulf %528, %565 : vector<512xf32>
    %571 = arith.subf %529, %570 : vector<512xf32>
    %572 = arith.mulf %528, %566 : vector<512xf32>
    %573 = arith.subf %530, %572 : vector<512xf32>
    %574 = vector.shape_cast %528 : vector<512xf32> to vector<1x512xf32>
    %575 = vector.broadcast %574 : vector<1x512xf32> to vector<2x512xf32>
    %576 = arith.mulf %575, %569 : vector<2x512xf32>
    %577 = arith.subf %533, %576 : vector<2x512xf32>
    %578 = arith.mulf %545, %565 : vector<512xf32>
    %579 = arith.subf %547, %578 : vector<512xf32>
    %580 = arith.mulf %545, %566 : vector<512xf32>
    %581 = arith.subf %549, %580 : vector<512xf32>
    %582 = vector.shape_cast %545 : vector<512xf32> to vector<1x512xf32>
    %583 = vector.broadcast %582 : vector<1x512xf32> to vector<2x512xf32>
    %584 = arith.mulf %583, %569 : vector<2x512xf32>
    %585 = arith.subf %553, %584 : vector<2x512xf32>
    %586 = arith.mulf %555, %565 : vector<512xf32>
    %587 = arith.subf %557, %586 : vector<512xf32>
    %588 = arith.mulf %555, %566 : vector<512xf32>
    %589 = arith.subf %559, %588 : vector<512xf32>
    %590 = vector.shape_cast %555 : vector<512xf32> to vector<1x512xf32>
    %591 = vector.broadcast %590 : vector<1x512xf32> to vector<2x512xf32>
    %592 = arith.mulf %591, %569 : vector<2x512xf32>
    %593 = arith.subf %563, %592 : vector<2x512xf32>
    %594 = tpu.reciprocal %579 : vector<512xf32> -> vector<512xf32>
    %595 = arith.mulf %581, %594 : vector<512xf32>
    %596 = vector.shape_cast %594 : vector<512xf32> to vector<1x512xf32>
    %597 = vector.broadcast %596 : vector<1x512xf32> to vector<2x512xf32>
    %598 = arith.mulf %585, %597 : vector<2x512xf32>
    %599 = arith.mulf %571, %595 : vector<512xf32>
    %600 = arith.subf %573, %599 : vector<512xf32>
    %601 = vector.shape_cast %571 : vector<512xf32> to vector<1x512xf32>
    %602 = vector.broadcast %601 : vector<1x512xf32> to vector<2x512xf32>
    %603 = arith.mulf %602, %598 : vector<2x512xf32>
    %604 = arith.subf %577, %603 : vector<2x512xf32>
    %605 = arith.mulf %565, %595 : vector<512xf32>
    %606 = arith.subf %566, %605 : vector<512xf32>
    %607 = vector.shape_cast %565 : vector<512xf32> to vector<1x512xf32>
    %608 = vector.broadcast %607 : vector<1x512xf32> to vector<2x512xf32>
    %609 = arith.mulf %608, %598 : vector<2x512xf32>
    %610 = arith.subf %569, %609 : vector<2x512xf32>
    %611 = arith.mulf %587, %595 : vector<512xf32>
    %612 = arith.subf %589, %611 : vector<512xf32>
    %613 = vector.shape_cast %587 : vector<512xf32> to vector<1x512xf32>
    %614 = vector.broadcast %613 : vector<1x512xf32> to vector<2x512xf32>
    %615 = arith.mulf %614, %598 : vector<2x512xf32>
    %616 = arith.subf %593, %615 : vector<2x512xf32>
    %617 = tpu.reciprocal %612 : vector<512xf32> -> vector<512xf32>
    %618 = vector.shape_cast %617 : vector<512xf32> to vector<1x512xf32>
    %619 = vector.broadcast %618 : vector<1x512xf32> to vector<2x512xf32>
    %620 = arith.mulf %616, %619 : vector<2x512xf32>
    %621 = vector.shape_cast %600 : vector<512xf32> to vector<1x512xf32>
    %622 = vector.broadcast %621 : vector<1x512xf32> to vector<2x512xf32>
    %623 = arith.mulf %622, %620 : vector<2x512xf32>
    %624 = arith.subf %604, %623 : vector<2x512xf32>
    %625 = vector.shape_cast %606 : vector<512xf32> to vector<1x512xf32>
    %626 = vector.broadcast %625 : vector<1x512xf32> to vector<2x512xf32>
    %627 = arith.mulf %626, %620 : vector<2x512xf32>
    %628 = arith.subf %610, %627 : vector<2x512xf32>
    %629 = vector.shape_cast %595 : vector<512xf32> to vector<1x512xf32>
    %630 = vector.broadcast %629 : vector<1x512xf32> to vector<2x512xf32>
    %631 = arith.mulf %630, %620 : vector<2x512xf32>
    %632 = arith.subf %598, %631 : vector<2x512xf32>
    %633 = vector.shape_cast %624 : vector<2x512xf32> to vector<2x1x512xf32>
    %634 = vector.shape_cast %628 : vector<2x512xf32> to vector<2x1x512xf32>
    %635 = vector.shape_cast %632 : vector<2x512xf32> to vector<2x1x512xf32>
    %636 = vector.shape_cast %620 : vector<2x512xf32> to vector<2x1x512xf32>
    %637 = tpu.concatenate %633, %634, %635, %636 in 1 : vector<2x1x512xf32>, vector<2x1x512xf32>, vector<2x1x512xf32>, vector<2x1x512xf32> -> vector<2x4x512xf32>
    %c0_23 = arith.constant 0 : index
    %c0_24 = arith.constant 0 : index
    %c0_25 = arith.constant 0 : index
    %638 = vector.load %arg4[%c0_23, %c0_24, %c0_25] : memref<2x4x512xf32, #tpu.memory_space<vmem>>, vector<2x4x512xf32>
    tpu.vector_store %arg4[%c0_23, %c0_24, %c0_25], %637 {strides = array<i32>} : memref<2x4x512xf32, #tpu.memory_space<vmem>>, vector<2x4x512xf32>,
    return
  }
  func.func @transform_0(%arg0: i32) -> (i32, i32, i32) {
    %c0_i32 = arith.constant 0 : i32
    %c0_i32_0 = arith.constant 0 : i32
    %c0_i32_1 = arith.constant 0 : i32
    return %c0_i32, %c0_i32_0, %arg0 : i32, i32, i32
  }
  func.func @transform_1(%arg0: i32) -> (i32, i32, i32) {
    %c0_i32 = arith.constant 0 : i32
    %c0_i32_0 = arith.constant 0 : i32
    %c0_i32_1 = arith.constant 0 : i32
    return %c0_i32, %c0_i32_0, %arg0 : i32, i32, i32
  }
  func.func @transform_2(%arg0: i32) -> (i32, i32, i32) {
    %c0_i32 = arith.constant 0 : i32
    %c0_i32_0 = arith.constant 0 : i32
    %c0_i32_1 = arith.constant 0 : i32
    return %c0_i32, %c0_i32_0, %arg0 : i32, i32, i32
  }
  func.func @transform_3(%arg0: i32) -> (i32, i32, i32) {
    %c0_i32 = arith.constant 0 : i32
    %c0_i32_0 = arith.constant 0 : i32
    %c0_i32_1 = arith.constant 0 : i32
    return %c0_i32, %c0_i32_0, %arg0 : i32, i32, i32
  }
}

</mosaic_0001>

<bundles_post_ra>
// kernel: tpu_custom_call.1
= control target key start
LH: loop header
LB: loop body
LE: loop exit
PB: predicated region body
PF: predicated region fallthrough
CT: control target
= control target key end

     0   :  { %8 = vsyncpa [#allocation3], 0  ;;  %s3684_s0 = inlined_call_operand.hbm [shape: f32[2,4,512], index: 0, kind: input, shape index: {}]   ;;  %s3685_s1 = inlined_call_operand.hbm [shape: f32[4,4,512], index: 1, kind: input, shape index: {}]   ;;  %s3686_s2 = inlined_call_operand.hbm [shape: f32[4,4,512], index: 2, kind: input, shape index: {}]   ;;  %s3687_s3 = inlined_call_operand.hbm [shape: f32[2,4,512], index: 3, kind: output, shape index: {}]  }
   0x1   :  { %9 = vsyncpa [#allocation6], 0 }
   0x2   :  { %10 = vsyncpa [#allocation4], 0  ;;  %s28_s14 = sshll.u32 %s3685_s1, 4  ;;  %s2118_s15 = smov [#allocation5]   ;;  %s29_s14 = int_to_ptr.hbm [resolvable:$true] %s28_s14 }
   0x3   :  { %s30_s16 = sshll.u32 %s2118_s15, 4  ;;  %s15_s19 = sshll.u32 %s3684_s0, 4  ;;  %s31_s16 = int_to_ptr.vmem [resolvable:$true] %s30_s16  ;;  %s16_s19 = int_to_ptr.hbm [resolvable:$true] %s15_s19 }
   0x4   :  { %s2119_s20 = smov 256   ;;  %s2120_s21 = smov 16  }
   0x5   :  { %36 = dma.hbm_to_vmem [thread:$0]  %s29_s14, 1024, %s31_s16, [#allocation6], %s2119_s20, %s2119_s20, %s2120_s21  }
   0x6   :  { %s2121_s22 = smov [#allocation2]   ;;  %s41_s1 = sshll.u32 %s3686_s2, 4  ;;  %s42_s1 = int_to_ptr.hbm [resolvable:$true] %s41_s1 }
   0x7   :  { %s17_s23 = sshll.u32 %s2121_s22, 4  ;;  %s2122_s0 = smov [#allocation7]   ;;  %s18_s23 = int_to_ptr.vmem [resolvable:$true] %s17_s23 }
   0x8   :  { %23 = dma.hbm_to_vmem [thread:$0]  %s16_s19, 512, %s18_s23, [#allocation3], %s2119_s20, %s2119_s20, %s2120_s21  }
   0x9   :  { %s43_s26 = sshll.u32 %s2122_s0, 4  ;;  %s44_s26 = int_to_ptr.vmem [resolvable:$true] %s43_s26 }
   0xa   :  { %49 = dma.hbm_to_vmem [thread:$0]  %s42_s1, 1024, %s44_s26, [#allocation6], %s2119_s20, %s2119_s20, %s2120_s21  }
   0xb   :  { %2112 = dma.done.wait [#allocation3], 512  }
   0xc   :  { %2113 = vsyncadd [#allocation3], 4294966784 }
   0xd   :  { %2114 = dma.done.wait [#allocation6], 2048  }
   0xe   :  { %2115 = vsyncadd [#allocation6], 4294965248  ;;  %v2162_v0 = vld [vmem:[#allocation2] sm:$0xff]  ;;  %v2164_v1 = vld [vmem:[#allocation2 + $0x8] sm:$0xff]  ;;  %vm108_vm0 = vcmask 1041409   ;;  %s2123_s2 = smov [#allocation8]  }
   0xf   :  { %v2166_v2 = vld [vmem:[#allocation2 + $0x10] sm:$0xff]  ;;  %v2168_v3 = vld [vmem:[#allocation2 + $0x18] sm:$0xff]  ;;  %v2170_v4 = vld [vmem:[#allocation5] sm:$0xff]  ;;  %v100_v10 = vperm.slane %v2162_v0, 0  ;;  %v101_v11 = vperm.slane %v2162_v0, 4  ;;  %v102_v14 = vperm.slane %v2164_v1, 0 }
  0x10   :  { %v2172_v5 = vld [vmem:[#allocation5 + $0x8] sm:$0xff]  ;;  %v84_v6 = vperm.slane %v2170_v4, 0  ;;  %v85_v7 = vperm.slane %v2170_v4, 4  ;;  %v104_v12 = vperm.slane %v2166_v2, 0  ;;  %v105_v13 = vperm.slane %v2166_v2, 4  ;;  %s1882_s27 = sshll.u32 %s2123_s2, 4  ;;  %s1883_s27 = int_to_ptr.vmem [resolvable:$true] %s1882_s27 }
  0x11   :  { %v86_v8 = vperm.slane %v2172_v5, 0  ;;  %v87_v9 = vperm.slane %v2172_v5, 4  ;;  %v103_v15 = vperm.slane %v2164_v1, 4  ;;  %v106_v16 = vperm.slane %v2168_v3, 0  ;;  %s1884_s30 = sshll.u32 %s3687_s3, 4  ;;  %s1885_s30 = int_to_ptr.hbm [resolvable:$true] %s1884_s30 }
  0x12   :  { %v107_v17 = vperm.slane %v2168_v3, 4  ;;  %v92_v18 = vperm.slane %v84_v6, 0  ;;  %v93_v19 = vperm.slane %v85_v7, 0  ;;  %v2187_v22 = vsel %vm108_vm0, %v104_v12, %v100_v10 }
  0x13   :  { %v94_v20 = vperm.slane %v86_v8, 0  ;;  %v95_v21 = vperm.slane %v87_v9, 0  ;;  %v2190_v23 = vsel %vm108_vm0, %v105_v13, %v101_v11  ;;  %v121_v24 = vperm.slane %v2170_v4, 1 }
  0x14   :  { %v122_v25 = vperm.slane %v2170_v4, 5  ;;  %v2195_v26 = vsel %vm108_vm0, %v106_v16, %v102_v14  ;;  %v2198_v27 = vsel %vm108_vm0, %v107_v17, %v103_v15  ;;  %v123_v28 = vperm.slane %v2172_v5, 1 }
  0x15   :  { %v124_v29 = vperm.slane %v2172_v5, 5  ;;  %v133_v30 = vperm.slane %v2162_v0, 1  ;;  %v134_v31 = vperm.slane %v2162_v0, 5  ;;  %v135_v32 = vperm.slane %v2164_v1, 1 }
  0x16   :  { %v136_v33 = vperm.slane %v2164_v1, 5  ;;  %v137_v34 = vperm.slane %v2166_v2, 1  ;;  %v138_v35 = vperm.slane %v2166_v2, 5  ;;  %v139_v36 = vperm.slane %v2168_v3, 1 }
  0x17   :  { %v140_v37 = vperm.slane %v2168_v3, 5  ;;  %v117_v38 = vmul.f32 %v2187_v22, %v92_v18  ;;  %v118_v39 = vmul.f32 %v2190_v23, %v93_v19  ;;  %v119_v40 = vmul.f32 %v2195_v26, %v94_v20 }
  0x18   :  { %v129_v41 = vperm.slane %v121_v24, 1  ;;  %v120_v42 = vmul.f32 %v2198_v27, %v95_v21  ;;  %v130_v43 = vperm.slane %v122_v25, 1  ;;  %v131_v44 = vperm.slane %v123_v28, 1 }
  0x19   :  { %v132_v45 = vperm.slane %v124_v29, 1  ;;  %v157_v46 = vperm.slane %v2170_v4, 2  ;;  %v158_v47 = vperm.slane %v2170_v4, 6  ;;  %v159_v48 = vperm.slane %v2172_v5, 2 }
  0x1a   :  { %v160_v49 = vperm.slane %v2172_v5, 6  ;;  %v2219_v50 = vsel %vm108_vm0, %v137_v34, %v133_v30  ;;  %v2222_v51 = vsel %vm108_vm0, %v138_v35, %v134_v31  ;;  %v2225_v52 = vsel %vm108_vm0, %v139_v36, %v135_v32 }
  0x1b   :  { %v2228_v53 = vsel %vm108_vm0, %v140_v37, %v136_v33  ;;  %v169_v54 = vperm.slane %v2162_v0, 2  ;;  %v170_v55 = vperm.slane %v2162_v0, 6  ;;  %v173_v56 = vperm.slane %v2166_v2, 2 }
  0x1c   :  { %v174_v57 = vperm.slane %v2166_v2, 6  ;;  %v171_v58 = vperm.slane %v2164_v1, 2  ;;  %v172_v59 = vperm.slane %v2164_v1, 6  ;;  %v175_v60 = vperm.slane %v2168_v3, 2 }
  0x1d   :  { %v176_v61 = vperm.slane %v2168_v3, 6  ;;  %v149_v62 = vmul.f32 %v2219_v50, %v129_v41  ;;  %v150_v63 = vmul.f32 %v2222_v51, %v130_v43  ;;  %v151_v6 = vmul.f32 %v2225_v52, %v131_v44  ;;  %v2270_v43 = vld [vmem:[#allocation5 + $0x18] sm:$0xff] }
  0x1e   :  { %v152_v7 = vmul.f32 %v2228_v53, %v132_v45  ;;  %v165_v8 = vperm.slane %v157_v46, 2  ;;  %v166_v9 = vperm.slane %v158_v47, 2  ;;  %v167_v10 = vperm.slane %v159_v48, 2 }
  0x1f   :  { %v168_v11 = vperm.slane %v160_v49, 2  ;;  %v2243_v12 = vsel %vm108_vm0, %v173_v56, %v169_v54  ;;  %v2246_v13 = vsel %vm108_vm0, %v174_v57, %v170_v55  ;;  %v193_v14 = vperm.slane %v2170_v4, 3 }
  0x20   :  { %v194_v15 = vperm.slane %v2170_v4, 7  ;;  %v2251_v16 = vsel %vm108_vm0, %v175_v60, %v171_v58  ;;  %v2254_v17 = vsel %vm108_vm0, %v176_v61, %v172_v59  ;;  %v195_v18 = vperm.slane %v2172_v5, 3 }
  0x21   :  { %v196_v19 = vperm.slane %v2172_v5, 7  ;;  %v153_v20 = vadd.f32 %v149_v62, %v117_v38  ;;  %v154_v21 = vadd.f32 %v150_v63, %v118_v39  ;;  %v155_v24 = vadd.f32 %v151_v6, %v119_v40  ;;  %v2264_v38 = vld [vmem:[#allocation5 + $0x10] sm:$0xff] }
  0x22   :  { %v156_v25 = vadd.f32 %v152_v7, %v120_v42  ;;  %v185_v28 = vmul.f32 %v2243_v12, %v165_v8  ;;  %v186_v29 = vmul.f32 %v2246_v13, %v166_v9  ;;  %v187_v30 = vmul.f32 %v2251_v16, %v167_v10 }
  0x23   :  { %v188_v31 = vmul.f32 %v2254_v17, %v168_v11  ;;  %v201_v32 = vperm.slane %v193_v14, 3  ;;  %v202_v33 = vperm.slane %v194_v15, 3  ;;  %v203_v34 = vperm.slane %v195_v18, 3 }
  0x24   :  { %v204_v35 = vperm.slane %v196_v19, 3  ;;  %v205_v36 = vperm.slane %v2162_v0, 3  ;;  %v206_v37 = vperm.slane %v2162_v0, 7  ;;  %v207_v39 = vperm.slane %v2164_v1, 3 }
  0x25   :  { %v208_v40 = vperm.slane %v2164_v1, 7  ;;  %v209_v41 = vperm.slane %v2166_v2, 3  ;;  %v210_v42 = vperm.slane %v2166_v2, 7  ;;  %v211_v44 = vperm.slane %v2168_v3, 3 }
  0x26   :  { %v212_v45 = vperm.slane %v2168_v3, 7  ;;  %v231_v46 = vperm.slane %v2264_v38, 0  ;;  %v232_v0 = vperm.slane %v2264_v38, 4  ;;  %v189_v47 = vadd.f32 %v185_v28, %v153_v20 }
  0x27   :  { %v190_v48 = vadd.f32 %v186_v29, %v154_v21  ;;  %v191_v49 = vadd.f32 %v187_v30, %v155_v24  ;;  %v233_v54 = vperm.slane %v2270_v43, 0  ;;  %v192_v1 = vadd.f32 %v188_v31, %v156_v25 }
  0x28   :  { %v247_v55 = vperm.slane %v2264_v38, 1  ;;  %v248_v2 = vperm.slane %v2264_v38, 5  ;;  %v249_v56 = vperm.slane %v2270_v43, 1  ;;  %v2281_v57 = vsel %vm108_vm0, %v209_v41, %v205_v36 }
  0x29   :  { %v2284_v3 = vsel %vm108_vm0, %v210_v42, %v206_v37  ;;  %v234_v58 = vperm.slane %v2270_v43, 4  ;;  %v250_v59 = vperm.slane %v2270_v43, 5  ;;  %v2289_v60 = vsel %vm108_vm0, %v211_v44, %v207_v39 }
  0x2a   :  { %v2292_v61 = vsel %vm108_vm0, %v212_v45, %v208_v40  ;;  %v239_v62 = vperm.slane %v231_v46, 0  ;;  %v240_v63 = vperm.slane %v232_v0, 0  ;;  %v241_v6 = vperm.slane %v233_v54, 0 }
  0x2b   :  { %v267_v7 = vperm.slane %v2264_v38, 2  ;;  %v268_v8 = vperm.slane %v2264_v38, 6  ;;  %v269_v9 = vperm.slane %v2270_v43, 2  ;;  %v255_v10 = vperm.slane %v247_v55, 1  ;;  %v2321_v55 = vld [vmem:[#allocation5 + $0x20] sm:$0xff] }
  0x2c   :  { %v256_v11 = vperm.slane %v248_v2, 1  ;;  %v257_v14 = vperm.slane %v249_v56, 1  ;;  %v270_v15 = vperm.slane %v2270_v43, 6  ;;  %v221_v18 = vmul.f32 %v2281_v57, %v201_v32 }
  0x2d   :  { %v222_v19 = vmul.f32 %v2284_v3, %v202_v33  ;;  %v242_v20 = vperm.slane %v234_v58, 0  ;;  %v258_v21 = vperm.slane %v250_v59, 1  ;;  %v223_v24 = vmul.f32 %v2289_v60, %v203_v34  ;;  %v2324_v59 = vld [vmem:[#allocation5 + $0x28] sm:$0xff] }
  0x2e   :  { %v224_v25 = vmul.f32 %v2292_v61, %v204_v35  ;;  %v243_v28 = vmul.f32 %v239_v62, %v2187_v22  ;;  %v244_v29 = vmul.f32 %v240_v63, %v2190_v23  ;;  %v245_v30 = vmul.f32 %v241_v6, %v2195_v26 }
  0x2f   :  { %v275_v31 = vperm.slane %v267_v7, 2  ;;  %v276_v36 = vperm.slane %v268_v8, 2  ;;  %v277_v37 = vperm.slane %v269_v9, 2  ;;  %v259_v39 = vmul.f32 %v255_v10, %v2219_v50 }
  0x30   :  { %v260_v32 = vmul.f32 %v256_v11, %v2222_v51  ;;  %v261_v33 = vmul.f32 %v257_v14, %v2225_v52  ;;  %v278_v40 = vperm.slane %v270_v15, 2  ;;  %v246_v34 = vmul.f32 %v242_v20, %v2198_v27 }
  0x31   :  { %v262_v35 = vmul.f32 %v258_v21, %v2228_v53  ;;  %v2310_v41 = vadd.f32 %v221_v18, %v189_v47  ;;  %v2312_v42 = vadd.f32 %v222_v19, %v190_v48  ;;  %v2314_v44 = vadd.f32 %v223_v24, %v191_v49 }
  0x32   :  { %v2316_v45 = vadd.f32 %v224_v25, %v192_v1  ;;  %v279_v46 = vmul.f32 %v275_v31, %v2243_v12  ;;  %v280_v0 = vmul.f32 %v276_v36, %v2246_v13  ;;  %v281_v54 = vmul.f32 %v277_v37, %v2251_v16 }
  0x33   :  { %3755 = vst [vmem:[#allocation12_spill] sm:$0xff] %v2310_v41  ;;  %v263_v2 = vadd.f32 %v259_v39, %v243_v28  ;;  %v264_v56 = vadd.f32 %v260_v32, %v244_v29  ;;  %v265_v58 = vadd.f32 %v261_v33, %v245_v30  ;;  %v282_v47 = vmul.f32 %v278_v40, %v2254_v17 }
  0x34   :  { %3756 = vst [vmem:[#allocation13_spill] sm:$0xff] %v2312_v42  ;;  %v266_v48 = vadd.f32 %v262_v35, %v246_v34  ;;  %v287_v49 = vperm.slane %v2264_v38, 3  ;;  %v309_v1 = vperm.slane %v2321_v55, 0  ;;  %v310_v62 = vperm.slane %v2321_v55, 4 }
  0x35   :  { %3757 = vst [vmem:[#allocation14_spill] sm:$0xff] %v2314_v44  ;;  %v288_v63 = vperm.slane %v2264_v38, 7  ;;  %v311_v6 = vperm.slane %v2324_v59, 0  ;;  %v312_v7 = vperm.slane %v2324_v59, 4  ;;  %v325_v8 = vperm.slane %v2321_v55, 1 }
  0x36   :  { %3758 = vst [vmem:[#allocation15_spill] sm:$0xff] %v2316_v45  ;;  %v289_v9 = vperm.slane %v2270_v43, 3  ;;  %v290_v10 = vperm.slane %v2270_v43, 7  ;;  %v326_v11 = vperm.slane %v2321_v55, 5  ;;  %v327_v14 = vperm.slane %v2324_v59, 1 }
  0x37   :  { %v283_v15 = vadd.f32 %v279_v46, %v263_v2  ;;  %v284_v18 = vadd.f32 %v280_v0, %v264_v56  ;;  %v285_v19 = vadd.f32 %v281_v54, %v265_v58  ;;  %v328_v20 = vperm.slane %v2324_v59, 5 }
  0x38   :  { %v286_v21 = vadd.f32 %v282_v47, %v266_v48  ;;  %v295_v24 = vperm.slane %v287_v49, 3  ;;  %v317_v25 = vperm.slane %v309_v1, 0  ;;  %v318_v28 = vperm.slane %v310_v62, 0 }
  0x39   :  { %v319_v29 = vperm.slane %v311_v6, 0  ;;  %v320_v30 = vperm.slane %v312_v7, 0  ;;  %v333_v31 = vperm.slane %v325_v8, 1  ;;  %v345_v36 = vperm.slane %v2321_v55, 2 }
  0x3a   :  { %v334_v37 = vperm.slane %v326_v11, 1  ;;  %v335_v39 = vperm.slane %v327_v14, 1  ;;  %v346_v32 = vperm.slane %v2321_v55, 6  ;;  %v347_v33 = vperm.slane %v2324_v59, 2 }
  0x3b   :  { %v296_v40 = vperm.slane %v288_v63, 3  ;;  %v297_v34 = vperm.slane %v289_v9, 3  ;;  %v336_v35 = vperm.slane %v328_v20, 1  ;;  %v348_v46 = vperm.slane %v2324_v59, 6 }
  0x3c   :  { %v298_v0 = vperm.slane %v290_v10, 3  ;;  %v299_v54 = vmul.f32 %v295_v24, %v2281_v57  ;;  %v321_v2 = vmul.f32 %v317_v25, %v2187_v22  ;;  %v322_v56 = vmul.f32 %v318_v28, %v2190_v23 }
  0x3d   :  { %v323_v58 = vmul.f32 %v319_v29, %v2195_v26  ;;  %v324_v47 = vmul.f32 %v320_v30, %v2198_v27  ;;  %v337_v48 = vmul.f32 %v333_v31, %v2219_v50  ;;  %v353_v49 = vperm.slane %v345_v36, 2 }
  0x3e   :  { %v338_v1 = vmul.f32 %v334_v37, %v2222_v51  ;;  %v339_v62 = vmul.f32 %v335_v39, %v2225_v52  ;;  %v354_v63 = vperm.slane %v346_v32, 2  ;;  %v355_v6 = vperm.slane %v347_v33, 2 }
  0x3f   :  { %v340_v7 = vmul.f32 %v336_v35, %v2228_v53  ;;  %v356_v8 = vperm.slane %v348_v46, 2  ;;  %v365_v9 = vperm.slane %v2321_v55, 3  ;;  %v366_v10 = vperm.slane %v2321_v55, 7  ;;  %v2364_v35 = vld [vmem:[#allocation5 + $0x30] sm:$0xff] }
  0x40   :  { %v300_v11 = vmul.f32 %v296_v40, %v2284_v3  ;;  %v301_v14 = vmul.f32 %v297_v34, %v2289_v60  ;;  %v367_v20 = vperm.slane %v2324_v59, 3  ;;  %v368_v24 = vperm.slane %v2324_v59, 7  ;;  %3760 = vst [vmem:[#allocation17_spill] sm:$0xff] %v2364_v35 }
  0x41   :  { %v302_v25 = vmul.f32 %v298_v0, %v2292_v61  ;;  %v2358_v28 = vadd.f32 %v299_v54, %v283_v15  ;;  %v341_v29 = vadd.f32 %v337_v48, %v321_v2  ;;  %v357_v30 = vmul.f32 %v353_v49, %v2243_v12  ;;  %v2370_v2 = vld [vmem:[#allocation5 + $0x38] sm:$0xff] }
  0x42   :  { %v342_v31 = vadd.f32 %v338_v1, %v322_v56  ;;  %v343_v36 = vadd.f32 %v339_v62, %v323_v58  ;;  %v358_v37 = vmul.f32 %v354_v63, %v2246_v13  ;;  %v359_v39 = vmul.f32 %v355_v6, %v2251_v16  ;;  %3763 = vst [vmem:[#allocation20_spill] sm:$0xff] %v2370_v2 }
  0x43   :  { %3759 = vst [vmem:[#allocation16_spill] sm:$0xff] %v2358_v28  ;;  %v344_v32 = vadd.f32 %v340_v7, %v324_v47  ;;  %v360_v33 = vmul.f32 %v356_v8, %v2254_v17  ;;  %v373_v40 = vperm.slane %v365_v9, 3  ;;  %v374_v34 = vperm.slane %v366_v10, 3 }
  0x44   :  { %v2366_v46 = vadd.f32 %v300_v11, %v284_v18  ;;  %v2368_v15 = vadd.f32 %v301_v14, %v285_v19  ;;  %v375_v0 = vperm.slane %v367_v20, 3  ;;  %v376_v54 = vperm.slane %v368_v24, 3  ;;  %v2389_v11 = vld [vmem:[#allocation7 + $0x10] sm:$0xff]  ;;  %v2391_v14 = vld [vmem:[#allocation7 + $0x18] sm:$0xff] }
  0x45   :  { %v2372_v56 = vadd.f32 %v302_v25, %v286_v21  ;;  %v361_v58 = vadd.f32 %v357_v30, %v341_v29  ;;  %v387_v48 = vperm.slane %v2364_v35, 0  ;;  %v388_v47 = vperm.slane %v2364_v35, 4  ;;  %3765 = vst [vmem:[#allocation22_spill] sm:$0xff] %v2389_v11 }
  0x46   :  { %3761 = vst [vmem:[#allocation18_spill] sm:$0xff] %v2366_v46  ;;  %v362_v49 = vadd.f32 %v358_v37, %v342_v31  ;;  %v363_v1 = vadd.f32 %v359_v39, %v343_v36  ;;  %v389_v62 = vperm.slane %v2370_v2, 0  ;;  %v390_v18 = vperm.slane %v2370_v2, 4 }
  0x47   :  { %3762 = vst [vmem:[#allocation19_spill] sm:$0xff] %v2368_v15  ;;  %v2378_v63 = vadd.f32 %v360_v33, %v344_v32  ;;  %v377_v19 = vmul.f32 %v373_v40, %v2281_v57  ;;  %v378_v6 = vmul.f32 %v374_v34, %v2284_v3  ;;  %v403_v21 = vperm.slane %v2364_v35, 1 }
  0x48   :  { %3764 = vst [vmem:[#allocation21_spill] sm:$0xff] %v2372_v56  ;;  %v379_v7 = vmul.f32 %v375_v0, %v2289_v60  ;;  %v2385_v8 = vmul.f32 %v376_v54, %v2292_v61  ;;  %v404_v9 = vperm.slane %v2364_v35, 5  ;;  %v405_v10 = vperm.slane %v2370_v2, 1 }
  0x49   :  { %3766 = vst [vmem:[#allocation23_spill] sm:$0xff] %v2391_v14  ;;  %v395_v20 = vperm.slane %v387_v48, 0  ;;  %v396_v24 = vperm.slane %v388_v47, 0  ;;  %v406_v25 = vperm.slane %v2370_v2, 5  ;;  %v423_v29 = vperm.slane %v2364_v35, 2 }
  0x4a   :  { %v397_v30 = vperm.slane %v389_v62, 0  ;;  %v398_v31 = vperm.slane %v390_v18, 0  ;;  %v424_v36 = vperm.slane %v2364_v35, 6  ;;  %v425_v37 = vperm.slane %v2370_v2, 2 }
  0x4b   :  { %v2397_v39 = vadd.f32 %v377_v19, %v361_v58  ;;  %v2399_v32 = vadd.f32 %v378_v6, %v362_v49  ;;  %v411_v33 = vperm.slane %v403_v21, 1  ;;  %v426_v40 = vperm.slane %v2370_v2, 6  ;;  %v2411_v19 = vld [vmem:[#allocation7 + $0x20] sm:$0xff]  ;;  %v2413_v49 = vld [vmem:[#allocation7 + $0x28] sm:$0xff] }
  0x4c   :  { %v412_v34 = vperm.slane %v404_v9, 1  ;;  %v413_v0 = vperm.slane %v405_v10, 1  ;;  %v2403_v54 = vrot.slane %v2389_v11, 7  ;;  %v2406_v48 = vrot.slane %v2391_v14, 7 }
  0x4d   :  { %3767 = vst [vmem:[#allocation24_spill] sm:$0xff] %v2397_v39  ;;  %v2408_v47 = vadd.f32 %v379_v7, %v363_v1  ;;  %v399_v62 = vmul.f32 %v395_v20, %v2187_v22  ;;  %v414_v18 = vperm.slane %v406_v25, 1  ;;  %v431_v58 = vperm.slane %v423_v29, 2 }
  0x4e   :  { %3768 = vst [vmem:[#allocation25_spill] sm:$0xff] %v2399_v32  ;;  %v400_v6 = vmul.f32 %v396_v24, %v2190_v23  ;;  %v401_v21 = vmul.f32 %v397_v30, %v2195_v26  ;;  %v432_v9 = vperm.slane %v424_v36, 2  ;;  %v433_v10 = vperm.slane %v425_v37, 2  ;;  %v2426_v26 = vld [vmem:[#allocation7] sm:$0xff]  ;;  %v2428_v24 = vld [vmem:[#allocation7 + $0x8] sm:$0xff]  ;;  %v2440_v30 = vld [vmem:[#allocation7 + $0x38] sm:$0xff] }
  0x4f   :  { %3769 = vst [vmem:[#allocation26_spill] sm:$0xff] %v2403_v54  ;;  %v402_v32 = vmul.f32 %v398_v31, %v2198_v27  ;;  %v415_v39 = vmul.f32 %v411_v33, %v2219_v50  ;;  %v434_v1 = vperm.slane %v426_v40, 2  ;;  %v443_v7 = vperm.slane %v2364_v35, 3 }
  0x50   :  { %3770 = vst [vmem:[#allocation27_spill] sm:$0xff] %v2406_v48  ;;  %v416_v22 = vmul.f32 %v412_v34, %v2222_v51  ;;  %v417_v20 = vmul.f32 %v413_v0, %v2225_v52  ;;  %v471_v25 = vmul.f32 %v2403_v54, %v2170_v4  ;;  %v472_v23 = vmul.f32 %v2406_v48, %v2172_v5  ;;  %v2438_v52 = vld [vmem:[#allocation7 + $0x30] sm:$0xff] }
  0x51   :  { %3771 = vst [vmem:[#allocation28_spill] sm:$0xff] %v2408_v47  ;;  %v418_v27 = vmul.f32 %v414_v18, %v2228_v53  ;;  %v435_v50 = vmul.f32 %v431_v58, %v2243_v12  ;;  %v2433_v29 = vrot.slane %v2411_v19, 6  ;;  %v2436_v51 = vrot.slane %v2413_v49, 6 }
  0x52   :  { %3772 = vst [vmem:[#allocation29_spill] sm:$0xff] %v2426_v26  ;;  %v436_v31 = vmul.f32 %v432_v9, %v2246_v13  ;;  %v437_v36 = vmul.f32 %v433_v10, %v2251_v16  ;;  %v444_v37 = vperm.slane %v2364_v35, 7  ;;  %v445_v53 = vperm.slane %v2370_v2, 3 }
  0x53   :  { %3773 = vst [vmem:[#allocation30_spill] sm:$0xff] %v2428_v24  ;;  %v419_v33 = vadd.f32 %v415_v39, %v399_v62  ;;  %v438_v12 = vmul.f32 %v434_v1, %v2254_v17  ;;  %v446_v40 = vperm.slane %v2370_v2, 7  ;;  %v451_v34 = vperm.slane %v443_v7, 3 }
  0x54   :  { %3774 = vst [vmem:[#allocation31_spill] sm:$0xff] %v2433_v29  ;;  %v463_v0 = vmul.f32 %v2426_v26, %v2170_v4  ;;  %v464_v18 = vmul.f32 %v2428_v24, %v2172_v5  ;;  %v1898_v58 = vrot.slane %v471_v25, 9  ;;  %v1899_v13 = vrot.slane %v472_v23, 9 }
  0x55   :  { %3775 = vst [vmem:[#allocation32_spill] sm:$0xff] %v2438_v52  ;;  %v489_v16 = vmul.f32 %v2433_v29, %v2170_v4  ;;  %v490_v9 = vmul.f32 %v2436_v51, %v2172_v5  ;;  %v2457_v39 = vrot.slane %v2438_v52, 5  ;;  %v2460_v17 = vrot.slane %v2440_v30, 5 }
  0x56   :  { %3776 = vst [vmem:[#allocation33_spill] sm:$0xff] %v2440_v30  ;;  %v420_v62 = vadd.f32 %v416_v22, %v400_v6  ;;  %v421_v10 = vadd.f32 %v417_v20, %v401_v21  ;;  %v452_v1 = vperm.slane %v444_v37, 3  ;;  %v453_v7 = vperm.slane %v445_v53, 3 }
  0x57   :  { %3777 = vst [vmem:[#allocation34_spill] sm:$0xff] %v2457_v39  ;;  %v422_v47 = vadd.f32 %v418_v27, %v402_v32  ;;  %v439_v56 = vadd.f32 %v435_v50, %v419_v33  ;;  %v454_v25 = vperm.slane %v446_v40, 3  ;;  %v523_v23 = vrot.slane %v2426_v26, 5 }
  0x58   :  { %3778 = vst [vmem:[#allocation35_spill] sm:$0xff] %v2460_v17  ;;  %v455_v15 = vmul.f32 %v451_v34, %v2281_v57  ;;  %v481_v46 = vadd.f32 %v1898_v58, %v463_v0  ;;  %v482_v28 = vadd.f32 %v1899_v13, %v464_v18  ;;  %v525_v45 = vrot.slane %v2428_v24, 5 }
  0x59   :  { %v1900_v44 = vrot.slane %v489_v16, 10  ;;  %v1901_v42 = vrot.slane %v490_v9, 10  ;;  %v507_v41 = vmul.f32 %v2457_v39, %v2170_v4  ;;  %v508_v6 = vmul.f32 %v2460_v17, %v2172_v5 }
  0x5a   :  { %v440_v21 = vadd.f32 %v436_v31, %v420_v62  ;;  %v441_v32 = vadd.f32 %v437_v36, %v421_v10  ;;  %v456_v22 = vmul.f32 %v452_v1, %v2284_v3  ;;  %v457_v20 = vmul.f32 %v453_v7, %v2289_v60 }
  0x5b   :  { %v2473_v57 = vadd.f32 %v2385_v8, %v2378_v63  ;;  %v442_v27 = vadd.f32 %v438_v12, %v422_v47  ;;  %v2475_v50 = vrot.slane %v523_v23, 4  ;;  %v531_v37 = vmul.f32 %v2389_v11, %v2170_v4 }
  0x5c   :  { %v458_v53 = vmul.f32 %v454_v25, %v2292_v61  ;;  %v2480_v33 = vadd.f32 %v455_v15, %v439_v56  ;;  %v2482_v31 = vrot.slane %v525_v45, 4  ;;  %v532_v3 = vmul.f32 %v2391_v14, %v2172_v5 }
  0x5d   :  { %3779 = vst [vmem:[#allocation36_spill] sm:$0xff] %v2473_v57  ;;  %v499_v60 = vadd.f32 %v1900_v44, %v481_v46  ;;  %v500_v36 = vadd.f32 %v1901_v42, %v482_v28  ;;  %v1902_v40 = vrot.slane %v507_v41, 11  ;;  %v1903_v63 = vrot.slane %v508_v6, 11 }
  0x5e   :  { %3780 = vst [vmem:[#allocation37_spill] sm:$0xff] %v2480_v33  ;;  %v2486_v8 = vadd.f32 %v456_v22, %v440_v21  ;;  %v2488_v47 = vadd.f32 %v457_v20, %v441_v32  ;;  %v2491_v12 = vrot.slane %v2411_v19, 7  ;;  %v2494_v61 = vrot.slane %v2413_v49, 7 }
  0x5f   :  { %v529_v45 = vmul.f32 %v2475_v50, %v2170_v4  ;;  %v1904_v15 = vrot.slane %v531_v37, 9  ;;  %v585_v56 = vrot.slane %v2389_v11, 5  ;;  %v587_v42 = vrot.slane %v2391_v14, 5 }
  0x60   :  { %3781 = vst [vmem:[#allocation38_spill] sm:$0xff] %v2486_v8  ;;  %v2500_v41 = vadd.f32 %v458_v53, %v442_v27  ;;  %v530_v44 = vmul.f32 %v2482_v31, %v2172_v5  ;;  %v1905_v28 = vrot.slane %v532_v3, 9  ;;  %v641_v46 = vrot.slane %v2389_v11, 6 }
  0x61   :  { %3782 = vst [vmem:[#allocation39_spill] sm:$0xff] %v2488_v47  ;;  %v517_v34 = vadd.f32 %v1902_v40, %v499_v60  ;;  %v518_v0 = vadd.f32 %v1903_v63, %v500_v36  ;;  %v2506_v18 = vrot.slane %v2438_v52, 6  ;;  %v2509_v58 = vrot.slane %v2440_v30, 6 }
  0x62   :  { %3783 = vst [vmem:[#allocation40_spill] sm:$0xff] %v2500_v41  ;;  %v547_v13 = vmul.f32 %v2491_v12, %v2170_v4  ;;  %v548_v16 = vmul.f32 %v2494_v61, %v2172_v5  ;;  %v577_v9 = vrot.slane %v2426_v26, 6  ;;  %v579_v62 = vrot.slane %v2428_v24, 6 }
  0x63   :  { %v541_v10 = vadd.f32 %v1904_v15, %v529_v45  ;;  %v2517_v1 = vrot.slane %v585_v56, 4  ;;  %v2519_v7 = vrot.slane %v587_v42, 4  ;;  %v633_v25 = vrot.slane %v2426_v26, 7 }
  0x64   :  { %v542_v23 = vadd.f32 %v1905_v28, %v530_v44  ;;  %v2522_v6 = vrot.slane %v641_v46, 4  ;;  %v643_v21 = vrot.slane %v2391_v14, 6  ;;  %v659_v32 = vrot.slane %v2411_v19, 5 }
  0x65   :  { %v2526_v22 = vsub.f32 1.0, %v517_v34  ;;  %v2528_v20 = vsub.f32 1.0, %v518_v0  ;;  %v563_v27 = vmul.f32 %v2506_v18, %v2170_v4  ;;  %v2534_v37 = vmul.f32 %v2509_v58, %v2172_v5 }
  0x66   :  { %v1906_v53 = vrot.slane %v547_v13, 10  ;;  %v1907_v3 = vrot.slane %v548_v16, 10  ;;  %v2536_v60 = vrot.slane %v577_v9, 4  ;;  %v2538_v36 = vrot.slane %v579_v62, 4 }
  0x67   :  { %3784 = vst [vmem:[#allocation41_spill] sm:$0xff] %v2526_v22  ;;  %v591_v40 = vmul.f32 %v2517_v1, %v2170_v4  ;;  %v592_v63 = vmul.f32 %v2519_v7, %v2172_v5  ;;  %v2544_v45 = vrot.slane %v633_v25, 4  ;;  %v635_v15 = vrot.slane %v2428_v24, 7 }
  0x68   :  { %3785 = vst [vmem:[#allocation42_spill] sm:$0xff] %v2528_v20  ;;  %v2547_v56 = vrot.slane %v643_v21, 4  ;;  %v647_v42 = vmul.f32 %v2522_v6, %v2170_v4  ;;  %v2551_v44 = vrot.slane %v659_v32, 4  ;;  %v661_v28 = vrot.slane %v2413_v49, 5 }
  0x69   :  { %3786 = vst [vmem:[#allocation43_spill] sm:$0xff] %v2544_v45  ;;  %v1908_v46 = vrot.slane %v563_v27, 11  ;;  %v1909_v34 = vrot.slane %v2534_v37, 11  ;;  %v603_v0 = vmul.f32 %v2411_v19, %v2170_v4  ;;  %v2558_v13 = vrot.slane %v2438_v52, 7 }
  0x6a   :  { %3787 = vst [vmem:[#allocation44_spill] sm:$0xff] %v2551_v44  ;;  %v583_v16 = vmul.f32 %v2536_v60, %v2170_v4  ;;  %v584_v9 = vmul.f32 %v2538_v36, %v2172_v5  ;;  %v604_v62 = vmul.f32 %v2413_v49, %v2172_v5  ;;  %v2567_v25 = vrot.slane %v2440_v30, 7 }
  0x6b   :  { %v1910_v21 = vrot.slane %v591_v40, 9  ;;  %v1911_v32 = vrot.slane %v592_v63, 9  ;;  %v2569_v27 = vrot.slane %v635_v15, 4  ;;  %v639_v37 = vmul.f32 %v2544_v45, %v2170_v4 }
  0x6c   :  { %v648_v41 = vmul.f32 %v2547_v56, %v2172_v5  ;;  %v1916_v47 = vrot.slane %v647_v42, 9  ;;  %v2575_v8 = vrot.slane %v661_v28, 4  ;;  %v665_v33 = vmul.f32 %v2551_v44, %v2170_v4 }
  0x6d   :  { %3788 = vst [vmem:[#allocation45_spill] sm:$0xff] %v2569_v27  ;;  %v557_v57 = vadd.f32 %v1906_v53, %v541_v10  ;;  %v558_v20 = vadd.f32 %v1907_v3, %v542_v23  ;;  %v1912_v22 = vrot.slane %v603_v0, 10  ;;  %v619_v40 = vmul.f32 %v2558_v13, %v2170_v4 }
  0x6e   :  { %3789 = vst [vmem:[#allocation46_spill] sm:$0xff] %v2575_v8  ;;  %v1913_v63 = vrot.slane %v604_v62, 10  ;;  %v620_v15 = vmul.f32 %v2567_v25, %v2172_v5  ;;  %v693_v2 = vmul.f32 %v2403_v54, %v2264_v38  ;;  %v694_v42 = vmul.f32 %v2406_v48, %v2270_v43 }
  0x6f   :  { %v601_v28 = vadd.f32 %v1910_v21, %v583_v16  ;;  %v602_v35 = vadd.f32 %v1911_v32, %v584_v9  ;;  %v640_v10 = vmul.f32 %v2569_v27, %v2172_v5  ;;  %v677_v23 = vmul.f32 %v2438_v52, %v2170_v4 }
  0x70   :  { %v1917_v53 = vrot.slane %v648_v41, 9  ;;  %v657_v3 = vadd.f32 %v1916_v47, %v639_v37  ;;  %v666_v0 = vmul.f32 %v2575_v8, %v2172_v5  ;;  %v1918_v62 = vrot.slane %v665_v33, 10 }
  0x71   :  { %v2593_v44 = vadd.f32 %v1908_v46, %v557_v57  ;;  %v1914_v45 = vrot.slane %v619_v40, 11  ;;  %v691_v48 = vmul.f32 %v2426_v26, %v2264_v38  ;;  %v692_v16 = vmul.f32 %v2428_v24, %v2270_v43 }
  0x72   :  { %v1922_v9 = vrot.slane %v693_v2, 9  ;;  %v1923_v21 = vrot.slane %v694_v42, 9  ;;  %v705_v4 = vmul.f32 %v2433_v29, %v2264_v38  ;;  %v706_v47 = vmul.f32 %v2436_v51, %v2270_v43 }
  0x73   :  { %3790 = vst [vmem:[#allocation47_spill] sm:$0xff] %v2593_v44  ;;  %v613_v41 = vadd.f32 %v1912_v22, %v601_v28  ;;  %v614_v32 = vadd.f32 %v1913_v63, %v602_v35  ;;  %v1915_v33 = vrot.slane %v620_v15, 11  ;;  %v678_v57 = vmul.f32 %v2440_v30, %v2172_v5 }
  0x74   :  { %v658_v46 = vadd.f32 %v1917_v53, %v640_v10  ;;  %v1919_v37 = vrot.slane %v666_v0, 10  ;;  %v675_v40 = vadd.f32 %v1918_v62, %v657_v3  ;;  %v1920_v52 = vrot.slane %v677_v23, 11 }
  0x75   :  { %v717_v2 = vmul.f32 %v2457_v39, %v2264_v38  ;;  %v718_v42 = vmul.f32 %v2460_v17, %v2270_v43  ;;  %v733_v29 = vmul.f32 %v2389_v11, %v2264_v38  ;;  %v734_v35 = vmul.f32 %v2391_v14, %v2270_v43 }
  0x76   :  { %v703_v22 = vadd.f32 %v1922_v9, %v691_v48  ;;  %v704_v63 = vadd.f32 %v1923_v21, %v692_v16  ;;  %v1924_v15 = vrot.slane %v705_v4, 10  ;;  %v1925_v5 = vrot.slane %v706_v47, 10 }
  0x77   :  { %v2613_v28 = vadd.f32 %v1909_v34, %v558_v20  ;;  %v2615_v10 = vadd.f32 %v1914_v45, %v613_v41  ;;  %v2617_v23 = vadd.f32 %v1915_v33, %v614_v32  ;;  %v1921_v53 = vrot.slane %v678_v57, 11  ;;  %v3796_v32 = vld [vmem:[#allocation27_spill] sm:$0xff] }
  0x78   :  { %v676_v3 = vadd.f32 %v1919_v37, %v658_v46  ;;  %v2619_v0 = vadd.f32 %v1920_v52, %v675_v40  ;;  %v731_v62 = vmul.f32 %v2475_v50, %v2264_v38  ;;  %v732_v14 = vmul.f32 %v2482_v31, %v2270_v43 }
  0x79   :  { %3791 = vst [vmem:[#allocation48_spill] sm:$0xff] %v2613_v28  ;;  %v1928_v48 = vrot.slane %v733_v29, 9  ;;  %v1929_v16 = vrot.slane %v734_v35, 9  ;;  %v745_v20 = vmul.f32 %v2491_v12, %v2264_v38  ;;  %v746_v45 = vmul.f32 %v2494_v61, %v2270_v43 }
  0x7a   :  { %3792 = vst [vmem:[#allocation49_spill] sm:$0xff] %v2615_v10  ;;  %v715_v34 = vadd.f32 %v1924_v15, %v703_v22  ;;  %v716_v9 = vadd.f32 %v1925_v5, %v704_v63  ;;  %v1926_v21 = vrot.slane %v717_v2, 11  ;;  %v1927_v4 = vrot.slane %v718_v42, 11  ;;  %v3797_v5 = vld [vmem:[#allocation43_spill] sm:$0xff] }
  0x7b   :  { %3793 = vst [vmem:[#allocation50_spill] sm:$0xff] %v2617_v23  ;;  %v2633_v41 = vmul.f32 %v2506_v18, %v2264_v38  ;;  %v2637_v29 = vmul.f32 %v2509_v58, %v2270_v43  ;;  %v2641_v57 = vadd.f32 %v1921_v53, %v676_v3  ;;  %v743_v37 = vadd.f32 %v1928_v48, %v731_v62 }
  0x7c   :  { %3794 = vst [vmem:[#allocation51_spill] sm:$0xff] %v2619_v0  ;;  %v744_v40 = vadd.f32 %v1929_v16, %v732_v14  ;;  %v1930_v2 = vrot.slane %v745_v20, 10  ;;  %v1931_v42 = vrot.slane %v746_v45, 10  ;;  %v2644_v35 = vadd.f32 %v1926_v21, %v715_v34  ;;  %v3798_v0 = vld [vmem:[#allocation44_spill] sm:$0xff] }
  0x7d   :  { %3795 = vst [vmem:[#allocation52_spill] sm:$0xff] %v2641_v57  ;;  %v2646_v22 = vadd.f32 %v1927_v4, %v716_v9  ;;  %v773_v63 = vmul.f32 %v2517_v1, %v2264_v38  ;;  %v774_v15 = vmul.f32 %v2519_v7, %v2270_v43  ;;  %v785_v3 = vmul.f32 %v2411_v19, %v2264_v38  ;;  %v3824_v57 = vld [vmem:[#allocation33_spill] sm:$0xff] }
  0x7e   :  { %v786_v14 = vmul.f32 %v2413_v49, %v2270_v43  ;;  %v771_v62 = vmul.f32 %v2536_v60, %v2264_v38  ;;  %v772_v48 = vmul.f32 %v2538_v36, %v2270_v43  ;;  %v813_v16 = vmul.f32 %v2522_v6, %v2264_v38 }
  0x7f   :  { %v814_v20 = vmul.f32 %v2547_v56, %v2270_v43  ;;  %v755_v45 = vadd.f32 %v1930_v2, %v743_v37  ;;  %v756_v34 = vadd.f32 %v1931_v42, %v744_v40  ;;  %v797_v9 = vmul.f32 %v2558_v13, %v2264_v38 }
  0x80   :  { %v798_v21 = vmul.f32 %v2567_v25, %v2270_v43  ;;  %v1934_v4 = vrot.slane %v773_v63, 9  ;;  %v1935_v46 = vrot.slane %v774_v15, 9  ;;  %v853_v33 = vmul.f32 %v2403_v54, %v2321_v55 }
  0x81   :  { %v854_v47 = vmul.f32 %v3796_v32, %v2324_v59  ;;  %v1936_v52 = vrot.slane %v785_v3, 10  ;;  %v1937_v53 = vrot.slane %v786_v14, 10  ;;  %v811_v37 = vmul.f32 %v3797_v5, %v2264_v38 }
  0x82   :  { %v812_v40 = vmul.f32 %v2569_v27, %v2270_v43  ;;  %v1940_v2 = vrot.slane %v813_v16, 9  ;;  %v1941_v42 = vrot.slane %v814_v20, 9  ;;  %v825_v63 = vmul.f32 %v3798_v0, %v2264_v38  ;;  %v3799_v27 = vld [vmem:[#allocation31_spill] sm:$0xff] }
  0x83   :  { %v826_v15 = vmul.f32 %v2575_v8, %v2270_v43  ;;  %v1938_v23 = vrot.slane %v797_v9, 11  ;;  %v1939_v10 = vrot.slane %v798_v21, 11  ;;  %v851_v3 = vmul.f32 %v2426_v26, %v2321_v55  ;;  %v3800_v8 = vld [vmem:[#allocation32_spill] sm:$0xff] }
  0x84   :  { %v852_v14 = vmul.f32 %v2428_v24, %v2324_v59  ;;  %v1946_v28 = vrot.slane %v853_v33, 9  ;;  %v1947_v44 = vrot.slane %v854_v47, 9  ;;  %v865_v16 = vmul.f32 %v3799_v27, %v2321_v55 }
  0x85   :  { %v866_v20 = vmul.f32 %v2436_v51, %v2324_v59  ;;  %v783_v0 = vadd.f32 %v1934_v4, %v771_v62  ;;  %v784_v5 = vadd.f32 %v1935_v46, %v772_v48  ;;  %v837_v9 = vmul.f32 %v3800_v8, %v2264_v38  ;;  %v3801_v46 = vld [vmem:[#allocation23_spill] sm:$0xff] }
  0x86   :  { %v838_v21 = vmul.f32 %v2440_v30, %v2270_v43  ;;  %v823_v26 = vadd.f32 %v1940_v2, %v811_v37  ;;  %v824_v32 = vadd.f32 %v1941_v42, %v812_v40  ;;  %v1942_v54 = vrot.slane %v825_v63, 10 }
  0x87   :  { %v1943_v24 = vrot.slane %v826_v15, 10  ;;  %v877_v47 = vmul.f32 %v2457_v39, %v2321_v55  ;;  %v878_v33 = vmul.f32 %v2460_v17, %v2324_v59  ;;  %v893_v62 = vmul.f32 %v2389_v11, %v2321_v55 }
  0x88   :  { %v894_v48 = vmul.f32 %v3801_v46, %v2324_v59  ;;  %v863_v38 = vadd.f32 %v1946_v28, %v851_v3  ;;  %v864_v4 = vadd.f32 %v1947_v44, %v852_v14  ;;  %v1948_v8 = vrot.slane %v865_v16, 10 }
  0x89   :  { %v1949_v43 = vrot.slane %v866_v20, 10  ;;  %v795_v37 = vadd.f32 %v1936_v52, %v783_v0  ;;  %v796_v40 = vadd.f32 %v1937_v53, %v784_v5  ;;  %v1944_v2 = vrot.slane %v837_v9, 11 }
  0x8a   :  { %v1945_v42 = vrot.slane %v838_v21, 11  ;;  %v835_v63 = vadd.f32 %v1942_v54, %v823_v26  ;;  %v836_v15 = vadd.f32 %v1943_v24, %v824_v32  ;;  %v891_v39 = vmul.f32 %v2475_v50, %v2321_v55 }
  0x8b   :  { %v892_v17 = vmul.f32 %v2482_v31, %v2324_v59  ;;  %v1952_v11 = vrot.slane %v893_v62, 9  ;;  %v1953_v30 = vrot.slane %v894_v48, 9  ;;  %v905_v28 = vmul.f32 %v2491_v12, %v2321_v55  ;;  %v3819_v48 = vld [vmem:[#allocation45_spill] sm:$0xff] }
  0x8c   :  { %v906_v44 = vmul.f32 %v2494_v61, %v2324_v59  ;;  %v875_v0 = vadd.f32 %v1948_v8, %v863_v38  ;;  %v876_v52 = vadd.f32 %v1949_v43, %v864_v4  ;;  %v1950_v5 = vrot.slane %v877_v47, 11 }
  0x8d   :  { %v1951_v53 = vrot.slane %v878_v33, 11  ;;  %v3802_v54 = vrot.slane %v2633_v41, 11  ;;  %v3804_v24 = vrot.slane %v2637_v29, 11  ;;  %v2718_v3 = vadd.f32 %v1938_v23, %v795_v37 }
  0x8e   :  { %v2720_v14 = vadd.f32 %v1939_v10, %v796_v40  ;;  %v2722_v16 = vadd.f32 %v1944_v2, %v835_v63  ;;  %v2724_v20 = vadd.f32 %v1945_v42, %v836_v15  ;;  %v917_v8 = vmul.f32 %v2506_v18, %v2321_v55 }
  0x8f   :  { %v2712_v26 = vadd.f32 %v3802_v54, %v755_v45  ;;  %v2716_v32 = vadd.f32 %v3804_v24, %v756_v34  ;;  %3806 = vst [vmem:[#allocation53_spill] sm:$0xff] %v2718_v3  ;;  %v918_v41 = vmul.f32 %v2509_v58, %v2324_v59  ;;  %v903_v45 = vadd.f32 %v1952_v11, %v891_v39  ;;  %v3814_v54 = vld [vmem:[#allocation26_spill] sm:$0xff]  ;;  %v3817_v39 = vld [vmem:[#allocation43_spill] sm:$0xff]  ;;  %v3818_v11 = vld [vmem:[#allocation44_spill] sm:$0xff] }
  0x90   :  { %3807 = vst [vmem:[#allocation54_spill] sm:$0xff] %v2720_v14  ;;  %v904_v9 = vadd.f32 %v1953_v30, %v892_v17  ;;  %v1954_v21 = vrot.slane %v905_v28, 10  ;;  %v1955_v29 = vrot.slane %v906_v44, 10  ;;  %v2732_v23 = vsub.f32 0.0, %v2644_v35 }
  0x91   :  { %3803 = vst [vmem:[#allocation31_spill] sm:$0xff] %v2712_v26  ;;  %v887_v10 = vadd.f32 %v1950_v5, %v875_v0  ;;  %v888_v47 = vadd.f32 %v1951_v53, %v876_v52  ;;  %v2735_v33 = vsub.f32 0.0, %v2646_v22  ;;  %v1956_v17 = vrot.slane %v917_v8, 11  ;;  %v3813_v53 = vld [vmem:[#allocation17_spill] sm:$0xff] }
  0x92   :  { %3805 = vst [vmem:[#allocation23_spill] sm:$0xff] %v2716_v32  ;;  %v915_v35 = vadd.f32 %v1954_v21, %v903_v45  ;;  %v916_v4 = vadd.f32 %v1955_v29, %v904_v9  ;;  %v1957_v43 = vrot.slane %v918_v41, 11  ;;  %v933_v22 = vmul.f32 %v2517_v1, %v2321_v55  ;;  %v3815_v9 = vld [vmem:[#allocation20_spill] sm:$0xff]  ;;  %v3816_v21 = vld [vmem:[#allocation27_spill] sm:$0xff] }
  0x93   :  { %3808 = vst [vmem:[#allocation55_spill] sm:$0xff] %v2722_v16  ;;  %v2745_v37 = vsub.f32 0.0, %v887_v10  ;;  %v2747_v40 = vsub.f32 0.0, %v888_v47  ;;  %v934_v2 = vmul.f32 %v2519_v7, %v2324_v59  ;;  %v945_v42 = vmul.f32 %v2411_v19, %v2321_v55  ;;  %v3823_v32 = vld [vmem:[#allocation32_spill] sm:$0xff] }
  0x94   :  { %3809 = vst [vmem:[#allocation56_spill] sm:$0xff] %v2724_v20  ;;  %v931_v63 = vmul.f32 %v2536_v60, %v2321_v55  ;;  %v932_v15 = vmul.f32 %v2538_v36, %v2324_v59  ;;  %v973_v28 = vmul.f32 %v2522_v6, %v2321_v55  ;;  %v974_v44 = vmul.f32 %v2547_v56, %v2324_v59  ;;  %v3822_v20 = vld [vmem:[#allocation30_spill] sm:$0xff] }
  0x95   :  { %3810 = vst [vmem:[#allocation57_spill] sm:$0xff] %v2735_v33  ;;  %v946_v0 = vmul.f32 %v2413_v49, %v2324_v59  ;;  %v957_v52 = vmul.f32 %v2558_v13, %v2321_v55  ;;  %v2767_v5 = vmul.f32 %v2567_v25, %v2324_v59  ;;  %v1013_v24 = vmul.f32 %v3814_v54, %v3813_v53 }
  0x96   :  { %3811 = vst [vmem:[#allocation58_spill] sm:$0xff] %v2745_v37  ;;  %v2771_v8 = vadd.f32 %v1956_v17, %v915_v35  ;;  %v2773_v41 = vadd.f32 %v1957_v43, %v916_v4  ;;  %v1958_v45 = vrot.slane %v933_v22, 9  ;;  %v1014_v29 = vmul.f32 %v3816_v21, %v3815_v9  ;;  %v3820_v35 = vld [vmem:[#allocation46_spill] sm:$0xff]  ;;  %v3821_v22 = vld [vmem:[#allocation29_spill] sm:$0xff]  ;;  %v3826_v37 = vld [vmem:[#allocation35_spill] sm:$0xff] }
  0x97   :  { %3812 = vst [vmem:[#allocation59_spill] sm:$0xff] %v2747_v40  ;;  %v1959_v10 = vrot.slane %v934_v2, 9  ;;  %v1960_v47 = vrot.slane %v945_v42, 10  ;;  %v971_v30 = vmul.f32 %v3817_v39, %v2321_v55  ;;  %v985_v38 = vmul.f32 %v3818_v11, %v2321_v55 }
  0x98   :  { %v972_v34 = vmul.f32 %v3819_v48, %v2324_v59  ;;  %v1964_v54 = vrot.slane %v973_v28, 9  ;;  %v1965_v17 = vrot.slane %v974_v44, 9  ;;  %v986_v4 = vmul.f32 %v3820_v35, %v2324_v59 }
  0x99   :  { %v1961_v43 = vrot.slane %v946_v0, 10  ;;  %v1011_v21 = vmul.f32 %v3821_v22, %v3813_v53  ;;  %v1970_v2 = vrot.slane %v1013_v24, 9  ;;  %v1025_v42 = vmul.f32 %v3799_v27, %v3813_v53  ;;  %v3825_v27 = vld [vmem:[#allocation34_spill] sm:$0xff] }
  0x9a   :  { %v943_v62 = vadd.f32 %v1958_v45, %v931_v63  ;;  %v1012_v16 = vmul.f32 %v3822_v20, %v3815_v9  ;;  %v1971_v14 = vrot.slane %v1014_v29, 9  ;;  %v1026_v28 = vmul.f32 %v2436_v51, %v3815_v9 }
  0x9b   :  { %v944_v44 = vadd.f32 %v1959_v10, %v932_v15  ;;  %v1966_v3 = vrot.slane %v985_v38, 10  ;;  %v997_v0 = vmul.f32 %v3823_v32, %v2321_v55  ;;  %v998_v22 = vmul.f32 %v3824_v57, %v2324_v59  ;;  %v3827_v55 = vld [vmem:[#allocation22_spill] sm:$0xff] }
  0x9c   :  { %v983_v24 = vadd.f32 %v1964_v54, %v971_v30  ;;  %v984_v40 = vadd.f32 %v1965_v17, %v972_v34  ;;  %v1967_v26 = vrot.slane %v986_v4, 10  ;;  %v1037_v63 = vmul.f32 %v3825_v27, %v3813_v53 }
  0x9d   :  { %v1962_v45 = vrot.slane %v957_v52, 11  ;;  %v1023_v20 = vadd.f32 %v1970_v2, %v1011_v21  ;;  %v1972_v29 = vrot.slane %v1025_v42, 10  ;;  %v1038_v51 = vmul.f32 %v3826_v37, %v3815_v9 }
  0x9e   :  { %v1963_v38 = vrot.slane %v2767_v5, 11  ;;  %v1024_v15 = vadd.f32 %v1971_v14, %v1012_v16  ;;  %v1973_v10 = vrot.slane %v1026_v28, 10  ;;  %v1053_v33 = vmul.f32 %v3827_v55, %v3813_v53  ;;  %v3828_v14 = vld [vmem:[#allocation41_spill] sm:$0xff] }
  0x9f   :  { %v955_v59 = vadd.f32 %v1960_v47, %v943_v62  ;;  %v956_v30 = vadd.f32 %v1961_v43, %v944_v44  ;;  %v1968_v34 = vrot.slane %v997_v0, 11  ;;  %v1969_v54 = vrot.slane %v998_v22, 11  ;;  %v3829_v47 = vld [vmem:[#allocation42_spill] sm:$0xff] }
  0xa0   :  { %v995_v17 = vadd.f32 %v1966_v3, %v983_v24  ;;  %v996_v4 = vadd.f32 %v1967_v26, %v984_v40  ;;  %v1974_v27 = vrot.slane %v1037_v63, 11  ;;  %v1054_v52 = vmul.f32 %v3801_v46, %v3815_v9 }
  0xa1   :  { %v1035_v21 = vadd.f32 %v1972_v29, %v1023_v20  ;;  %v1975_v2 = vrot.slane %v1038_v51, 11  ;;  %v1051_v37 = vmul.f32 %v2475_v50, %v3813_v53  ;;  %2000 = vrcp.f32 %v3828_v14 }
  0xa2   :  { %v1036_v16 = vadd.f32 %v1973_v10, %v1024_v15  ;;  %v1976_v5 = vrot.slane %v1053_v33, 9  ;;  %v2811_v62 = vmul.f32 %v2491_v12, %v3813_v53  ;;  %v2815_v26 = vmul.f32 %v2494_v61, %v3815_v9 }
  0xa3   :  { %v929_v3 = vsub.f32 0.0, %v2771_v8  ;;  %v930_v46 = vsub.f32 0.0, %v2773_v41  ;;  %v2819_v40 = vadd.f32 %v1962_v45, %v955_v59  ;;  %2002 = vrcp.f32 %v3829_v47 }
  0xa4   :  { %v1052_v50 = vmul.f32 %v2482_v31, %v3815_v9  ;;  %v1977_v33 = vrot.slane %v1054_v52, 9  ;;  %v2826_v12 = vmul.f32 %v2506_v18, %v3813_v53  ;;  %v2830_v61 = vmul.f32 %v2509_v58, %v3815_v9 }
  0xa5   :  { %v2832_v43 = vadd.f32 %v1963_v38, %v956_v30  ;;  %v2834_v42 = vadd.f32 %v1968_v34, %v995_v17  ;;  %v2836_v28 = vadd.f32 %v1969_v54, %v996_v4  ;;  %v2838_v44 = vadd.f32 %v1974_v27, %v1035_v21 }
  0xa6   :  { %v2840_v0 = vadd.f32 %v1975_v2, %v1036_v16  ;;  %v1063_v31 = vadd.f32 %v1976_v5, %v1051_v37  ;;  %v1978_v22 = vrot.slane %v2811_v62, 10  ;;  %v1979_v18 = vrot.slane %v2815_v26, 10 }
  0xa7   :  { %v2844_v24 = vpop.eup %2000  ;;  %v1093_v58 = vmul.f32 %v2517_v1, %v3813_v53  ;;  %v1094_v63 = vmul.f32 %v2519_v7, %v3815_v9  ;;  %v1105_v45 = vmul.f32 %v2411_v19, %v3813_v53  ;;  %v1106_v20 = vmul.f32 %v2413_v49, %v3815_v9 }
  0xa8   :  { %v1064_v29 = vadd.f32 %v1977_v33, %v1052_v50  ;;  %v1980_v51 = vrot.slane %v2826_v12, 11  ;;  %v1981_v38 = vrot.slane %v2830_v61, 11  ;;  %v1172_v15 = vmul.f32 %v2844_v24, %v3828_v14 }
  0xa9   :  { %v2858_v10 = vpop.eup %2002  ;;  %v1091_v1 = vmul.f32 %v2536_v60, %v3813_v53  ;;  %v1092_v7 = vmul.f32 %v2538_v36, %v3815_v9  ;;  %v2866_v19 = vmul.f32 %v2558_v13, %v3813_v53  ;;  %v2870_v49 = vmul.f32 %v2567_v25, %v3815_v9 }
  0xaa   :  { %v1133_v55 = vmul.f32 %v2522_v6, %v3813_v53  ;;  %v1134_v59 = vmul.f32 %v2547_v56, %v3815_v9  ;;  %v1173_v30 = vsub.f32 1.0, %v1172_v15  ;;  %v1186_v60 = vmul.f32 %v2858_v10, %v3829_v47 }
  0xab   :  { %v1982_v34 = vrot.slane %v1093_v58, 9  ;;  %v1983_v36 = vrot.slane %v1094_v63, 9  ;;  %v1984_v54 = vrot.slane %v1105_v45, 10  ;;  %v1985_v17 = vrot.slane %v1106_v20, 10 }
  0xac   :  { %v1131_v13 = vmul.f32 %v3817_v39, %v3813_v53  ;;  %v1132_v25 = vmul.f32 %v3819_v48, %v3815_v9  ;;  %v1174_v4 = vmul.f32 %v2844_v24, %v1173_v30  ;;  %v1187_v6 = vsub.f32 1.0, %v1186_v60 }
  0xad   :  { %v1145_v56 = vmul.f32 %v3818_v11, %v3813_v53  ;;  %v1146_v27 = vmul.f32 %v3820_v35, %v3815_v9  ;;  %vm1176_vm1 = vweird.f32 %v3828_v14  ;;  %vm1177_vm2 = vweird.f32 %v2844_v24 }
  0xae   :  { %v1988_v52 = vrot.slane %v1133_v55, 9  ;;  %v1989_v21 = vrot.slane %v1134_v59, 9  ;;  %v1182_v39 = vand.u32 2147483648, %v3828_v14  ;;  %v1188_v2 = vmul.f32 %v2858_v10, %v1187_v6  ;;  %vm2897_vm5 = vmor %vm1176_vm1, %vm1177_vm2 }
  0xaf   :  { %v1175_v48 = vadd.f32 %v2844_v24, %v1174_v4  ;;  %v1180_v37 = vand.u32 2147483647, %v3828_v14  ;;  %vm1190_vm3 = vweird.f32 %v3829_v47  ;;  %vm1191_vm4 = vweird.f32 %v2858_v10  ;;  %v3834_v4 = vld [vmem:[#allocation47_spill] sm:$0xff] }
  0xb0   :  { %v1103_v11 = vadd.f32 %v1982_v34, %v1091_v1  ;;  %v1104_v35 = vadd.f32 %v1983_v36, %v1092_v7  ;;  %v1157_v16 = vmul.f32 %v3823_v32, %v3813_v53  ;;  %v1196_v62 = vand.u32 2147483648, %v3829_v47  ;;  %vm2908_vm6 = vmor %vm1190_vm3, %vm1191_vm4 }
  0xb1   :  { %v1990_v26 = vrot.slane %v1145_v56, 10  ;;  %v1158_v50 = vmul.f32 %v3824_v57, %v3815_v9  ;;  %v1189_v14 = vadd.f32 %v2858_v10, %v1188_v2  ;;  %v1194_v33 = vand.u32 2147483647, %v3829_v47  ;;  %v3862_v2 = vld [vmem:[#allocation55_spill] sm:$0xff] }
  0xb2   :  { %v1143_v58 = vadd.f32 %v1988_v52, %v1131_v13  ;;  %v1144_v63 = vadd.f32 %v1989_v21, %v1132_v25  ;;  %v1991_v45 = vrot.slane %v1146_v27, 10  ;;  %v1183_v20 = vor.u32 1.1754944e-38, %v1182_v39 }
  0xb3   :  { %v1075_v53 = vadd.f32 %v1978_v22, %v1063_v31  ;;  %v1076_v15 = vadd.f32 %v1979_v18, %v1064_v29  ;;  %v1179_v57 = vsel %vm2897_vm5, %v2844_v24, %v1175_v48  ;;  %vm1181_vm7 = vcmp.eq.f32.partialorder %v1180_v37, 8.507059e+37 }
  0xb4   :  { %v1115_v9 = vadd.f32 %v1984_v54, %v1103_v11  ;;  %v1986_v1 = vrot.slane %v2866_v19, 11  ;;  %v1987_v7 = vrot.slane %v2870_v49, 11  ;;  %v1197_v55 = vor.u32 1.1754944e-38, %v1196_v62  ;;  %v3838_v11 = vld [vmem:[#allocation57_spill] sm:$0xff] }
  0xb5   :  { %v1116_v59 = vadd.f32 %v1985_v17, %v1104_v35  ;;  %v1992_v30 = vrot.slane %v1157_v16, 11  ;;  %v1193_v47 = vsel %vm2908_vm6, %v2858_v10, %v1189_v14  ;;  %vm1195_vm8 = vcmp.eq.f32.partialorder %v1194_v33, 8.507059e+37  ;;  %v3860_v16 = vld [vmem:[#allocation54_spill] sm:$0xff] }
  0xb6   :  { %v1155_v31 = vadd.f32 %v1990_v26, %v1143_v58  ;;  %v1156_v22 = vadd.f32 %v1991_v45, %v1144_v63  ;;  %v1993_v18 = vrot.slane %v1158_v50, 11  ;;  %v1184_v29 = vsel %vm1181_vm7, %v1183_v20, %v1179_v57  ;;  %v3839_v57 = vld [vmem:[#allocation58_spill] sm:$0xff]  ;;  %v3858_v50 = vld [vmem:[#allocation53_spill] sm:$0xff] }
  0xb7   :  { %v969_v24 = vsub.f32 1.0, %v2819_v40  ;;  %v2925_v34 = vsub.f32 0.0, %v2838_v44  ;;  %v2929_v36 = vadd.f32 %v1980_v51, %v1075_v53  ;;  %v2933_v10 = vadd.f32 %v1981_v38, %v1076_v15  ;;  %v3836_v38 = vld [vmem:[#allocation48_spill] sm:$0xff] }
  0xb8   :  { %v1198_v54 = vsel %vm1195_vm8, %v1197_v55, %v1193_v47  ;;  %v2936_v17 = vsub.f32 0.0, %v2840_v0  ;;  %v2938_v13 = vadd.f32 %v1986_v1, %v1115_v9  ;;  %v2940_v25 = vadd.f32 %v1987_v7, %v1116_v59  ;;  %v3840_v7 = vld [vmem:[#allocation31_spill] sm:$0xff] }
  0xb9   :  { %v3835_v6 = vsub.f32 0.0, %v3834_v4  ;;  %v2946_v56 = vadd.f32 %v1992_v30, %v1155_v31  ;;  %v2948_v12 = vadd.f32 %v1993_v18, %v1156_v22  ;;  %v1237_v61 = vperm.slane %v2732_v23, 0  ;;  %v3842_v47 = vld [vmem:[#allocation59_spill] sm:$0xff]  ;;  %v3843_v18 = vld [vmem:[#allocation49_spill] sm:$0xff] }
  0xba   :  { %v1238_v51 = vperm.slane %v2732_v23, 4  ;;  %v3837_v27 = vsub.f32 0.0, %v3836_v38  ;;  %v1207_v52 = vperm.slane %v1184_v29, 0  ;;  %v1208_v21 = vperm.slane %v1184_v29, 4 }
  0xbb   :  { %v2944_v44 = vmul.f32 %v1184_v29, %v3835_v6  ;;  %v1209_v39 = vperm.slane %v1198_v54, 0  ;;  %v1210_v37 = vperm.slane %v1198_v54, 4  ;;  %v1239_v35 = vperm.slane %v3838_v11, 0 }
  0xbc   :  { %v2954_v0 = vmul.f32 %v1198_v54, %v3837_v27  ;;  %v1240_v26 = vperm.slane %v3838_v11, 4  ;;  %v1245_v33 = vperm.slane %v1237_v61, 0  ;;  %v1246_v58 = vperm.slane %v1238_v51, 0  ;;  %v3845_v61 = vld [vmem:[#allocation50_spill] sm:$0xff]  ;;  %v3847_v27 = vld [vmem:[#allocation51_spill] sm:$0xff] }
  0xbd   :  { %v1223_v62 = vmul.f32 %v2944_v44, %v2732_v23  ;;  %v1215_v63 = vperm.slane %v1207_v52, 0  ;;  %v1216_v45 = vperm.slane %v1208_v21, 0  ;;  %v1217_v20 = vperm.slane %v1209_v39, 0  ;;  %v3849_v39 = vld [vmem:[#allocation52_spill] sm:$0xff] }
  0xbe   :  { %v1224_v32 = vmul.f32 %v2954_v0, %v3838_v11  ;;  %v1218_v53 = vperm.slane %v1210_v37, 0  ;;  %v1247_v15 = vperm.slane %v1239_v35, 0  ;;  %v1271_v9 = vperm.slane %v3839_v57, 0 }
  0xbf   :  { %v1272_v1 = vperm.slane %v3839_v57, 4  ;;  %v3841_v55 = vsub.f32 1.0, %v3840_v7  ;;  %v1248_v30 = vperm.slane %v1240_v26, 0  ;;  %v1273_v31 = vperm.slane %v3842_v47, 0  ;;  %v3852_v7 = vld [vmem:[#allocation13_spill] sm:$0xff] }
  0xc0   :  { %v1274_v22 = vperm.slane %v3842_v47, 4  ;;  %v3844_v4 = vsub.f32 0.0, %v3843_v18  ;;  %v3846_v51 = vsub.f32 0.0, %v3845_v61  ;;  %v3848_v52 = vsub.f32 0.0, %v3847_v27  ;;  %v3853_v18 = vld [vmem:[#allocation14_spill] sm:$0xff]  ;;  %v3854_v61 = vld [vmem:[#allocation23_spill] sm:$0xff] }
  0xc1   :  { %v2972_v59 = vsub.f32 %v3841_v55, %v1223_v62  ;;  %v3850_v37 = vsub.f32 0.0, %v3849_v39  ;;  %v3851_v62 = vld [vmem:[#allocation12_spill] sm:$0xff]  ;;  %v2996_v55 = vmul.f32 %v1216_v45, %v3852_v7  ;;  %v3856_v27 = vld [vmem:[#allocation15_spill] sm:$0xff]  ;;  %v1280_v39 = vperm.slane %v1272_v1, 0 }
  0xc2   :  { %v2978_v6 = vmul.f32 %v1184_v29, %v3844_v4  ;;  %v2982_v38 = vmul.f32 %v1198_v54, %v3846_v51  ;;  %v2986_v21 = vmul.f32 %v1184_v29, %v3848_v52  ;;  %v2993_v26 = vmul.f32 %v1215_v63, %v3851_v62 }
  0xc3   :  { %v2990_v35 = vmul.f32 %v1198_v54, %v3850_v37  ;;  %v2999_v4 = vmul.f32 %v1217_v20, %v3853_v18  ;;  %v3855_v51 = vsub.f32 1.0, %v3854_v61  ;;  %v3006_v29 = vmul.f32 %v1218_v53, %v3856_v27 }
  0xc4   :  { %v1279_v52 = vperm.slane %v1271_v9, 0  ;;  %v1305_v54 = vperm.slane %v2925_v34, 0  ;;  %v1306_v63 = vperm.slane %v2925_v34, 4  ;;  %v1307_v37 = vperm.slane %v2936_v17, 0 }
  0xc5   :  { %v3003_v14 = vsub.f32 %v3855_v51, %v1224_v32  ;;  %v1308_v45 = vperm.slane %v2936_v17, 4  ;;  %2004 = vrcp.f32 %v2972_v59  ;;  %v1227_v20 = vmul.f32 %v2978_v6, %v2732_v23 }
  0xc6   :  { %v1228_v32 = vmul.f32 %v2982_v38, %v3838_v11  ;;  %v1231_v53 = vmul.f32 %v2986_v21, %v2732_v23  ;;  %v1232_v9 = vmul.f32 %v2990_v35, %v3838_v11  ;;  %v3022_v1 = vmul.f32 %v1245_v33, %v2993_v26 }
  0xc7   :  { %v3025_v62 = vmul.f32 %v1246_v58, %v2996_v55  ;;  %v3028_v7 = vmul.f32 %v1247_v15, %v2999_v4  ;;  %2006 = vrcp.f32 %v3003_v14  ;;  %v3032_v18 = vmul.f32 %v1248_v30, %v3006_v29 }
  0xc8   :  { %v1257_v23 = vmul.f32 %v2944_v44, %v3839_v57  ;;  %v1258_v11 = vmul.f32 %v2954_v0, %v3842_v47  ;;  %v1281_v61 = vperm.slane %v1273_v31, 0  ;;  %v1282_v33 = vperm.slane %v1274_v22, 0  ;;  %v3864_v22 = vld [vmem:[#allocation56_spill] sm:$0xff] }
  0xc9   :  { %3857 = vst [vmem:[#allocation17_spill] sm:$0xff] %v3032_v18  ;;  %v1313_v51 = vperm.slane %v1305_v54, 0  ;;  %v1314_v27 = vperm.slane %v1306_v63, 0  ;;  %v3038_v58 = vperm.slane %v1307_v37, 0  ;;  %v3859_v15 = vsub.f32 0.0, %v3858_v50  ;;  %v3866_v37 = vld [vmem:[#allocation16_spill] sm:$0xff] }
  0xca   :  { %v3861_v48 = vsub.f32 0.0, %v3860_v16  ;;  %v3863_v49 = vsub.f32 0.0, %v3862_v2  ;;  %v3052_v60 = vperm.slane %v1308_v45, 0  ;;  %v3865_v54 = vsub.f32 0.0, %v3864_v22  ;;  %v3869_v2 = vld [vmem:[#allocation21_spill] sm:$0xff] }
  0xcb   :  { %v3042_v5 = vsub.f32 %v3859_v15, %v1227_v20  ;;  %v2005_v31 = vpop.eup %2004  ;;  %v3867_v20 = vld [vmem:[#allocation18_spill] sm:$0xff]  ;;  %v3068_v45 = vsub.f32 %v929_v3, %v1257_v23  ;;  %v1261_v22 = vmul.f32 %v2978_v6, %v3839_v57  ;;  %v1266_v8 = vmul.f32 %v2990_v35, %v3842_v47  ;;  %v3881_v50 = vld [vmem:[#allocation25_spill] sm:$0xff] }
  0xcc   :  { %v3046_v30 = vsub.f32 %v3861_v48, %v1228_v32  ;;  %v3050_v19 = vsub.f32 %v3863_v49, %v1231_v53  ;;  %v3056_v63 = vsub.f32 %v3865_v54, %v1232_v9  ;;  %v3868_v48 = vld [vmem:[#allocation19_spill] sm:$0xff]  ;;  %v3072_v32 = vsub.f32 %v930_v46, %v1258_v11 }
  0xcd   :  { %v1326_v53 = vmul.f32 %v2005_v31, %v2972_v59  ;;  %v2007_v9 = vpop.eup %2006  ;;  %v1262_v54 = vmul.f32 %v2982_v38, %v3842_v47  ;;  %v1265_v49 = vmul.f32 %v2986_v21, %v3839_v57  ;;  %vm1330_vm9 = vweird.f32 %v2972_v59 }
  0xce   :  { %vm1331_vm10 = vweird.f32 %v2005_v31  ;;  %v1340_v41 = vmul.f32 %v2007_v9, %v3003_v14  ;;  %v3086_v46 = vmul.f32 %v1279_v52, %v2993_v26  ;;  %v3089_v23 = vmul.f32 %v1280_v39, %v2996_v55 }
  0xcf   :  { %v1327_v3 = vsub.f32 1.0, %v1326_v53  ;;  %v1334_v11 = vand.u32 2147483647, %v2972_v59  ;;  %v1336_v16 = vand.u32 2147483648, %v2972_v59  ;;  %vm1344_vm11 = vweird.f32 %v3003_v14  ;;  %vm3105_vm13 = vmor %vm1330_vm9, %vm1331_vm10 }
  0xd0   :  { %3870 = vst [vmem:[#allocation26_spill] sm:$0xff] %v3086_v46  ;;  %v1341_v15 = vsub.f32 1.0, %v1340_v41  ;;  %vm1345_vm12 = vweird.f32 %v2007_v9  ;;  %v3096_v47 = vsub.f32 %v969_v24, %v1261_v22  ;;  %v3871_v53 = vsub.f32 1.0, %v2832_v43 }
  0xd1   :  { %v1328_v57 = vmul.f32 %v2005_v31, %v1327_v3  ;;  %v3103_v39 = vmul.f32 %v1281_v61, %v2999_v4  ;;  %v1350_v59 = vand.u32 2147483648, %v3003_v14  ;;  %v3875_v3 = vsub.f32 0.0, %v2834_v42  ;;  %vm3126_vm14 = vmor %vm1344_vm11, %vm1345_vm12 }
  0xd2   :  { %v3100_v52 = vsub.f32 %v3871_v53, %v1262_v54  ;;  %v1342_v24 = vmul.f32 %v2007_v9, %v1341_v15  ;;  %v1348_v22 = vand.u32 2147483647, %v3003_v14  ;;  %v3876_v43 = vsub.f32 0.0, %v2836_v28 }
  0xd3   :  { %3872 = vst [vmem:[#allocation20_spill] sm:$0xff] %v3103_v39  ;;  %v3112_v41 = vsub.f32 %v3875_v3, %v1265_v49  ;;  %v1329_v40 = vadd.f32 %v2005_v31, %v1328_v57  ;;  %v3120_v61 = vmul.f32 %v1282_v33, %v3006_v29  ;;  %v1291_v53 = vmul.f32 %v2944_v44, %v2925_v34  ;;  %v3880_v57 = vld [vmem:[#allocation24_spill] sm:$0xff] }
  0xd4   :  { %v3117_v54 = vsub.f32 %v3876_v43, %v1266_v8  ;;  %v1337_v18 = vor.u32 1.1754944e-38, %v1336_v16  ;;  %v1292_v15 = vmul.f32 %v2954_v0, %v2936_v17  ;;  %vm1335_vm15 = vcmp.eq.f32.partialorder %v1334_v11, 8.507059e+37 }
  0xd5   :  { %3877 = vst [vmem:[#allocation27_spill] sm:$0xff] %v3120_v61  ;;  %v1333_v28 = vsel %vm3105_vm13, %v2005_v31, %v1329_v40  ;;  %v1343_v49 = vadd.f32 %v2007_v9, %v1342_v24  ;;  %v1295_v33 = vmul.f32 %v2978_v6, %v2925_v34  ;;  %v1296_v16 = vmul.f32 %v2982_v38, %v2936_v17 }
  0xd6   :  { %v1299_v14 = vmul.f32 %v2986_v21, %v2925_v34  ;;  %v1351_v8 = vor.u32 1.1754944e-38, %v1350_v59  ;;  %v1300_v43 = vmul.f32 %v2990_v35, %v2936_v17  ;;  %vm1349_vm1 = vcmp.eq.f32.partialorder %v1348_v22, 8.507059e+37  ;;  %v3884_v59 = vld [vmem:[#allocation28_spill] sm:$0xff] }
  0xd7   :  { %v1347_v31 = vsel %vm3126_vm14, %v2007_v9, %v1343_v49  ;;  %v3149_v40 = vmul.f32 %v1313_v51, %v2993_v26  ;;  %v3152_v24 = vmul.f32 %v1314_v27, %v2996_v55  ;;  %v1338_v34 = vsel %vm1335_vm15, %v1337_v18, %v1333_v28 }
  0xd8   :  { %v3886_v42 = vsub.f32 0.0, %v2929_v36  ;;  %v3887_v22 = vsub.f32 0.0, %v2933_v10  ;;  %v3888_v51 = vsub.f32 0.0, %v2938_v13  ;;  %v3890_v18 = vsub.f32 0.0, %v2940_v25 }
  0xd9   :  { %3882 = vst [vmem:[#allocation43_spill] sm:$0xff] %v3149_v40  ;;  %v3892_v28 = vsub.f32 1.0, %v2946_v56  ;;  %v1352_v17 = vsel %vm1349_vm1, %v1351_v8, %v1347_v31  ;;  %v3894_v36 = vsub.f32 1.0, %v2948_v12  ;;  %v3184_v10 = vmul.f32 %v3038_v58, %v2999_v4 }
  0xda   :  { %3883 = vst [vmem:[#allocation44_spill] sm:$0xff] %v3152_v24  ;;  %v3160_v9 = vsub.f32 %v3886_v42, %v1291_v53  ;;  %v3164_v49 = vsub.f32 %v3887_v22, %v1292_v15  ;;  %v3168_v11 = vsub.f32 %v3888_v51, %v1295_v33  ;;  %v3172_v27 = vsub.f32 %v3890_v18, %v1296_v16  ;;  %v3900_v16 = vld [vmem:[#allocation40_spill] sm:$0xff] }
  0xdb   :  { %v3176_v3 = vsub.f32 %v3892_v28, %v1299_v14  ;;  %v3180_v53 = vsub.f32 %v3894_v36, %v1300_v43  ;;  %3896 = vst [vmem:[#allocation32_spill] sm:$0xff] %v3184_v10  ;;  %v3188_v13 = vmul.f32 %v3052_v60, %v3006_v29  ;;  %v3191_v25 = vmul.f32 %v1338_v34, %v3042_v5 }
  0xdc   :  { %3889 = vst [vmem:[#allocation45_spill] sm:$0xff] %v3168_v11  ;;  %v1385_v12 = vperm.slane %v2944_v44, 0  ;;  %v1386_v14 = vperm.slane %v2944_v44, 4  ;;  %v3200_v58 = vmul.f32 %v1352_v17, %v3046_v30  ;;  %v1387_v8 = vperm.slane %v2954_v0, 0 }
  0xdd   :  { %3891 = vst [vmem:[#allocation46_spill] sm:$0xff] %v3172_v27  ;;  %v1388_v60 = vperm.slane %v2954_v0, 4  ;;  %v1415_v5 = vperm.slane %v3068_v45, 0  ;;  %v1359_v43 = vperm.slane %v1338_v34, 0  ;;  %v1360_v31 = vperm.slane %v1338_v34, 4 }
  0xde   :  { %3893 = vst [vmem:[#allocation29_spill] sm:$0xff] %v3176_v3  ;;  %v1361_v42 = vperm.slane %v1352_v17, 0  ;;  %v1362_v22 = vperm.slane %v1352_v17, 4  ;;  %v1405_v28 = vmul.f32 %v3191_v25, %v3068_v45  ;;  %v1416_v36 = vperm.slane %v3068_v45, 4 }
  0xdf   :  { %3895 = vst [vmem:[#allocation30_spill] sm:$0xff] %v3180_v53  ;;  %v1417_v30 = vperm.slane %v3072_v32, 0  ;;  %v1393_v24 = vperm.slane %v1385_v12, 0  ;;  %v1394_v33 = vperm.slane %v1386_v14, 0  ;;  %v1418_v40 = vperm.slane %v3072_v32, 4 }
  0xe0   :  { %v1395_v56 = vperm.slane %v1387_v8, 0  ;;  %v1396_v53 = vperm.slane %v1388_v60, 0  ;;  %v1406_v3 = vmul.f32 %v3200_v58, %v3072_v32  ;;  %v1423_v18 = vperm.slane %v1415_v5, 0 }
  0xe1   :  { %v1367_v10 = vperm.slane %v1359_v43, 0  ;;  %v1368_v51 = vperm.slane %v1360_v31, 0  ;;  %v1369_v27 = vperm.slane %v1361_v42, 0  ;;  %v1370_v11 = vperm.slane %v1362_v22, 0 }
  0xe2   :  { %v3217_v61 = vsub.f32 %v3096_v47, %v1405_v28  ;;  %v1424_v46 = vperm.slane %v1416_v36, 0  ;;  %v1425_v39 = vperm.slane %v1417_v30, 0  ;;  %v1445_v12 = vperm.slane %v3160_v9, 0 }
  0xe3   :  { %v1426_v14 = vperm.slane %v1418_v40, 0  ;;  %v1446_v15 = vperm.slane %v3160_v9, 4  ;;  %v1447_v8 = vperm.slane %v3164_v49, 0  ;;  %v1448_v60 = vperm.slane %v3164_v49, 4 }
  0xe4   :  { %v3224_v5 = vmul.f32 %v1338_v34, %v3050_v19  ;;  %v3227_v43 = vmul.f32 %v1352_v17, %v3056_v63  ;;  %v1375_v47 = vmul.f32 %v3191_v25, %v2944_v44  ;;  %v3232_v31 = vsub.f32 %v3100_v52, %v1406_v3  ;;  %v3904_v34 = vld [vmem:[#allocation17_spill] sm:$0xff] }
  0xe5   :  { %v3901_v40 = vsub.f32 %v3866_v37, %v3022_v1  ;;  %v3902_v22 = vsub.f32 %v3867_v20, %v3025_v62  ;;  %v3903_v19 = vsub.f32 %v3868_v48, %v3028_v7  ;;  %v3905_v17 = vsub.f32 %v3869_v2, %v3904_v34 }
  0xe6   :  { %v1376_v1 = vmul.f32 %v3200_v58, %v2954_v0  ;;  %v3258_v37 = vmul.f32 %v3224_v5, %v2944_v44  ;;  %v3262_v62 = vmul.f32 %v3227_v43, %v2954_v0  ;;  %2008 = vrcp.f32 %v3217_v61 }
  0xe7   :  { %v3237_v42 = vmul.f32 %v1367_v10, %v3901_v40  ;;  %v3242_v28 = vmul.f32 %v1368_v51, %v3902_v22  ;;  %v3247_v63 = vmul.f32 %v1369_v27, %v3903_v19  ;;  %v3252_v52 = vmul.f32 %v1370_v11, %v3905_v17 }
  0xe8   :  { %v3279_v44 = vmul.f32 %v3224_v5, %v3068_v45  ;;  %v1453_v0 = vperm.slane %v1445_v12, 0  ;;  %v1454_v3 = vperm.slane %v1446_v15, 0  ;;  %2010 = vrcp.f32 %v3232_v31 }
  0xe9   :  { %v3266_v7 = vmul.f32 %v1393_v24, %v3237_v42  ;;  %v3269_v20 = vmul.f32 %v1394_v33, %v3242_v28  ;;  %v3272_v48 = vmul.f32 %v1395_v56, %v3247_v63  ;;  %v3275_v2 = vmul.f32 %v1396_v53, %v3252_v52 }
  0xea   :  { %v3283_v11 = vsub.f32 %v2978_v6, %v1375_v47  ;;  %v3287_v24 = vmul.f32 %v3227_v43, %v3072_v32  ;;  %v1455_v27 = vperm.slane %v1447_v8, 0  ;;  %v1456_v10 = vperm.slane %v1448_v60, 0 }
  0xeb   :  { %v3290_v53 = vsub.f32 %v2982_v38, %v1376_v1  ;;  %v1427_v15 = vmul.f32 %v1423_v18, %v3237_v42  ;;  %v1411_v36 = vsub.f32 %v3112_v41, %v3279_v44  ;;  %v1428_v30 = vmul.f32 %v1424_v46, %v3242_v28  ;;  %v3906_v41 = vld [vmem:[#allocation26_spill] sm:$0xff] }
  0xec   :  { %v2009_v51 = vpop.eup %2008  ;;  %v1429_v18 = vmul.f32 %v1425_v39, %v3247_v63  ;;  %v1430_v12 = vmul.f32 %v1426_v14, %v3252_v52  ;;  %v1412_v8 = vsub.f32 %v3117_v54, %v3287_v24  ;;  %v1435_v60 = vmul.f32 %v3191_v25, %v3160_v9 }
  0xed   :  { %v1436_v47 = vmul.f32 %v3200_v58, %v3164_v49  ;;  %v1466_v40 = vmul.f32 %v2009_v51, %v3217_v61  ;;  %v3907_v19 = vsub.f32 %v3880_v57, %v3906_v41  ;;  %v3324_v39 = vmul.f32 %v3224_v5, %v3160_v9  ;;  %v3909_v9 = vld [vmem:[#allocation20_spill] sm:$0xff] }
  0xee   :  { %v2011_v22 = vpop.eup %2010  ;;  %v3328_v14 = vmul.f32 %v3227_v43, %v3164_v49  ;;  %vm1470_vm2 = vweird.f32 %v3217_v61  ;;  %vm1471_vm3 = vweird.f32 %v2009_v51  ;;  %v1476_v17 = vand.u32 2147483648, %v3217_v61  ;;  %v3911_v49 = vld [vmem:[#allocation36_spill] sm:$0xff] }
  0xef   :  { %v3320_v46 = vsub.f32 %v3907_v19, %v1427_v15  ;;  %v1467_v34 = vsub.f32 1.0, %v1466_v40  ;;  %v1480_v1 = vmul.f32 %v2011_v22, %v3232_v31  ;;  %v3908_v57 = vsub.f32 %v3881_v50, %v3089_v23  ;;  %v3912_v19 = vld [vmem:[#allocation27_spill] sm:$0xff]  ;;  %v3914_v23 = vld [vmem:[#allocation45_spill] sm:$0xff]  ;;  %vm3357_vm6 = vmor %vm1470_vm2, %vm1471_vm3 }
  0xf0   :  { %v3910_v15 = vsub.f32 %v3884_v59, %v3909_v9  ;;  %v3913_v38 = vsub.f32 %v3911_v49, %v3912_v19  ;;  %v1474_v40 = vand.u32 2147483647, %v3217_v61  ;;  %vm1484_vm4 = vweird.f32 %v3232_v31  ;;  %v3923_v19 = vld [vmem:[#allocation43_spill] sm:$0xff] }
  0xf1   :  { %v3336_v44 = vsub.f32 %v3908_v57, %v1428_v30  ;;  %v1468_v32 = vmul.f32 %v2009_v51, %v1467_v34  ;;  %v1481_v6 = vsub.f32 1.0, %v1480_v1  ;;  %vm1485_vm5 = vweird.f32 %v2011_v22  ;;  %v3915_v30 = vld [vmem:[#allocation46_spill] sm:$0xff] }
  0xf2   :  { %v3341_v41 = vsub.f32 %v3910_v15, %v1429_v18  ;;  %v3346_v33 = vsub.f32 %v3913_v38, %v1430_v12  ;;  %v1437_v50 = vsub.f32 %v3914_v23, %v1435_v60  ;;  %v3352_v57 = vsub.f32 %v3915_v30, %v1436_v47  ;;  %vm3368_vm8 = vmor %vm1484_vm4, %vm1485_vm5  ;;  %v3926_v18 = vld [vmem:[#allocation38_spill] sm:$0xff] }
  0xf3   :  { %v1457_v59 = vmul.f32 %v1453_v0, %v3237_v42  ;;  %v1490_v38 = vand.u32 2147483648, %v3232_v31  ;;  %v1469_v12 = vadd.f32 %v2009_v51, %v1468_v32  ;;  %v1477_v34 = vor.u32 1.1754944e-38, %v1476_v17  ;;  %v3920_v0 = vld [vmem:[#allocation29_spill] sm:$0xff] }
  0xf4   :  { %v1482_v1 = vmul.f32 %v2011_v22, %v1481_v6  ;;  %v1488_v9 = vand.u32 2147483647, %v3232_v31  ;;  %v1458_v60 = vmul.f32 %v1454_v3, %v3242_v28  ;;  %v1459_v47 = vmul.f32 %v1455_v27, %v3247_v63  ;;  %v3921_v27 = vld [vmem:[#allocation30_spill] sm:$0xff] }
  0xf5   :  { %v1460_v15 = vmul.f32 %v1456_v10, %v3252_v52  ;;  %vm1475_vm7 = vcmp.eq.f32.partialorder %v1474_v40, 8.507059e+37  ;;  %v1441_v32 = vsub.f32 %v3920_v0, %v3324_v39  ;;  %v1473_v6 = vsel %vm3357_vm6, %v2009_v51, %v1469_v12  ;;  %v3922_v10 = vld [vmem:[#allocation37_spill] sm:$0xff]  ;;  %v3927_v12 = vld [vmem:[#allocation44_spill] sm:$0xff] }
  0xf6   :  { %v1483_v17 = vadd.f32 %v2011_v22, %v1482_v1  ;;  %v1519_v3 = vperm.slane %v3283_v11, 0  ;;  %v1442_v49 = vsub.f32 %v3921_v27, %v3328_v14  ;;  %v3924_v40 = vsub.f32 %v3922_v10, %v3923_v19  ;;  %v3930_v14 = vld [vmem:[#allocation39_spill] sm:$0xff]  ;;  %v3931_v27 = vld [vmem:[#allocation32_spill] sm:$0xff] }
  0xf7   :  { %v1491_v23 = vor.u32 1.1754944e-38, %v1490_v38  ;;  %v1520_v30 = vperm.slane %v3283_v11, 4  ;;  %v1478_v56 = vsel %vm1475_vm7, %v1477_v34, %v1473_v6  ;;  %vm1489_vm9 = vcmp.eq.f32.partialorder %v1488_v9, 8.507059e+37 }
  0xf8   :  { %v3382_v31 = vsub.f32 %v3924_v40, %v1457_v59  ;;  %v1487_v39 = vsel %vm3368_vm8, %v2011_v22, %v1483_v17  ;;  %v1521_v51 = vperm.slane %v3290_v53, 0  ;;  %v3928_v1 = vsub.f32 %v3926_v18, %v3927_v12 }
  0xf9   :  { %v3932_v10 = vsub.f32 %v3930_v14, %v3931_v27  ;;  %v3934_v38 = vsub.f32 %v3900_v16, %v3188_v13  ;;  %v1522_v22 = vperm.slane %v3290_v53, 4  ;;  %v1497_v9 = vperm.slane %v1478_v56, 0 }
  0xfa   :  { %3925 = vst [vmem:[#allocation33_spill] sm:$0xff] %v3382_v31  ;;  %v3391_v0 = vsub.f32 %v3928_v1, %v1458_v60  ;;  %v1527_v61 = vperm.slane %v1519_v3, 0  ;;  %v1545_v6 = vperm.slane %v3191_v25, 0  ;;  %v1546_v17 = vperm.slane %v3191_v25, 4 }
  0xfb   :  { %v3396_v59 = vsub.f32 %v3932_v10, %v1459_v47  ;;  %v3401_v34 = vsub.f32 %v3934_v38, %v1460_v15  ;;  %v1492_v60 = vsel %vm1489_vm9, %v1491_v23, %v1487_v39  ;;  %v3406_v19 = vmul.f32 %v1478_v56, %v1411_v36 }
  0xfc   :  { %3929 = vst [vmem:[#allocation34_spill] sm:$0xff] %v3391_v0  ;;  %v1498_v40 = vperm.slane %v1478_v56, 4  ;;  %v1528_v18 = vperm.slane %v1520_v30, 0  ;;  %v1499_v47 = vperm.slane %v1492_v60, 0  ;;  %v1500_v12 = vperm.slane %v1492_v60, 4 }
  0xfd   :  { %3933 = vst [vmem:[#allocation35_spill] sm:$0xff] %v3396_v59  ;;  %v1529_v1 = vperm.slane %v1521_v51, 0  ;;  %v1547_v13 = vperm.slane %v3200_v58, 0  ;;  %v1548_v16 = vperm.slane %v3200_v58, 4  ;;  %v1571_v15 = vperm.slane %v1437_v50, 0 }
  0xfe   :  { %3935 = vst [vmem:[#allocation22_spill] sm:$0xff] %v3401_v34  ;;  %v1572_v14 = vperm.slane %v1437_v50, 4  ;;  %v1573_v3 = vperm.slane %v3352_v57, 0  ;;  %v3414_v27 = vmul.f32 %v1492_v60, %v1412_v8  ;;  %v1505_v36 = vperm.slane %v1497_v9, 0 }
  0xff   :  { %v1530_v23 = vperm.slane %v1522_v22, 0  ;;  %v1574_v56 = vperm.slane %v3352_v57, 4  ;;  %v1506_v30 = vperm.slane %v1498_v40, 0  ;;  %v1513_v39 = vmul.f32 %v3406_v19, %v3283_v11 }
 0x100   :  { %v1553_v51 = vperm.slane %v1545_v6, 0  ;;  %v1565_v10 = vmul.f32 %v3406_v19, %v1437_v50  ;;  %v1507_v38 = vperm.slane %v1499_v47, 0  ;;  %v1508_v45 = vperm.slane %v1500_v12, 0 }
 0x101   :  { %v1554_v34 = vperm.slane %v1546_v17, 0  ;;  %v1555_v59 = vperm.slane %v1547_v13, 0  ;;  %v1556_v0 = vperm.slane %v1548_v16, 0  ;;  %v1579_v31 = vperm.slane %v1571_v15, 0 }
 0x102   :  { %v1580_v54 = vperm.slane %v1572_v14, 0  ;;  %v1581_v24 = vperm.slane %v1573_v3, 0  ;;  %v3421_v8 = vmul.f32 %v1505_v36, %v3320_v46  ;;  %v1539_v22 = vmul.f32 %v3406_v19, %v3191_v25  ;;  %v3942_v14 = vld [vmem:[#allocation33_spill] sm:$0xff] }
 0x103   :  { %v1566_v11 = vmul.f32 %v3414_v27, %v3352_v57  ;;  %v1582_v9 = vperm.slane %v1574_v56, 0  ;;  %v3428_v50 = vmul.f32 %v1506_v30, %v3336_v44  ;;  %v1514_v6 = vmul.f32 %v3414_v27, %v3290_v53 }
 0x104   :  { %v3936_v17 = vsub.f32 %v2986_v21, %v3258_v37  ;;  %v1567_v46 = vsub.f32 %v1441_v32, %v1565_v10  ;;  %v3438_v40 = vmul.f32 %v1507_v38, %v3341_v41  ;;  %v3441_v25 = vmul.f32 %v1508_v45, %v3346_v33  ;;  %v3944_v36 = vld [vmem:[#allocation35_spill] sm:$0xff] }
 0x105   :  { %v1540_v57 = vmul.f32 %v3414_v27, %v3200_v58  ;;  %v1568_v44 = vsub.f32 %v1442_v49, %v1566_v11  ;;  %v1531_v47 = vmul.f32 %v1527_v61, %v3421_v8  ;;  %v1532_v53 = vmul.f32 %v1528_v18, %v3428_v50 }
 0x106   :  { %v3435_v60 = vsub.f32 %v3936_v17, %v1513_v39  ;;  %v3448_v12 = vmul.f32 %v1553_v51, %v3421_v8  ;;  %2012 = vrcp.f32 %v1567_v46  ;;  %v1533_v21 = vmul.f32 %v1529_v1, %v3438_v40  ;;  %v3945_v39 = vld [vmem:[#allocation22_spill] sm:$0xff] }
 0x107   :  { %v1534_v37 = vmul.f32 %v1530_v23, %v3441_v25  ;;  %v3453_v41 = vmul.f32 %v1554_v34, %v3428_v50  ;;  %v3456_v45 = vmul.f32 %v1555_v59, %v3438_v40  ;;  %v3459_v58 = vsub.f32 %v3224_v5, %v1539_v22 }
 0x108   :  { %v3462_v33 = vmul.f32 %v1556_v0, %v3441_v25  ;;  %v3465_v32 = vmul.f32 %v1579_v31, %v3421_v8  ;;  %2014 = vrcp.f32 %v1568_v44  ;;  %v3937_v49 = vsub.f32 %v2990_v35, %v3262_v62 }
 0x109   :  { %v3471_v34 = vsub.f32 %v3227_v43, %v1540_v57  ;;  %v3474_v59 = vmul.f32 %v1580_v54, %v3428_v50  ;;  %v3477_v5 = vmul.f32 %v1581_v24, %v3438_v40  ;;  %v3938_v0 = vsub.f32 %v2993_v26, %v3266_v7 }
 0x10a   :  { %v1516_v61 = vsub.f32 %v3937_v49, %v1514_v6  ;;  %v3939_v31 = vsub.f32 %v2996_v55, %v3269_v20  ;;  %v1561_v35 = vsub.f32 %v3237_v42, %v3448_v12  ;;  %v3492_v43 = vmul.f32 %v1582_v9, %v3441_v25 }
 0x10b   :  { %v3482_v18 = vsub.f32 %v3938_v0, %v1531_v47  ;;  %v3940_v62 = vsub.f32 %v2999_v4, %v3272_v48  ;;  %v3941_v26 = vsub.f32 %v3006_v29, %v3275_v2  ;;  %v1562_v55 = vsub.f32 %v3242_v28, %v3453_v41  ;;  %v3943_v29 = vld [vmem:[#allocation34_spill] sm:$0xff] }
 0x10c   :  { %v3487_v1 = vsub.f32 %v3939_v31, %v1532_v53  ;;  %v1563_v20 = vsub.f32 %v3247_v63, %v3456_v45  ;;  %v2013_v16 = vpop.eup %2012  ;;  %v1564_v15 = vsub.f32 %v3252_v52, %v3462_v33  ;;  %v1587_v4 = vsub.f32 %v3942_v14, %v3465_v32 }
 0x10d   :  { %v3497_v13 = vsub.f32 %v3940_v62, %v1533_v21  ;;  %v3502_v7 = vsub.f32 %v3941_v26, %v1534_v37  ;;  %v1600_v48 = vand.u32 2147483647, %v1567_v46  ;;  %v1639_v3 = vperm.slane %v3435_v60, 0 }
 0x10e   :  { %v1588_v2 = vsub.f32 %v3943_v29, %v3474_v59  ;;  %v1589_v23 = vsub.f32 %v3944_v36, %v3477_v5  ;;  %v1592_v56 = vmul.f32 %v2013_v16, %v1567_v46  ;;  %vm1596_vm10 = vweird.f32 %v1567_v46  ;;  %v2015_v30 = vpop.eup %2014 }
 0x10f   :  { %v1590_v51 = vsub.f32 %v3945_v39, %v3492_v43  ;;  %v1602_v10 = vand.u32 2147483648, %v1567_v46  ;;  %v1614_v38 = vand.u32 2147483647, %v1568_v44  ;;  %v1616_v54 = vand.u32 2147483648, %v1568_v44 }
 0x110   :  { %v1593_v24 = vsub.f32 1.0, %v1592_v56  ;;  %vm1597_vm11 = vweird.f32 %v2013_v16  ;;  %v1606_v22 = vmul.f32 %v2015_v30, %v1568_v44  ;;  %v1640_v11 = vperm.slane %v3435_v60, 4 }
 0x111   :  { %vm3520_vm12 = vcmp.eq.f32.partialorder %v1600_v48, 8.507059e+37  ;;  %vm1610_vm13 = vweird.f32 %v1568_v44  ;;  %v1641_v6 = vperm.slane %v1516_v61, 0  ;;  %v1642_v17 = vperm.slane %v1516_v61, 4  ;;  %vm3526_vm15 = vmor %vm1596_vm10, %vm1597_vm11 }
 0x112   :  { %v1594_v57 = vmul.f32 %v2013_v16, %v1593_v24  ;;  %v1607_v47 = vsub.f32 1.0, %v1606_v22  ;;  %vm1611_vm14 = vweird.f32 %v2015_v30  ;;  %v1661_v53 = vperm.slane %v3459_v58, 0 }
 0x113   :  { %v1603_v37 = vor.u32 1.1754944e-38, %v1602_v10  ;;  %vm3530_vm1 = vcmp.eq.f32.partialorder %v1614_v38, 8.507059e+37  ;;  %v1617_v49 = vor.u32 1.1754944e-38, %v1616_v54  ;;  %v1647_v59 = vperm.slane %v1639_v3, 0  ;;  %vm3536_vm2 = vmor %vm1610_vm13, %vm1611_vm14 }
 0x114   :  { %v1595_v0 = vadd.f32 %v2013_v16, %v1594_v57  ;;  %v1608_v31 = vmul.f32 %v2015_v30, %v1607_v47  ;;  %v1648_v61 = vperm.slane %v1640_v11, 0  ;;  %v1662_v62 = vperm.slane %v3459_v58, 4 }
 0x115   :  { %v1649_v46 = vperm.slane %v1641_v6, 0  ;;  %v1663_v48 = vperm.slane %v3471_v34, 0  ;;  %v1664_v29 = vperm.slane %v3471_v34, 4  ;;  %v1683_v56 = vperm.slane %v3406_v19, 0 }
 0x116   :  { %v1599_v3 = vsel %vm3526_vm15, %v2013_v16, %v1595_v0  ;;  %v1609_v10 = vadd.f32 %v2015_v30, %v1608_v31  ;;  %v1650_v38 = vperm.slane %v1642_v17, 0  ;;  %v1669_v54 = vperm.slane %v1661_v53, 0 }
 0x117   :  { %v1604_v44 = vsel %vm3520_vm12, %v1603_v37, %v1599_v3  ;;  %v1684_v58 = vperm.slane %v3406_v19, 4  ;;  %v1685_v24 = vperm.slane %v3414_v27, 0  ;;  %v1686_v22 = vperm.slane %v3414_v27, 4 }
 0x118   :  { %v1613_v34 = vsel %vm3536_vm2, %v2015_v30, %v1609_v10  ;;  %v1621_v11 = vperm.slane %v1604_v44, 0  ;;  %v1622_v6 = vperm.slane %v1604_v44, 4  ;;  %v1670_v57 = vperm.slane %v1662_v62, 0 }
 0x119   :  { %v1618_v16 = vsel %vm3530_vm1, %v1617_v49, %v1613_v34  ;;  %v1671_v17 = vperm.slane %v1663_v48, 0  ;;  %v1672_v47 = vperm.slane %v1664_v29, 0  ;;  %v1691_v53 = vperm.slane %v1683_v56, 0 }
 0x11a   :  { %v1623_v9 = vperm.slane %v1618_v16, 0  ;;  %v1624_v21 = vperm.slane %v1618_v16, 4  ;;  %v1629_v37 = vperm.slane %v1621_v11, 0  ;;  %v1630_v19 = vperm.slane %v1622_v6, 0 }
 0x11b   :  { %v1692_v0 = vperm.slane %v1684_v58, 0  ;;  %v1693_v31 = vperm.slane %v1685_v24, 0  ;;  %v1694_v3 = vperm.slane %v1686_v22, 0  ;;  %vm1710_vm3 = vcmask 1040384  }
 0x11c   :  { %v1631_v27 = vperm.slane %v1623_v9, 0  ;;  %v1632_v26 = vperm.slane %v1624_v21, 0  ;;  %v3557_v30 = vmul.f32 %v1629_v37, %v1587_v4  ;;  %v3559_v60 = vmul.f32 %v1630_v19, %v1588_v2 }
 0x11d   :  { %vm1712_vm4 = vcmask 1042434   ;;  %vm1714_vm5 = vcmask 1041408   ;;  %vm1717_vm6 = vcmask 1043459   ;;  %vm1719_vm7 = vcmask 1042433  }
 0x11e   :  { %v3564_v49 = vmul.f32 %v1631_v27, %v1589_v23  ;;  %v3569_v62 = vmul.f32 %v1632_v26, %v1590_v51  ;;  %v1651_v32 = vmul.f32 %v1647_v59, %v3557_v30  ;;  %v1652_v14 = vmul.f32 %v1648_v61, %v3559_v60 }
 0x11f   :  { %v1673_v4 = vmul.f32 %v1669_v54, %v3557_v30  ;;  %v1674_v2 = vmul.f32 %v1670_v57, %v3559_v60  ;;  %v1695_v48 = vmul.f32 %v1691_v53, %v3557_v30  ;;  %v1696_v29 = vmul.f32 %v1692_v0, %v3559_v60 }
 0x120   :  { %v1653_v5 = vmul.f32 %v1649_v46, %v3564_v49  ;;  %v1654_v36 = vmul.f32 %v1650_v38, %v3569_v62  ;;  %v1655_v43 = vsub.f32 %v3482_v18, %v1651_v32  ;;  %v1656_v23 = vsub.f32 %v3487_v1, %v1652_v14 }
 0x121   :  { %v1675_v39 = vmul.f32 %v1671_v17, %v3564_v49  ;;  %v1676_v51 = vmul.f32 %v1672_v47, %v3569_v62  ;;  %v1677_v59 = vsub.f32 %v1561_v35, %v1673_v4  ;;  %v1678_v61 = vsub.f32 %v1562_v55, %v1674_v2 }
 0x122   :  { %v1657_v46 = vsub.f32 %v3497_v13, %v1653_v5  ;;  %v1658_v56 = vsub.f32 %v3502_v7, %v1654_v36  ;;  %v1697_v18 = vmul.f32 %v1693_v31, %v3564_v49  ;;  %v1698_v1 = vmul.f32 %v1694_v3, %v3569_v62 }
 0x123   :  { %v1679_v10 = vsub.f32 %v1563_v20, %v1675_v39  ;;  %v1680_v42 = vsub.f32 %v1564_v15, %v1676_v51  ;;  %v1699_v12 = vsub.f32 %v3421_v8, %v1695_v48  ;;  %v1700_v28 = vsub.f32 %v3428_v50, %v1696_v29 }
 0x124   :  { %v1701_v41 = vsub.f32 %v3438_v40, %v1697_v18  ;;  %v1702_v35 = vsub.f32 %v3441_v25, %v1698_v1  ;;  %v1707_v13 = vrot.slane %v1656_v23, 7  ;;  %v1708_v7 = vrot.slane %v1657_v46, 6 }
 0x125   :  { %v1709_v55 = vrot.slane %v1658_v56, 5  ;;  %v1726_v38 = vrot.slane %v1678_v61, 7  ;;  %v1727_v54 = vrot.slane %v1679_v10, 6  ;;  %v1728_v44 = vrot.slane %v1680_v42, 5 }
 0x126   :  { %v1711_v63 = vsel %vm1710_vm3, %v1655_v43, %v1707_v13  ;;  %v1716_v45 = vsel %vm108_vm0, %v1655_v43, %v1707_v13  ;;  %v1740_v52 = vrot.slane %v1700_v28, 7  ;;  %v1741_v33 = vrot.slane %v1701_v41, 6 }
 0x127   :  { %v1713_v8 = vsel %vm1712_vm4, %v1708_v7, %v1709_v55  ;;  %v1718_v50 = vsel %vm1717_vm6, %v1708_v7, %v1709_v55  ;;  %v1729_v40 = vsel %vm1710_vm3, %v1677_v59, %v1726_v38  ;;  %v1730_v25 = vsel %vm1712_vm4, %v1727_v54, %v1728_v44 }
 0x128   :  { %v3610_v20 = vsel %vm1714_vm5, %v1711_v63, %v1713_v8  ;;  %v1720_v15 = vsel %vm1719_vm7, %v1716_v45, %v1718_v50  ;;  %v3614_v58 = vsel %vm1714_vm5, %v1729_v40, %v1730_v25  ;;  %v1732_v24 = vsel %vm108_vm0, %v1677_v59, %v1726_v38 }
 0x129   :  { %v3617_v22 = vrot.slane %v1720_v15, 1  ;;  %v1733_v34 = vsel %vm1717_vm6, %v1727_v54, %v1728_v44  ;;  %v1742_v11 = vrot.slane %v1702_v35, 5  ;;  %v1743_v6 = vsel %vm1710_vm3, %v1699_v12, %v1740_v52 }
 0x12a   :  { %v1734_v57 = vsel %vm1719_vm7, %v1732_v24, %v1733_v34  ;;  %v1746_v16 = vsel %vm108_vm0, %v1699_v12, %v1740_v52  ;;  %v1754_v17 = vrot.slane %v3559_v60, 7  ;;  %v1755_v47 = vrot.slane %v3564_v49, 6 }
 0x12b   :  { %v1735_v53 = vrot.slane %v1734_v57, 1  ;;  %v1744_v9 = vsel %vm1712_vm4, %v1741_v33, %v1742_v11  ;;  %v1747_v21 = vsel %vm1717_vm6, %v1741_v33, %v1742_v11  ;;  %v1756_v37 = vrot.slane %v3569_v62, 5 }
 0x12c   :  { %v1745_v19 = vsel %vm1714_vm5, %v1743_v6, %v1744_v9  ;;  %v1748_v0 = vsel %vm1719_vm7, %v1746_v16, %v1747_v21  ;;  %v1757_v31 = vsel %vm1710_vm3, %v3557_v30, %v1754_v17  ;;  %v1760_v3 = vsel %vm108_vm0, %v3557_v30, %v1754_v17 }
 0x12d   :  { %v1749_v27 = vrot.slane %v1748_v0, 1  ;;  %v1758_v26 = vsel %vm1712_vm4, %v1755_v47, %v1756_v37  ;;  %v1761_v60 = vsel %vm1717_vm6, %v1755_v47, %v1756_v37  ;;  %v1764_v49 = vperm.slane %v3610_v20, 0 }
 0x12e   :  { %v1759_v32 = vsel %vm1714_vm5, %v1757_v31, %v1758_v26  ;;  %v1762_v62 = vsel %vm1719_vm7, %v1760_v3, %v1761_v60  ;;  %v1765_v14 = vperm.slane %v3610_v20, 1  ;;  %v1766_v4 = vperm.slane %v3610_v20, 2 }
 0x12f   :  { %v1763_v2 = vrot.slane %v1762_v62, 1  ;;  %v1767_v48 = vperm.slane %v3610_v20, 3  ;;  %v1768_v30 = vperm.slane %v3617_v22, 0  ;;  %v1769_v29 = vperm.slane %v3617_v22, 1 }
 0x130   :  { %vm1844_vm0 = vcmask 1042432   ;;  %v1770_v5 = vperm.slane %v3617_v22, 2  ;;  %v1771_v36 = vperm.slane %v3617_v22, 3  ;;  %v1780_v43 = vperm.slane %v3614_v58, 0 }
 0x131   :  { %v1781_v23 = vperm.slane %v3614_v58, 1  ;;  %v1782_v39 = vperm.slane %v3614_v58, 2  ;;  %v1783_v51 = vperm.slane %v3614_v58, 3  ;;  %v1784_v59 = vperm.slane %v1735_v53, 0 }
 0x132   :  { %v1785_v61 = vperm.slane %v1735_v53, 1  ;;  %v1786_v46 = vperm.slane %v1735_v53, 2  ;;  %v1787_v56 = vperm.slane %v1735_v53, 3  ;;  %v1796_v18 = vperm.slane %v1745_v19, 0 }
 0x133   :  { %v1797_v1 = vperm.slane %v1745_v19, 1  ;;  %v1798_v10 = vperm.slane %v1745_v19, 2  ;;  %v1799_v42 = vperm.slane %v1745_v19, 3  ;;  %v1800_v12 = vperm.slane %v1749_v27, 0 }
 0x134   :  { %v1801_v28 = vperm.slane %v1749_v27, 1  ;;  %vm1865_vm8 = vcmask 1043456   ;;  %v1802_v41 = vperm.slane %v1749_v27, 2  ;;  %v1803_v35 = vperm.slane %v1749_v27, 3 }
 0x135   :  { %v1812_v13 = vperm.slane %v1759_v32, 0  ;;  %v1813_v7 = vperm.slane %v1759_v32, 1  ;;  %v1814_v55 = vperm.slane %v1759_v32, 2  ;;  %v1815_v38 = vperm.slane %v1759_v32, 3 }
 0x136   :  { %v1816_v54 = vperm.slane %v1763_v2, 0  ;;  %v1817_v44 = vperm.slane %v1763_v2, 1  ;;  %v1818_v63 = vperm.slane %v1763_v2, 2  ;;  %v1819_v45 = vperm.slane %v1763_v2, 3 }
 0x137   :  { %v1828_v52 = vsel %vm1710_vm3, %v1764_v49, %v1780_v43  ;;  %v1829_v33 = vsel %vm1710_vm3, %v1765_v14, %v1781_v23  ;;  %v1830_v8 = vsel %vm1710_vm3, %v1766_v4, %v1782_v39  ;;  %v1831_v50 = vsel %vm1710_vm3, %v1767_v48, %v1783_v51 }
 0x138   :  { %v1832_v40 = vsel %vm1710_vm3, %v1768_v30, %v1784_v59  ;;  %v1833_v25 = vsel %vm1710_vm3, %v1769_v29, %v1785_v61  ;;  %v1834_v20 = vsel %vm1710_vm3, %v1770_v5, %v1786_v46  ;;  %v1835_v15 = vsel %vm1710_vm3, %v1771_v36, %v1787_v56 }
 0x139   :  { %v1836_v58 = vsel %vm1714_vm5, %v1828_v52, %v1796_v18  ;;  %v1837_v24 = vsel %vm1714_vm5, %v1829_v33, %v1797_v1  ;;  %v1838_v22 = vsel %vm1714_vm5, %v1830_v8, %v1798_v10  ;;  %v1839_v34 = vsel %vm1714_vm5, %v1831_v50, %v1799_v42 }
 0x13a   :  { %v1840_v11 = vsel %vm1714_vm5, %v1832_v40, %v1800_v12  ;;  %v1841_v6 = vsel %vm1714_vm5, %v1833_v25, %v1801_v28  ;;  %v1842_v57 = vsel %vm1714_vm5, %v1834_v20, %v1802_v41  ;;  %v1843_v16 = vsel %vm1714_vm5, %v1835_v15, %v1803_v35 }
 0x13b   :  { %v1845_v17 = vsel %vm1844_vm0, %v1836_v58, %v1812_v13  ;;  %v1846_v47 = vsel %vm1844_vm0, %v1837_v24, %v1813_v7  ;;  %v1847_v53 = vsel %vm1844_vm0, %v1838_v22, %v1814_v55  ;;  %v1848_v9 = vsel %vm1844_vm0, %v1839_v34, %v1815_v38 }
 0x13c   :  { %v1849_v21 = vsel %vm1844_vm0, %v1840_v11, %v1816_v54  ;;  %v1850_v37 = vsel %vm1844_vm0, %v1841_v6, %v1817_v44  ;;  %v1851_v19 = vsel %vm1844_vm0, %v1842_v57, %v1818_v63  ;;  %v1852_v0 = vsel %vm1844_vm0, %v1843_v16, %v1819_v45 }
 0x13d   :  { %v1861_v31 = vrot.slane %v1846_v47, 4  ;;  %v1862_v3 = vrot.slane %v1848_v9, 4  ;;  %v1863_v27 = vrot.slane %v1850_v37, 4  ;;  %v1864_v26 = vrot.slane %v1852_v0, 4 }
 0x13f   :  { %v1866_v60 = vsel %vm1865_vm8, %v1845_v17, %v1861_v31  ;;  %v1867_v49 = vsel %vm1865_vm8, %v1847_v53, %v1862_v3  ;;  %v1868_v32 = vsel %vm1865_vm8, %v1849_v21, %v1863_v27  ;;  %v1869_v62 = vsel %vm1865_vm8, %v1851_v19, %v1864_v26 }
 0x140   :  { %1874 = vst [vmem:[#allocation8] sm:$0xff] %v1866_v60 }
 0x141   :  { %1875 = vst [vmem:[#allocation8 + $0x8] sm:$0xff] %v1867_v49 }
 0x142   :  { %1876 = vst [vmem:[#allocation8 + $0x10] sm:$0xff] %v1868_v32 }
 0x143   :  { %1877 = vst [vmem:[#allocation8 + $0x18] sm:$0xff] %v1869_v62 }
 0x144   :  { %1890 = dma.vmem_to_hbm [thread:$0]  %s1883_s27, 512, %s1885_s30, [#allocation4], %s2119_s20, %s2119_s20, %s2120_s21  }
 0x145   :  { %2116 = dma.done.wait [#allocation4], 512  }
 0x146   :  { %2117 = vsyncadd [#allocation4], 4294966784 }
 0x147   :  { %1895 = vsyncpa [#allocation3], 1 }
 0x148   :  { %1896 = vsyncpa [#allocation6], 1 }
 0x149   :  { %1897 = vsyncpa [#allocation4], 1 }

</bundles_post_ra>
